<compile_context>
chip_gen: v6e
topology: v6e:2x2x1
jax: 0.10.0
libtpu: 0.0.40
codegen_flags: <defaults>
</compile_context>

<pallas_src>
import functools
import math

import jax
import jax.numpy as jnp
from jax.experimental import pallas as pl
from jax.experimental.pallas import tpu as pltpu


def _self_attn_kernel(x_ref, pos_ref,
                      w_qk_ref, b_qk_ref,
                      w_v_ref, b_v_ref,
                      w_o_ref, b_o_ref,
                      ln_w_ref, ln_b_ref,
                      out_ref,
                      *, nhead, ln_eps):
    # x_ref / pos_ref / out_ref block: (nb, L, E), batch-first.
    nb, L, E = x_ref.shape
    Dh = E // nhead
    R = nb * L

    x = x_ref[...]                                   # (nb, L, E) f32, value input
    qk_in = x + pos_ref[...]                         # q = k = tgt + query_pos

    # Collapse (nb, L) -> rows (free view when L % 8 == 0; last dim unchanged).
    x2 = x.reshape(R, E)
    qk2 = qk_in.reshape(R, E)

    # ---- fused in-projection: weights pre-transposed + bf16, scale folded into Q.
    qk_p = jnp.dot(qk2.astype(jnp.bfloat16), w_qk_ref[...],
                   preferred_element_type=jnp.float32) + b_qk_ref[...]   # (R, 2E)
    v2 = jnp.dot(x2.astype(jnp.bfloat16), w_v_ref[...],
                 preferred_element_type=jnp.float32) + b_v_ref[...]      # (R, E)

    q2 = qk_p[:, :E]          # already scaled by 1/sqrt(Dh) via the weights
    k2 = qk_p[:, E:]

    # ---- gather heads once into a single leading batch dim: (nhead*nb, L, Dh).
    def to_heads(t2):
        return jnp.concatenate(
            [t2[:, h * Dh:(h + 1) * Dh].reshape(nb, L, Dh) for h in range(nhead)],
            axis=0)

    qh = to_heads(q2).astype(jnp.bfloat16)
    kh = to_heads(k2).astype(jnp.bfloat16)
    vh = to_heads(v2).astype(jnp.bfloat16)

    # ---- one batched MXU stream for scores and for the weighted sum.
    s = jnp.einsum('bqd,bkd->bqk', qh, kh,
                   preferred_element_type=jnp.float32)                    # (H*nb, L, L)
    s = s - jnp.max(s, axis=-1, keepdims=True)
    p = jnp.exp(s)
    p = p * pl.reciprocal(jnp.sum(p, axis=-1, keepdims=True), approx=True)
    o = jnp.einsum('bqk,bkd->bqd', p.astype(jnp.bfloat16), vh,
                   preferred_element_type=jnp.float32)                    # (H*nb, L, Dh)

    # ---- back to (R, E): heads concatenated along lanes in standard order.
    attn = jnp.concatenate(
        [o[h * nb:(h + 1) * nb].reshape(R, Dh) for h in range(nhead)],
        axis=-1)

    # ---- output projection + residual + post-LayerNorm (f32 vector math).
    y = jnp.dot(attn.astype(jnp.bfloat16), w_o_ref[...],
                preferred_element_type=jnp.float32) + b_o_ref[...]
    y = x2 + y
    mean = jnp.mean(y, axis=-1, keepdims=True)
    yc = y - mean
    var = jnp.mean(yc * yc, axis=-1, keepdims=True)
    out = yc * jax.lax.rsqrt(var + ln_eps) * ln_w_ref[...] + ln_b_ref[...]

    out_ref[...] = out.reshape(nb, L, E).astype(out_ref.dtype)


def self_attention_layer(tgt, query_pos, params, *, nhead, batch_block=8,
                         single_buffer_weights=True):
    """forward_post of SelfAttentionLayer (dropout=0, masks=None).

    tgt, query_pos: (L, N, E) float32 -- PyTorch seq-first convention.
    """
    L, N, E = tgt.shape
    assert E % nhead == 0
    head_dim = E // nhead
    nb = min(batch_block, N)
    assert N % nb == 0, "batch size must be divisible by the batch block"

    # (L, N, E) -> (N, L, E): batch-first so each grid block (nb, L, E) keeps its
    # last two dims full-extent / (8,128)-aligned.  (Doing this relayout via the
    # index_map would need a sub-8 second-minor block on the (L, N, E) layout.)
    x = jnp.transpose(tgt, (1, 0, 2))
    pos = jnp.transpose(query_pos, (1, 0, 2))

    # ---- one-time parameter prep: pre-transpose, fuse Q|K, fold 1/sqrt(Dh), bf16.
    scale = 1.0 / math.sqrt(head_dim)
    w_qk = jnp.concatenate([params["wq"].T * scale, params["wk"].T], axis=1)
    w_qk = w_qk.astype(jnp.bfloat16)                         # (E, 2E)
    b_qk = jnp.concatenate([params["bq"] * scale, params["bk"]]).reshape(1, 2 * E)
    w_v = params["wv"].T.astype(jnp.bfloat16)                # (E, E)
    b_v = params["bv"].reshape(1, E)
    w_o = params["wo"].T.astype(jnp.bfloat16)                # (E, E)
    b_o = params["bo"].reshape(1, E)
    ln_w = params["ln_w"].reshape(1, E)
    ln_b = params["ln_b"].reshape(1, E)

    seq_spec = pl.BlockSpec((nb, L, E), lambda b: (b, 0, 0))
    wkw = dict(pipeline_mode=pl.Buffered(1)) if single_buffer_weights else {}
    const_spec = lambda shape: pl.BlockSpec(shape, lambda b: (0, 0), **wkw)

    kernel = functools.partial(_self_attn_kernel, nhead=nhead, ln_eps=1e-5)

    out = pl.pallas_call(
        kernel,
        out_shape=jax.ShapeDtypeStruct((N, L, E), tgt.dtype),
        grid_spec=pltpu.PrefetchScalarGridSpec(
            num_scalar_prefetch=0,
            grid=(N // nb,),
            in_specs=[
                seq_spec,                        # tgt (batch-first)
                seq_spec,                        # query_pos
                const_spec((E, 2 * E)),          # fused Wq|Wk (pre-T, scale folded)
                const_spec((1, 2 * E)),          # fused bq|bk (bq scale folded)
                const_spec((E, E)),              # Wv (pre-T)
                const_spec((1, E)),              # bv
                const_spec((E, E)),              # Wo (pre-T)
                const_spec((1, E)),              # bo
                const_spec((1, E)),              # ln_w
                const_spec((1, E)),              # ln_b
            ],
            out_specs=seq_spec,
        ),
        compiler_params=pltpu.CompilerParams(
            dimension_semantics=("parallel",),
            vmem_limit_bytes=32 * 1024 * 1024),
    )(x, pos, w_qk, b_qk, w_v, b_v, w_o, b_o, ln_w, ln_b)

    return jnp.transpose(out, (1, 0, 2))          # back to (L, N, E)


def _xavier_uniform(key, shape):
    fan_in, fan_out = shape[1], shape[0]
    bound = (6.0 / (fan_in + fan_out)) ** 0.5
    return jax.random.uniform(key, shape, jnp.float32, -bound, bound)


def _init_params(key, d_model):
    # nn.MultiheadAttention + nn.LayerNorm after _reset_parameters(): weights are
    # xavier-uniform, biases zero, LN weight ones.  Biases get small random
    # values here purely so the fused / scale-folded bias path is exercised by
    # the correctness check (the kernel is correct for any parameter values).
    ks = jax.random.split(key, 6)
    in_proj = _xavier_uniform(ks[0], (3 * d_model, d_model))
    b = 0.1
    return {
        "wq": in_proj[0 * d_model:1 * d_model],
        "wk": in_proj[1 * d_model:2 * d_model],
        "wv": in_proj[2 * d_model:3 * d_model],
        "bq": b * jax.random.normal(ks[1], (d_model,), jnp.float32),
        "bk": b * jax.random.normal(ks[2], (d_model,), jnp.float32),
        "bv": b * jax.random.normal(ks[3], (d_model,), jnp.float32),
        "wo": _xavier_uniform(ks[4], (d_model, d_model)),
        "bo": b * jax.random.normal(ks[5], (d_model,), jnp.float32),
        "ln_w": jnp.ones((d_model,), jnp.float32),
        "ln_b": jnp.zeros((d_model,), jnp.float32),
    }


def _reference(tgt, query_pos, params, *, nhead):
    """Pure-JAX f32 reference of forward_post for the correctness check."""
    L, N, E = tgt.shape
    Dh = E // nhead
    qk = tgt + query_pos
    q = qk @ params["wq"].T + params["bq"]
    k = qk @ params["wk"].T + params["bk"]
    v = tgt @ params["wv"].T + params["bv"]

    def split(t):  # (L, N, E) -> (N, H, L, Dh)
        return jnp.transpose(t.reshape(L, N, nhead, Dh), (1, 2, 0, 3))

    qh, kh, vh = split(q), split(k), split(v)
    s = jnp.einsum("nhld,nhmd->nhlm", qh * (Dh ** -0.5), kh)
    p = jax.nn.softmax(s, axis=-1)
    o = jnp.einsum("nhlm,nhmd->nhld", p, vh)
    o = jnp.transpose(o, (2, 0, 1, 3)).reshape(L, N, E)
    o = o @ params["wo"].T + params["bo"]
    y = tgt + o
    mean = y.mean(-1, keepdims=True)
    var = ((y - mean) ** 2).mean(-1, keepdims=True)
    return (y - mean) / jnp.sqrt(var + 1e-5) * params["ln_w"] + params["ln_b"]


if __name__ == "__main__":
    d_model, nhead = 32, 4
    L, N = 8, 16           # num queries (seq), batch -> grid of 2 parallel steps

    key = jax.random.PRNGKey(0)
    k_p, k_x, k_pos = jax.random.split(key, 3)
    params = _init_params(k_p, d_model)

    tgt = jax.random.normal(k_x, (L, N, d_model), jnp.float32)
    query_pos = jax.random.normal(k_pos, (L, N, d_model), jnp.float32)

    try:
        out = self_attention_layer(tgt, query_pos, params, nhead=nhead)
    except Exception:
        # This jax/libtpu build rejected single-buffered weights (pl.Buffered(1));
        # fall back to default double-buffering (correctness unchanged).
        out = self_attention_layer(tgt, query_pos, params, nhead=nhead,
                                   single_buffer_weights=False)
    out = jax.block_until_ready(out)

    ref = _reference(tgt, query_pos, params, nhead=nhead)
    assert out.shape == (L, N, d_model)
    max_err = float(jnp.max(jnp.abs(out - ref)))
    assert jnp.allclose(out, ref, atol=5e-2, rtol=5e-2), \
        f"mismatch vs reference (max abs err {max_err})"

    print("KERNEL_OK")
</pallas_src>

<mosaic_0001>
module attributes {stable_mosaic.version = 11 : i64} {
  func.func @_self_attn_kernel(%arg0: i32, %arg1: memref<8x8x32xf32, #tpu.memory_space<vmem>>, %arg2: memref<8x8x32xf32, #tpu.memory_space<vmem>>, %arg3: memref<32x64xbf16, #tpu.memory_space<vmem>>, %arg4: memref<1x64xf32, #tpu.memory_space<vmem>>, %arg5: memref<32x32xbf16, #tpu.memory_space<vmem>>, %arg6: memref<1x32xf32, #tpu.memory_space<vmem>>, %arg7: memref<32x32xbf16, #tpu.memory_space<vmem>>, %arg8: memref<1x32xf32, #tpu.memory_space<vmem>>, %arg9: memref<1x32xf32, #tpu.memory_space<vmem>>, %arg10: memref<1x32xf32, #tpu.memory_space<vmem>>, %arg11: memref<8x8x32xf32, #tpu.memory_space<vmem>>) attributes {dimension_semantics = [#tpu.dimension_semantics<parallel>], iteration_bounds = array<i64: 2>, scalar_prefetch = 0 : i64, scratch_operands = 0 : i64, tpu.core_type = #tpu.core_type<tc>, window_params = [{transform_indices = @transform_0, window_bounds = array<i64: 8, 8, 32>}, {transform_indices = @transform_1, window_bounds = array<i64: 8, 8, 32>}, {pipeline_mode = #tpu.pipeline_mode<synchronous>, transform_indices = @transform_2, window_bounds = array<i64: 32, 64>}, {pipeline_mode = #tpu.pipeline_mode<synchronous>, transform_indices = @transform_3, window_bounds = array<i64: 1, 64>}, {pipeline_mode = #tpu.pipeline_mode<synchronous>, transform_indices = @transform_4, window_bounds = array<i64: 32, 32>}, {pipeline_mode = #tpu.pipeline_mode<synchronous>, transform_indices = @transform_5, window_bounds = array<i64: 1, 32>}, {pipeline_mode = #tpu.pipeline_mode<synchronous>, transform_indices = @transform_6, window_bounds = array<i64: 32, 32>}, {pipeline_mode = #tpu.pipeline_mode<synchronous>, transform_indices = @transform_7, window_bounds = array<i64: 1, 32>}, {pipeline_mode = #tpu.pipeline_mode<synchronous>, transform_indices = @transform_8, window_bounds = array<i64: 1, 32>}, {pipeline_mode = #tpu.pipeline_mode<synchronous>, transform_indices = @transform_9, window_bounds = array<i64: 1, 32>}, {transform_indices = @transform_10, window_bounds = array<i64: 8, 8, 32>}]} {
    %c0 = arith.constant 0 : index
    %c0_0 = arith.constant 0 : index
    %c0_1 = arith.constant 0 : index
    %0 = vector.load %arg1[%c0, %c0_0, %c0_1] : memref<8x8x32xf32, #tpu.memory_space<vmem>>, vector<8x8x32xf32>
    %c0_2 = arith.constant 0 : index
    %c0_3 = arith.constant 0 : index
    %c0_4 = arith.constant 0 : index
    %1 = vector.load %arg2[%c0_2, %c0_3, %c0_4] : memref<8x8x32xf32, #tpu.memory_space<vmem>>, vector<8x8x32xf32>
    %2 = arith.addf %0, %1 : vector<8x8x32xf32>
    %3 = vector.shape_cast %0 : vector<8x8x32xf32> to vector<64x32xf32>
    %4 = vector.shape_cast %2 : vector<8x8x32xf32> to vector<64x32xf32>
    %5 = arith.truncf %4 : vector<64x32xf32> to vector<64x32xbf16>
    %c0_5 = arith.constant 0 : index
    %c0_6 = arith.constant 0 : index
    %6 = vector.load %arg3[%c0_5, %c0_6] : memref<32x64xbf16, #tpu.memory_space<vmem>>, vector<32x64xbf16>
    %cst = arith.constant dense<0.000000e+00> : vector<64x64xf32>
    %7 = tpu.matmul %5, %6, %cst {dimension_numbers = #tpu.dot_dimension_numbers<[1], [0], [0], [1], [0, 0, 1, 1], [], []>} : vector<64x32xbf16>, vector<32x64xbf16>, vector<64x64xf32> -> vector<64x64xf32>
    %c0_7 = arith.constant 0 : index
    %c0_8 = arith.constant 0 : index
    %8 = vector.load %arg4[%c0_7, %c0_8] : memref<1x64xf32, #tpu.memory_space<vmem>>, vector<1x64xf32>
    %9 = vector.broadcast %8 : vector<1x64xf32> to vector<64x64xf32>
    %10 = arith.addf %7, %9 : vector<64x64xf32>
    %11 = arith.truncf %3 : vector<64x32xf32> to vector<64x32xbf16>
    %c0_9 = arith.constant 0 : index
    %c0_10 = arith.constant 0 : index
    %12 = vector.load %arg5[%c0_9, %c0_10] : memref<32x32xbf16, #tpu.memory_space<vmem>>, vector<32x32xbf16>
    %cst_11 = arith.constant dense<0.000000e+00> : vector<64x32xf32>
    %13 = tpu.matmul %11, %12, %cst_11 {dimension_numbers = #tpu.dot_dimension_numbers<[1], [0], [0], [1], [0, 0, 1, 1], [], []>} : vector<64x32xbf16>, vector<32x32xbf16>, vector<64x32xf32> -> vector<64x32xf32>
    %c0_12 = arith.constant 0 : index
    %c0_13 = arith.constant 0 : index
    %14 = vector.load %arg6[%c0_12, %c0_13] : memref<1x32xf32, #tpu.memory_space<vmem>>, vector<1x32xf32>
    %15 = vector.broadcast %14 : vector<1x32xf32> to vector<64x32xf32>
    %16 = arith.addf %13, %15 : vector<64x32xf32>
    %17 = vector.extract_strided_slice %10 {offsets = [0, 0], sizes = [64, 32], strides = [1, 1]} : vector<64x64xf32> to vector<64x32xf32>
    %18 = vector.extract_strided_slice %10 {offsets = [0, 32], sizes = [64, 32], strides = [1, 1]} : vector<64x64xf32> to vector<64x32xf32>
    %19 = vector.extract_strided_slice %17 {offsets = [0, 0], sizes = [64, 8], strides = [1, 1]} : vector<64x32xf32> to vector<64x8xf32>
    %20 = vector.shape_cast %19 : vector<64x8xf32> to vector<8x8x8xf32>
    %21 = vector.extract_strided_slice %17 {offsets = [0, 8], sizes = [64, 8], strides = [1, 1]} : vector<64x32xf32> to vector<64x8xf32>
    %22 = vector.shape_cast %21 : vector<64x8xf32> to vector<8x8x8xf32>
    %23 = vector.extract_strided_slice %17 {offsets = [0, 16], sizes = [64, 8], strides = [1, 1]} : vector<64x32xf32> to vector<64x8xf32>
    %24 = vector.shape_cast %23 : vector<64x8xf32> to vector<8x8x8xf32>
    %25 = vector.extract_strided_slice %17 {offsets = [0, 24], sizes = [64, 8], strides = [1, 1]} : vector<64x32xf32> to vector<64x8xf32>
    %26 = vector.shape_cast %25 : vector<64x8xf32> to vector<8x8x8xf32>
    %27 = tpu.concatenate %20, %22, %24, %26 in 0 : vector<8x8x8xf32>, vector<8x8x8xf32>, vector<8x8x8xf32>, vector<8x8x8xf32> -> vector<32x8x8xf32>
    %28 = arith.truncf %27 : vector<32x8x8xf32> to vector<32x8x8xbf16>
    %29 = vector.extract_strided_slice %18 {offsets = [0, 0], sizes = [64, 8], strides = [1, 1]} : vector<64x32xf32> to vector<64x8xf32>
    %30 = vector.shape_cast %29 : vector<64x8xf32> to vector<8x8x8xf32>
    %31 = vector.extract_strided_slice %18 {offsets = [0, 8], sizes = [64, 8], strides = [1, 1]} : vector<64x32xf32> to vector<64x8xf32>
    %32 = vector.shape_cast %31 : vector<64x8xf32> to vector<8x8x8xf32>
    %33 = vector.extract_strided_slice %18 {offsets = [0, 16], sizes = [64, 8], strides = [1, 1]} : vector<64x32xf32> to vector<64x8xf32>
    %34 = vector.shape_cast %33 : vector<64x8xf32> to vector<8x8x8xf32>
    %35 = vector.extract_strided_slice %18 {offsets = [0, 24], sizes = [64, 8], strides = [1, 1]} : vector<64x32xf32> to vector<64x8xf32>
    %36 = vector.shape_cast %35 : vector<64x8xf32> to vector<8x8x8xf32>
    %37 = tpu.concatenate %30, %32, %34, %36 in 0 : vector<8x8x8xf32>, vector<8x8x8xf32>, vector<8x8x8xf32>, vector<8x8x8xf32> -> vector<32x8x8xf32>
    %38 = arith.truncf %37 : vector<32x8x8xf32> to vector<32x8x8xbf16>
    %39 = vector.extract_strided_slice %16 {offsets = [0, 0], sizes = [64, 8], strides = [1, 1]} : vector<64x32xf32> to vector<64x8xf32>
    %40 = vector.shape_cast %39 : vector<64x8xf32> to vector<8x8x8xf32>
    %41 = vector.extract_strided_slice %16 {offsets = [0, 8], sizes = [64, 8], strides = [1, 1]} : vector<64x32xf32> to vector<64x8xf32>
    %42 = vector.shape_cast %41 : vector<64x8xf32> to vector<8x8x8xf32>
    %43 = vector.extract_strided_slice %16 {offsets = [0, 16], sizes = [64, 8], strides = [1, 1]} : vector<64x32xf32> to vector<64x8xf32>
    %44 = vector.shape_cast %43 : vector<64x8xf32> to vector<8x8x8xf32>
    %45 = vector.extract_strided_slice %16 {offsets = [0, 24], sizes = [64, 8], strides = [1, 1]} : vector<64x32xf32> to vector<64x8xf32>
    %46 = vector.shape_cast %45 : vector<64x8xf32> to vector<8x8x8xf32>
    %47 = tpu.concatenate %40, %42, %44, %46 in 0 : vector<8x8x8xf32>, vector<8x8x8xf32>, vector<8x8x8xf32>, vector<8x8x8xf32> -> vector<32x8x8xf32>
    %48 = arith.truncf %47 : vector<32x8x8xf32> to vector<32x8x8xbf16>
    "tpu.trace_start"() <{level = 10 : i32, message = "bqd,bkd->bqk"}> : () -> ()
    %cst_14 = arith.constant dense<0.000000e+00> : vector<32x8x8xf32>
    %49 = tpu.matmul %28, %38, %cst_14 {dimension_numbers = #tpu.dot_dimension_numbers<[2], [2], [1], [1], [0, 0, 0, 1, 1, 1], [0], [0]>} : vector<32x8x8xbf16>, vector<32x8x8xbf16>, vector<32x8x8xf32> -> vector<32x8x8xf32>
    "tpu.trace_stop"() : () -> ()
    %cst_15 = arith.constant dense<0xFF800000> : vector<32x8xf32>
    %50 = vector.multi_reduction <maximumf>, %49, %cst_15 [2] : vector<32x8x8xf32> to vector<32x8xf32>
    %51 = vector.shape_cast %50 : vector<32x8xf32> to vector<32x8x1xf32>
    %52 = vector.broadcast %51 : vector<32x8x1xf32> to vector<32x8x8xf32>
    %53 = arith.subf %49, %52 : vector<32x8x8xf32>
    %54 = math.exp %53 : vector<32x8x8xf32>
    %cst_16 = arith.constant dense<0.000000e+00> : vector<32x8xf32>
    %55 = vector.multi_reduction <add>, %54, %cst_16 [2] : vector<32x8x8xf32> to vector<32x8xf32>
    %56 = vector.shape_cast %55 : vector<32x8xf32> to vector<32x8x1xf32>
    %57 = tpu.reciprocal %56 {approx = true} : vector<32x8x1xf32> -> vector<32x8x1xf32>
    %58 = vector.broadcast %57 : vector<32x8x1xf32> to vector<32x8x8xf32>
    %59 = arith.mulf %54, %58 : vector<32x8x8xf32>
    %60 = arith.truncf %59 : vector<32x8x8xf32> to vector<32x8x8xbf16>
    "tpu.trace_start"() <{level = 10 : i32, message = "bqk,bkd->bqd"}> : () -> ()
    %cst_17 = arith.constant dense<0.000000e+00> : vector<32x8x8xf32>
    %61 = tpu.matmul %60, %48, %cst_17 {dimension_numbers = #tpu.dot_dimension_numbers<[2], [1], [1], [2], [0, 0, 0, 1, 1, 2], [0], [0]>} : vector<32x8x8xbf16>, vector<32x8x8xbf16>, vector<32x8x8xf32> -> vector<32x8x8xf32>
    "tpu.trace_stop"() : () -> ()
    %62 = vector.extract_strided_slice %61 {offsets = [0, 0, 0], sizes = [8, 8, 8], strides = [1, 1, 1]} : vector<32x8x8xf32> to vector<8x8x8xf32>
    %63 = vector.shape_cast %62 : vector<8x8x8xf32> to vector<64x8xf32>
    %64 = vector.extract_strided_slice %61 {offsets = [8, 0, 0], sizes = [8, 8, 8], strides = [1, 1, 1]} : vector<32x8x8xf32> to vector<8x8x8xf32>
    %65 = vector.shape_cast %64 : vector<8x8x8xf32> to vector<64x8xf32>
    %66 = vector.extract_strided_slice %61 {offsets = [16, 0, 0], sizes = [8, 8, 8], strides = [1, 1, 1]} : vector<32x8x8xf32> to vector<8x8x8xf32>
    %67 = vector.shape_cast %66 : vector<8x8x8xf32> to vector<64x8xf32>
    %68 = vector.extract_strided_slice %61 {offsets = [24, 0, 0], sizes = [8, 8, 8], strides = [1, 1, 1]} : vector<32x8x8xf32> to vector<8x8x8xf32>
    %69 = vector.shape_cast %68 : vector<8x8x8xf32> to vector<64x8xf32>
    %70 = tpu.concatenate %63, %65, %67, %69 in 1 : vector<64x8xf32>, vector<64x8xf32>, vector<64x8xf32>, vector<64x8xf32> -> vector<64x32xf32>
    %71 = arith.truncf %70 : vector<64x32xf32> to vector<64x32xbf16>
    %c0_18 = arith.constant 0 : index
    %c0_19 = arith.constant 0 : index
    %72 = vector.load %arg7[%c0_18, %c0_19] : memref<32x32xbf16, #tpu.memory_space<vmem>>, vector<32x32xbf16>
    %cst_20 = arith.constant dense<0.000000e+00> : vector<64x32xf32>
    %73 = tpu.matmul %71, %72, %cst_20 {dimension_numbers = #tpu.dot_dimension_numbers<[1], [0], [0], [1], [0, 0, 1, 1], [], []>} : vector<64x32xbf16>, vector<32x32xbf16>, vector<64x32xf32> -> vector<64x32xf32>
    %c0_21 = arith.constant 0 : index
    %c0_22 = arith.constant 0 : index
    %74 = vector.load %arg8[%c0_21, %c0_22] : memref<1x32xf32, #tpu.memory_space<vmem>>, vector<1x32xf32>
    %75 = vector.broadcast %74 : vector<1x32xf32> to vector<64x32xf32>
    %76 = arith.addf %73, %75 : vector<64x32xf32>
    %77 = arith.addf %3, %76 : vector<64x32xf32>
    %cst_23 = arith.constant dense<0.000000e+00> : vector<64xf32>
    %78 = vector.multi_reduction <add>, %77, %cst_23 [1] : vector<64x32xf32> to vector<64xf32>
    %79 = vector.shape_cast %78 : vector<64xf32> to vector<64x1xf32>
    %cst_24 = arith.constant 3.200000e+01 : f32
    %80 = vector.broadcast %cst_24 : f32 to vector<64x1xf32>
    %81 = arith.divf %79, %80 : vector<64x1xf32>
    %82 = vector.broadcast %81 : vector<64x1xf32> to vector<64x32xf32>
    %83 = arith.subf %77, %82 : vector<64x32xf32>
    %84 = arith.mulf %83, %83 : vector<64x32xf32>
    %cst_25 = arith.constant dense<0.000000e+00> : vector<64xf32>
    %85 = vector.multi_reduction <add>, %84, %cst_25 [1] : vector<64x32xf32> to vector<64xf32>
    %86 = vector.shape_cast %85 : vector<64xf32> to vector<64x1xf32>
    %cst_26 = arith.constant 3.200000e+01 : f32
    %87 = vector.broadcast %cst_26 : f32 to vector<64x1xf32>
    %88 = arith.divf %86, %87 : vector<64x1xf32>
    %cst_27 = arith.constant 9.99999974E-6 : f32
    %89 = vector.broadcast %cst_27 : f32 to vector<64x1xf32>
    %90 = arith.addf %88, %89 : vector<64x1xf32>
    %91 = math.rsqrt %90 : vector<64x1xf32>
    %92 = vector.broadcast %91 : vector<64x1xf32> to vector<64x32xf32>
    %93 = arith.mulf %83, %92 : vector<64x32xf32>
    %c0_28 = arith.constant 0 : index
    %c0_29 = arith.constant 0 : index
    %94 = vector.load %arg9[%c0_28, %c0_29] : memref<1x32xf32, #tpu.memory_space<vmem>>, vector<1x32xf32>
    %95 = vector.broadcast %94 : vector<1x32xf32> to vector<64x32xf32>
    %96 = arith.mulf %93, %95 : vector<64x32xf32>
    %c0_30 = arith.constant 0 : index
    %c0_31 = arith.constant 0 : index
    %97 = vector.load %arg10[%c0_30, %c0_31] : memref<1x32xf32, #tpu.memory_space<vmem>>, vector<1x32xf32>
    %98 = vector.broadcast %97 : vector<1x32xf32> to vector<64x32xf32>
    %99 = arith.addf %96, %98 : vector<64x32xf32>
    %100 = vector.shape_cast %99 : vector<64x32xf32> to vector<8x8x32xf32>
    %c0_32 = arith.constant 0 : index
    %c0_33 = arith.constant 0 : index
    %c0_34 = arith.constant 0 : index
    %101 = vector.load %arg11[%c0_32, %c0_33, %c0_34] : memref<8x8x32xf32, #tpu.memory_space<vmem>>, vector<8x8x32xf32>
    tpu.vector_store %arg11[%c0_32, %c0_33, %c0_34], %100 {strides = array<i32>} : memref<8x8x32xf32, #tpu.memory_space<vmem>>, vector<8x8x32xf32>,
    return
  }
  func.func @transform_0(%arg0: i32) -> (i32, i32, i32) {
    %c0_i32 = arith.constant 0 : i32
    %c0_i32_0 = arith.constant 0 : i32
    %c0_i32_1 = arith.constant 0 : i32
    return %arg0, %c0_i32, %c0_i32_0 : i32, i32, i32
  }
  func.func @transform_1(%arg0: i32) -> (i32, i32, i32) {
    %c0_i32 = arith.constant 0 : i32
    %c0_i32_0 = arith.constant 0 : i32
    %c0_i32_1 = arith.constant 0 : i32
    return %arg0, %c0_i32, %c0_i32_0 : i32, i32, i32
  }
  func.func @transform_2(%arg0: i32) -> (i32, i32) {
    %c0_i32 = arith.constant 0 : i32
    %c0_i32_0 = arith.constant 0 : i32
    %c0_i32_1 = arith.constant 0 : i32
    return %c0_i32, %c0_i32_0 : i32, i32
  }
  func.func @transform_3(%arg0: i32) -> (i32, i32) {
    %c0_i32 = arith.constant 0 : i32
    %c0_i32_0 = arith.constant 0 : i32
    %c0_i32_1 = arith.constant 0 : i32
    return %c0_i32, %c0_i32_0 : i32, i32
  }
  func.func @transform_4(%arg0: i32) -> (i32, i32) {
    %c0_i32 = arith.constant 0 : i32
    %c0_i32_0 = arith.constant 0 : i32
    %c0_i32_1 = arith.constant 0 : i32
    return %c0_i32, %c0_i32_0 : i32, i32
  }
  func.func @transform_5(%arg0: i32) -> (i32, i32) {
    %c0_i32 = arith.constant 0 : i32
    %c0_i32_0 = arith.constant 0 : i32
    %c0_i32_1 = arith.constant 0 : i32
    return %c0_i32, %c0_i32_0 : i32, i32
  }
  func.func @transform_6(%arg0: i32) -> (i32, i32) {
    %c0_i32 = arith.constant 0 : i32
    %c0_i32_0 = arith.constant 0 : i32
    %c0_i32_1 = arith.constant 0 : i32
    return %c0_i32, %c0_i32_0 : i32, i32
  }
  func.func @transform_7(%arg0: i32) -> (i32, i32) {
    %c0_i32 = arith.constant 0 : i32
    %c0_i32_0 = arith.constant 0 : i32
    %c0_i32_1 = arith.constant 0 : i32
    return %c0_i32, %c0_i32_0 : i32, i32
  }
  func.func @transform_8(%arg0: i32) -> (i32, i32) {
    %c0_i32 = arith.constant 0 : i32
    %c0_i32_0 = arith.constant 0 : i32
    %c0_i32_1 = arith.constant 0 : i32
    return %c0_i32, %c0_i32_0 : i32, i32
  }
  func.func @transform_9(%arg0: i32) -> (i32, i32) {
    %c0_i32 = arith.constant 0 : i32
    %c0_i32_0 = arith.constant 0 : i32
    %c0_i32_1 = arith.constant 0 : i32
    return %c0_i32, %c0_i32_0 : i32, i32
  }
  func.func @transform_10(%arg0: i32) -> (i32, i32, i32) {
    %c0_i32 = arith.constant 0 : i32
    %c0_i32_0 = arith.constant 0 : i32
    %c0_i32_1 = arith.constant 0 : i32
    return %arg0, %c0_i32, %c0_i32_0 : i32, i32, i32
  }
}

module attributes {stable_mosaic.version = 11 : i64} {
  func.func @_self_attn_kernel(%arg0: i32, %arg1: memref<8x8x32xf32, #tpu.memory_space<vmem>>, %arg2: memref<8x8x32xf32, #tpu.memory_space<vmem>>, %arg3: memref<32x64xbf16, #tpu.memory_space<vmem>>, %arg4: memref<1x64xf32, #tpu.memory_space<vmem>>, %arg5: memref<32x32xbf16, #tpu.memory_space<vmem>>, %arg6: memref<1x32xf32, #tpu.memory_space<vmem>>, %arg7: memref<32x32xbf16, #tpu.memory_space<vmem>>, %arg8: memref<1x32xf32, #tpu.memory_space<vmem>>, %arg9: memref<1x32xf32, #tpu.memory_space<vmem>>, %arg10: memref<1x32xf32, #tpu.memory_space<vmem>>, %arg11: memref<8x8x32xf32, #tpu.memory_space<vmem>>) attributes {dimension_semantics = [#tpu.dimension_semantics<parallel>], iteration_bounds = array<i64: 2>, scalar_prefetch = 0 : i64, scratch_operands = 0 : i64, tpu.core_type = #tpu.core_type<tc>, window_params = [{transform_indices = @transform_0, window_bounds = array<i64: 8, 8, 32>}, {transform_indices = @transform_1, window_bounds = array<i64: 8, 8, 32>}, {pipeline_mode = #tpu.pipeline_mode<synchronous>, transform_indices = @transform_2, window_bounds = array<i64: 32, 64>}, {pipeline_mode = #tpu.pipeline_mode<synchronous>, transform_indices = @transform_3, window_bounds = array<i64: 1, 64>}, {pipeline_mode = #tpu.pipeline_mode<synchronous>, transform_indices = @transform_4, window_bounds = array<i64: 32, 32>}, {pipeline_mode = #tpu.pipeline_mode<synchronous>, transform_indices = @transform_5, window_bounds = array<i64: 1, 32>}, {pipeline_mode = #tpu.pipeline_mode<synchronous>, transform_indices = @transform_6, window_bounds = array<i64: 32, 32>}, {pipeline_mode = #tpu.pipeline_mode<synchronous>, transform_indices = @transform_7, window_bounds = array<i64: 1, 32>}, {pipeline_mode = #tpu.pipeline_mode<synchronous>, transform_indices = @transform_8, window_bounds = array<i64: 1, 32>}, {pipeline_mode = #tpu.pipeline_mode<synchronous>, transform_indices = @transform_9, window_bounds = array<i64: 1, 32>}, {transform_indices = @transform_10, window_bounds = array<i64: 8, 8, 32>}]} {
    %c0 = arith.constant 0 : index
    %c0_0 = arith.constant 0 : index
    %c0_1 = arith.constant 0 : index
    %0 = vector.load %arg1[%c0, %c0_0, %c0_1] : memref<8x8x32xf32, #tpu.memory_space<vmem>>, vector<8x8x32xf32>
    %c0_2 = arith.constant 0 : index
    %c0_3 = arith.constant 0 : index
    %c0_4 = arith.constant 0 : index
    %1 = vector.load %arg2[%c0_2, %c0_3, %c0_4] : memref<8x8x32xf32, #tpu.memory_space<vmem>>, vector<8x8x32xf32>
    %2 = arith.addf %0, %1 : vector<8x8x32xf32>
    %3 = vector.shape_cast %0 : vector<8x8x32xf32> to vector<64x32xf32>
    %4 = vector.shape_cast %2 : vector<8x8x32xf32> to vector<64x32xf32>
    %5 = arith.truncf %4 : vector<64x32xf32> to vector<64x32xbf16>
    %c0_5 = arith.constant 0 : index
    %c0_6 = arith.constant 0 : index
    %6 = vector.load %arg3[%c0_5, %c0_6] : memref<32x64xbf16, #tpu.memory_space<vmem>>, vector<32x64xbf16>
    %cst = arith.constant dense<0.000000e+00> : vector<64x64xf32>
    %7 = tpu.matmul %5, %6, %cst {dimension_numbers = #tpu.dot_dimension_numbers<[1], [0], [0], [1], [0, 0, 1, 1], [], []>} : vector<64x32xbf16>, vector<32x64xbf16>, vector<64x64xf32> -> vector<64x64xf32>
    %c0_7 = arith.constant 0 : index
    %c0_8 = arith.constant 0 : index
    %8 = vector.load %arg4[%c0_7, %c0_8] : memref<1x64xf32, #tpu.memory_space<vmem>>, vector<1x64xf32>
    %9 = vector.broadcast %8 : vector<1x64xf32> to vector<64x64xf32>
    %10 = arith.addf %7, %9 : vector<64x64xf32>
    %11 = arith.truncf %3 : vector<64x32xf32> to vector<64x32xbf16>
    %c0_9 = arith.constant 0 : index
    %c0_10 = arith.constant 0 : index
    %12 = vector.load %arg5[%c0_9, %c0_10] : memref<32x32xbf16, #tpu.memory_space<vmem>>, vector<32x32xbf16>
    %cst_11 = arith.constant dense<0.000000e+00> : vector<64x32xf32>
    %13 = tpu.matmul %11, %12, %cst_11 {dimension_numbers = #tpu.dot_dimension_numbers<[1], [0], [0], [1], [0, 0, 1, 1], [], []>} : vector<64x32xbf16>, vector<32x32xbf16>, vector<64x32xf32> -> vector<64x32xf32>
    %c0_12 = arith.constant 0 : index
    %c0_13 = arith.constant 0 : index
    %14 = vector.load %arg6[%c0_12, %c0_13] : memref<1x32xf32, #tpu.memory_space<vmem>>, vector<1x32xf32>
    %15 = vector.broadcast %14 : vector<1x32xf32> to vector<64x32xf32>
    %16 = arith.addf %13, %15 : vector<64x32xf32>
    %17 = vector.extract_strided_slice %10 {offsets = [0, 0], sizes = [64, 32], strides = [1, 1]} : vector<64x64xf32> to vector<64x32xf32>
    %18 = vector.extract_strided_slice %10 {offsets = [0, 32], sizes = [64, 32], strides = [1, 1]} : vector<64x64xf32> to vector<64x32xf32>
    %19 = vector.extract_strided_slice %17 {offsets = [0, 0], sizes = [64, 8], strides = [1, 1]} : vector<64x32xf32> to vector<64x8xf32>
    %20 = vector.shape_cast %19 : vector<64x8xf32> to vector<8x8x8xf32>
    %21 = vector.extract_strided_slice %17 {offsets = [0, 8], sizes = [64, 8], strides = [1, 1]} : vector<64x32xf32> to vector<64x8xf32>
    %22 = vector.shape_cast %21 : vector<64x8xf32> to vector<8x8x8xf32>
    %23 = vector.extract_strided_slice %17 {offsets = [0, 16], sizes = [64, 8], strides = [1, 1]} : vector<64x32xf32> to vector<64x8xf32>
    %24 = vector.shape_cast %23 : vector<64x8xf32> to vector<8x8x8xf32>
    %25 = vector.extract_strided_slice %17 {offsets = [0, 24], sizes = [64, 8], strides = [1, 1]} : vector<64x32xf32> to vector<64x8xf32>
    %26 = vector.shape_cast %25 : vector<64x8xf32> to vector<8x8x8xf32>
    %27 = tpu.concatenate %20, %22, %24, %26 in 0 : vector<8x8x8xf32>, vector<8x8x8xf32>, vector<8x8x8xf32>, vector<8x8x8xf32> -> vector<32x8x8xf32>
    %28 = arith.truncf %27 : vector<32x8x8xf32> to vector<32x8x8xbf16>
    %29 = vector.extract_strided_slice %18 {offsets = [0, 0], sizes = [64, 8], strides = [1, 1]} : vector<64x32xf32> to vector<64x8xf32>
    %30 = vector.shape_cast %29 : vector<64x8xf32> to vector<8x8x8xf32>
    %31 = vector.extract_strided_slice %18 {offsets = [0, 8], sizes = [64, 8], strides = [1, 1]} : vector<64x32xf32> to vector<64x8xf32>
    %32 = vector.shape_cast %31 : vector<64x8xf32> to vector<8x8x8xf32>
    %33 = vector.extract_strided_slice %18 {offsets = [0, 16], sizes = [64, 8], strides = [1, 1]} : vector<64x32xf32> to vector<64x8xf32>
    %34 = vector.shape_cast %33 : vector<64x8xf32> to vector<8x8x8xf32>
    %35 = vector.extract_strided_slice %18 {offsets = [0, 24], sizes = [64, 8], strides = [1, 1]} : vector<64x32xf32> to vector<64x8xf32>
    %36 = vector.shape_cast %35 : vector<64x8xf32> to vector<8x8x8xf32>
    %37 = tpu.concatenate %30, %32, %34, %36 in 0 : vector<8x8x8xf32>, vector<8x8x8xf32>, vector<8x8x8xf32>, vector<8x8x8xf32> -> vector<32x8x8xf32>
    %38 = arith.truncf %37 : vector<32x8x8xf32> to vector<32x8x8xbf16>
    %39 = vector.extract_strided_slice %16 {offsets = [0, 0], sizes = [64, 8], strides = [1, 1]} : vector<64x32xf32> to vector<64x8xf32>
    %40 = vector.shape_cast %39 : vector<64x8xf32> to vector<8x8x8xf32>
    %41 = vector.extract_strided_slice %16 {offsets = [0, 8], sizes = [64, 8], strides = [1, 1]} : vector<64x32xf32> to vector<64x8xf32>
    %42 = vector.shape_cast %41 : vector<64x8xf32> to vector<8x8x8xf32>
    %43 = vector.extract_strided_slice %16 {offsets = [0, 16], sizes = [64, 8], strides = [1, 1]} : vector<64x32xf32> to vector<64x8xf32>
    %44 = vector.shape_cast %43 : vector<64x8xf32> to vector<8x8x8xf32>
    %45 = vector.extract_strided_slice %16 {offsets = [0, 24], sizes = [64, 8], strides = [1, 1]} : vector<64x32xf32> to vector<64x8xf32>
    %46 = vector.shape_cast %45 : vector<64x8xf32> to vector<8x8x8xf32>
    %47 = tpu.concatenate %40, %42, %44, %46 in 0 : vector<8x8x8xf32>, vector<8x8x8xf32>, vector<8x8x8xf32>, vector<8x8x8xf32> -> vector<32x8x8xf32>
    %48 = arith.truncf %47 : vector<32x8x8xf32> to vector<32x8x8xbf16>
    "tpu.trace_start"() <{level = 10 : i32, message = "bqd,bkd->bqk"}> : () -> ()
    %cst_14 = arith.constant dense<0.000000e+00> : vector<32x8x8xf32>
    %49 = tpu.matmul %28, %38, %cst_14 {dimension_numbers = #tpu.dot_dimension_numbers<[2], [2], [1], [1], [0, 0, 0, 1, 1, 1], [0], [0]>} : vector<32x8x8xbf16>, vector<32x8x8xbf16>, vector<32x8x8xf32> -> vector<32x8x8xf32>
    "tpu.trace_stop"() : () -> ()
    %cst_15 = arith.constant dense<0xFF800000> : vector<32x8xf32>
    %50 = vector.multi_reduction <maximumf>, %49, %cst_15 [2] : vector<32x8x8xf32> to vector<32x8xf32>
    %51 = vector.shape_cast %50 : vector<32x8xf32> to vector<32x8x1xf32>
    %52 = vector.broadcast %51 : vector<32x8x1xf32> to vector<32x8x8xf32>
    %53 = arith.subf %49, %52 : vector<32x8x8xf32>
    %54 = math.exp %53 : vector<32x8x8xf32>
    %cst_16 = arith.constant dense<0.000000e+00> : vector<32x8xf32>
    %55 = vector.multi_reduction <add>, %54, %cst_16 [2] : vector<32x8x8xf32> to vector<32x8xf32>
    %56 = vector.shape_cast %55 : vector<32x8xf32> to vector<32x8x1xf32>
    %57 = tpu.reciprocal %56 {approx = true} : vector<32x8x1xf32> -> vector<32x8x1xf32>
    %58 = vector.broadcast %57 : vector<32x8x1xf32> to vector<32x8x8xf32>
    %59 = arith.mulf %54, %58 : vector<32x8x8xf32>
    %60 = arith.truncf %59 : vector<32x8x8xf32> to vector<32x8x8xbf16>
    "tpu.trace_start"() <{level = 10 : i32, message = "bqk,bkd->bqd"}> : () -> ()
    %cst_17 = arith.constant dense<0.000000e+00> : vector<32x8x8xf32>
    %61 = tpu.matmul %60, %48, %cst_17 {dimension_numbers = #tpu.dot_dimension_numbers<[2], [1], [1], [2], [0, 0, 0, 1, 1, 2], [0], [0]>} : vector<32x8x8xbf16>, vector<32x8x8xbf16>, vector<32x8x8xf32> -> vector<32x8x8xf32>
    "tpu.trace_stop"() : () -> ()
    %62 = vector.extract_strided_slice %61 {offsets = [0, 0, 0], sizes = [8, 8, 8], strides = [1, 1, 1]} : vector<32x8x8xf32> to vector<8x8x8xf32>
    %63 = vector.shape_cast %62 : vector<8x8x8xf32> to vector<64x8xf32>
    %64 = vector.extract_strided_slice %61 {offsets = [8, 0, 0], sizes = [8, 8, 8], strides = [1, 1, 1]} : vector<32x8x8xf32> to vector<8x8x8xf32>
    %65 = vector.shape_cast %64 : vector<8x8x8xf32> to vector<64x8xf32>
    %66 = vector.extract_strided_slice %61 {offsets = [16, 0, 0], sizes = [8, 8, 8], strides = [1, 1, 1]} : vector<32x8x8xf32> to vector<8x8x8xf32>
    %67 = vector.shape_cast %66 : vector<8x8x8xf32> to vector<64x8xf32>
    %68 = vector.extract_strided_slice %61 {offsets = [24, 0, 0], sizes = [8, 8, 8], strides = [1, 1, 1]} : vector<32x8x8xf32> to vector<8x8x8xf32>
    %69 = vector.shape_cast %68 : vector<8x8x8xf32> to vector<64x8xf32>
    %70 = tpu.concatenate %63, %65, %67, %69 in 1 : vector<64x8xf32>, vector<64x8xf32>, vector<64x8xf32>, vector<64x8xf32> -> vector<64x32xf32>
    %71 = arith.truncf %70 : vector<64x32xf32> to vector<64x32xbf16>
    %c0_18 = arith.constant 0 : index
    %c0_19 = arith.constant 0 : index
    %72 = vector.load %arg7[%c0_18, %c0_19] : memref<32x32xbf16, #tpu.memory_space<vmem>>, vector<32x32xbf16>
    %cst_20 = arith.constant dense<0.000000e+00> : vector<64x32xf32>
    %73 = tpu.matmul %71, %72, %cst_20 {dimension_numbers = #tpu.dot_dimension_numbers<[1], [0], [0], [1], [0, 0, 1, 1], [], []>} : vector<64x32xbf16>, vector<32x32xbf16>, vector<64x32xf32> -> vector<64x32xf32>
    %c0_21 = arith.constant 0 : index
    %c0_22 = arith.constant 0 : index
    %74 = vector.load %arg8[%c0_21, %c0_22] : memref<1x32xf32, #tpu.memory_space<vmem>>, vector<1x32xf32>
    %75 = vector.broadcast %74 : vector<1x32xf32> to vector<64x32xf32>
    %76 = arith.addf %73, %75 : vector<64x32xf32>
    %77 = arith.addf %3, %76 : vector<64x32xf32>
    %cst_23 = arith.constant dense<0.000000e+00> : vector<64xf32>
    %78 = vector.multi_reduction <add>, %77, %cst_23 [1] : vector<64x32xf32> to vector<64xf32>
    %79 = vector.shape_cast %78 : vector<64xf32> to vector<64x1xf32>
    %cst_24 = arith.constant 3.200000e+01 : f32
    %80 = vector.broadcast %cst_24 : f32 to vector<64x1xf32>
    %81 = arith.divf %79, %80 : vector<64x1xf32>
    %82 = vector.broadcast %81 : vector<64x1xf32> to vector<64x32xf32>
    %83 = arith.subf %77, %82 : vector<64x32xf32>
    %84 = arith.mulf %83, %83 : vector<64x32xf32>
    %cst_25 = arith.constant dense<0.000000e+00> : vector<64xf32>
    %85 = vector.multi_reduction <add>, %84, %cst_25 [1] : vector<64x32xf32> to vector<64xf32>
    %86 = vector.shape_cast %85 : vector<64xf32> to vector<64x1xf32>
    %cst_26 = arith.constant 3.200000e+01 : f32
    %87 = vector.broadcast %cst_26 : f32 to vector<64x1xf32>
    %88 = arith.divf %86, %87 : vector<64x1xf32>
    %cst_27 = arith.constant 9.99999974E-6 : f32
    %89 = vector.broadcast %cst_27 : f32 to vector<64x1xf32>
    %90 = arith.addf %88, %89 : vector<64x1xf32>
    %91 = math.rsqrt %90 : vector<64x1xf32>
    %92 = vector.broadcast %91 : vector<64x1xf32> to vector<64x32xf32>
    %93 = arith.mulf %83, %92 : vector<64x32xf32>
    %c0_28 = arith.constant 0 : index
    %c0_29 = arith.constant 0 : index
    %94 = vector.load %arg9[%c0_28, %c0_29] : memref<1x32xf32, #tpu.memory_space<vmem>>, vector<1x32xf32>
    %95 = vector.broadcast %94 : vector<1x32xf32> to vector<64x32xf32>
    %96 = arith.mulf %93, %95 : vector<64x32xf32>
    %c0_30 = arith.constant 0 : index
    %c0_31 = arith.constant 0 : index
    %97 = vector.load %arg10[%c0_30, %c0_31] : memref<1x32xf32, #tpu.memory_space<vmem>>, vector<1x32xf32>
    %98 = vector.broadcast %97 : vector<1x32xf32> to vector<64x32xf32>
    %99 = arith.addf %96, %98 : vector<64x32xf32>
    %100 = vector.shape_cast %99 : vector<64x32xf32> to vector<8x8x32xf32>
    %c0_32 = arith.constant 0 : index
    %c0_33 = arith.constant 0 : index
    %c0_34 = arith.constant 0 : index
    %101 = vector.load %arg11[%c0_32, %c0_33, %c0_34] : memref<8x8x32xf32, #tpu.memory_space<vmem>>, vector<8x8x32xf32>
    tpu.vector_store %arg11[%c0_32, %c0_33, %c0_34], %100 {strides = array<i32>} : memref<8x8x32xf32, #tpu.memory_space<vmem>>, vector<8x8x32xf32>,
    return
  }
  func.func @transform_0(%arg0: i32) -> (i32, i32, i32) {
    %c0_i32 = arith.constant 0 : i32
    %c0_i32_0 = arith.constant 0 : i32
    %c0_i32_1 = arith.constant 0 : i32
    return %arg0, %c0_i32, %c0_i32_0 : i32, i32, i32
  }
  func.func @transform_1(%arg0: i32) -> (i32, i32, i32) {
    %c0_i32 = arith.constant 0 : i32
    %c0_i32_0 = arith.constant 0 : i32
    %c0_i32_1 = arith.constant 0 : i32
    return %arg0, %c0_i32, %c0_i32_0 : i32, i32, i32
  }
  func.func @transform_2(%arg0: i32) -> (i32, i32) {
    %c0_i32 = arith.constant 0 : i32
    %c0_i32_0 = arith.constant 0 : i32
    %c0_i32_1 = arith.constant 0 : i32
    return %c0_i32, %c0_i32_0 : i32, i32
  }
  func.func @transform_3(%arg0: i32) -> (i32, i32) {
    %c0_i32 = arith.constant 0 : i32
    %c0_i32_0 = arith.constant 0 : i32
    %c0_i32_1 = arith.constant 0 : i32
    return %c0_i32, %c0_i32_0 : i32, i32
  }
  func.func @transform_4(%arg0: i32) -> (i32, i32) {
    %c0_i32 = arith.constant 0 : i32
    %c0_i32_0 = arith.constant 0 : i32
    %c0_i32_1 = arith.constant 0 : i32
    return %c0_i32, %c0_i32_0 : i32, i32
  }
  func.func @transform_5(%arg0: i32) -> (i32, i32) {
    %c0_i32 = arith.constant 0 : i32
    %c0_i32_0 = arith.constant 0 : i32
    %c0_i32_1 = arith.constant 0 : i32
    return %c0_i32, %c0_i32_0 : i32, i32
  }
  func.func @transform_6(%arg0: i32) -> (i32, i32) {
    %c0_i32 = arith.constant 0 : i32
    %c0_i32_0 = arith.constant 0 : i32
    %c0_i32_1 = arith.constant 0 : i32
    return %c0_i32, %c0_i32_0 : i32, i32
  }
  func.func @transform_7(%arg0: i32) -> (i32, i32) {
    %c0_i32 = arith.constant 0 : i32
    %c0_i32_0 = arith.constant 0 : i32
    %c0_i32_1 = arith.constant 0 : i32
    return %c0_i32, %c0_i32_0 : i32, i32
  }
  func.func @transform_8(%arg0: i32) -> (i32, i32) {
    %c0_i32 = arith.constant 0 : i32
    %c0_i32_0 = arith.constant 0 : i32
    %c0_i32_1 = arith.constant 0 : i32
    return %c0_i32, %c0_i32_0 : i32, i32
  }
  func.func @transform_9(%arg0: i32) -> (i32, i32) {
    %c0_i32 = arith.constant 0 : i32
    %c0_i32_0 = arith.constant 0 : i32
    %c0_i32_1 = arith.constant 0 : i32
    return %c0_i32, %c0_i32_0 : i32, i32
  }
  func.func @transform_10(%arg0: i32) -> (i32, i32, i32) {
    %c0_i32 = arith.constant 0 : i32
    %c0_i32_0 = arith.constant 0 : i32
    %c0_i32_1 = arith.constant 0 : i32
    return %arg0, %c0_i32, %c0_i32_0 : i32, i32, i32
  }
}

</mosaic_0001>

<bundles_post_ra>
// kernel: tpu_custom_call.1
= control target key start
LH: loop header
LB: loop body
LE: loop exit
PB: predicated region body
PF: predicated region fallthrough
CT: control target
= control target key end

     0   :  { %s7650_s0 = inlined_call_operand.hbm [shape: f32[16,8,32], index: 0, kind: input, shape index: {}]   ;;  %s7651_s1 = inlined_call_operand.hbm [shape: f32[16,8,32], index: 1, kind: input, shape index: {}]   ;;  %s7652_s2 = inlined_call_operand.hbm [shape: bf16[32,64], index: 2, kind: input, shape index: {}]   ;;  %s7653_s3 = inlined_call_operand.vmem [shape: f32[1,64], index: 3, kind: input, shape index: {}]   ;;  %s7654_s4 = inlined_call_operand.hbm [shape: bf16[32,32], index: 4, kind: input, shape index: {}]   ;;  %s7655_s5 = inlined_call_operand.vmem [shape: f32[1,32], index: 5, kind: input, shape index: {}]   ;;  %s7656_s6 = inlined_call_operand.hbm [shape: bf16[32,32], index: 6, kind: input, shape index: {}]   ;;  %s7657_s7 = inlined_call_operand.vmem [shape: f32[1,32], index: 7, kind: input, shape index: {}]   ;;  %s7658_s8 = inlined_call_operand.vmem [shape: f32[1,32], index: 8, kind: input, shape index: {}]   ;;  %s7659_s9 = inlined_call_operand.vmem [shape: f32[1,32], index: 9, kind: input, shape index: {}]   ;;  %s7660_s10 = inlined_call_operand.hbm [shape: f32[16,8,32], index: 10, kind: output, shape index: {}]  }
   0x1   :  { %7668 = sst [smem:[#allocation20_spill]] %s7650_s0 }
   0x2   :  { %7669 = sst [smem:[#allocation21_spill]] %s7652_s2 }
   0x3   :  { %7670 = sst [smem:[#allocation22_spill]] %s7654_s4 }
   0x4   :  { %7671 = sst [smem:[#allocation23_spill]] %s7656_s6 }
   0x5   :  { %15 = vsyncpa [#allocation3], 0 }
   0x6   :  { %17 = vsyncpa [#allocation3 + $0x1], 0 }
   0x7   :  { %18 = vsyncpa [#allocation6], 0 }
   0x8   :  { %20 = vsyncpa [#allocation6 + $0x1], 0 }
   0x9   :  { %21 = vsyncpa [#allocation9], 0 }
   0xa   :  { %22 = vsyncpa [#allocation4], 0 }
   0xb   :  { %24 = vsyncpa [#allocation4 + $0x1], 0  ;;  %s6268_s13 = smov 0   ;;  %s6270_s14 = smov 0  }
   0xc   :  { %s6272_s15 = smov 0   ;;  %s6274_s16 = smov 0  }
   0xd LB: > { %7672 = sst [smem:[#allocation17_spill]] %s6187_s15  ;;  %s6289_s17 = sadd.s32 4294967295, %s6191_s16   ;;  %s6191_s16 = sphi %s6274_s16, %s7695_s16   ;;  %s6187_s15 = sphi %s6272_s15, %s7697_s15   ;;  %s6183_s14 = sphi %s6270_s14, %s7699_s14   ;;  %s6179_s13 = sphi %s6268_s13, %s7698_s13  }
   0xe   : > { %s4863_s18 = sadd.s32 4294967294, %s6191_s16   ;;  %p50_p0 = scmp.ne.s32.totalorder %s6183_s14, %s6179_s13 }
   0xf   : > { %p7661_p1 = scmp.eq.s32.totalorder %s6289_s17, 0  ;;  %p274_p3 = scmp.eq.s32.totalorder %s4863_s18, 1 }
  0x10   : > { %p4864_p5 = scmp.ge.s32.totalorder %s6191_s16, 1  ;;  %p281_p7 = scmp.lt.s32.totalorder %s6191_s16, 3 }
  0x11   : > { %p6298_p4 = por %p7661_p1, %p50_p0  ;;  %p6303_p6 = por %p274_p3, %p50_p0 }
  0x12   : > { %p6308_p8 = pnand %p4864_p5, %p281_p7  ;;  %s6193_s22 = smov [#allocation7]  }
  0x13   : > { %s7673_s19 = scalar_select %p6298_p4, 1, 0 }
  0x14   : > { %s7674_s20 = scalar_select %p6303_p6, 1, 0 }
  0x15   : > { %s293_s23 = sshll.u32 %s6193_s22, 4  ;;  %p5565_p9 = pneg %p6308_p8  ;;  %s294_s23 = int_to_ptr.vmem [resolvable:$true] %s293_s23 }
  0x16   : > { %s6194_s25 = smov [#allocation8]   ;;  %s6195_s27 = smov [#allocation10]  }
  0x17   : > { %p6317_p11 = pnand %p5565_p9, %p7661_p1  ;;  %s309_s26 = sshll.u32 %s6194_s25, 4  ;;  %s310_s26 = int_to_ptr.vmem [resolvable:$true] %s309_s26 }
  0x18   : > { %s325_s28 = sshll.u32 %s6195_s27, 4  ;;  %s5992_s29 = scalar_lea.vmem %s294_s23, 256  ;;  %s326_s28 = int_to_ptr.vmem [resolvable:$true] %s325_s28 }
  0x19   : > { %p5983_p12 = pneg %p6317_p11  ;;  %p5993_p13 = scmp.ne.s32.totalorder %s294_s23, %s5992_s29 }
  0x1a   : > { %p6000_p5 = scmp.lt.s32.totalorder %s294_s23, %s294_s23  ;;  %p6001_p7 = scmp.lt.s32.totalorder %s5992_s29, %s5992_s29 }
  0x1b   : > { %p5995_p0 = pnand %p5993_p13, %p5983_p12 }
  0x1c   : > { %p6002_p9 = por %p6001_p7, %p6000_p5 }
  0x1d   : > { %p5996_p3 = pneg %p5995_p0 }
  0x1f   : > { %p6003_p10 = pnand %p6002_p9, %p5996_p3 }
  0x21   : > { %6006 = shalt.err (!%p6003_p10)
}
  0x22   : > { %s6196_s30 = smov 64   ;;  %s6197_s11 = smov 4  }
  0x23   : > { %s7677_s2 = sld [smem:[#allocation21_spill]]  ;;  %s6018_s22 = scalar_lea.vmem %s310_s26, 256 }
  0x24   : > { %p6019_p1 = scmp.ne.s32.totalorder %s310_s26, %s6018_s22  ;;  %p6026_p2 = scmp.lt.s32.totalorder %s310_s26, %s310_s26 }
  0x25   : > { %p6027_p6 = scmp.lt.s32.totalorder %s6018_s22, %s6018_s22 }
  0x26   : > { %p6021_p13 = pnand %p6019_p1, %p5983_p12 }
  0x27   : > { %p6028_p5 = por %p6027_p6, %p6026_p2 }
  0x28   : > { %p6022_p0 = pneg %p6021_p13 }
  0x29   : > { %5568 = dma.hbm_to_vmem [thread:$0]  (!%p6317_p11), %s7677_s2, 256, %s294_s23, [#allocation6], %s6196_s30, %s6196_s30, %s6197_s11  }
  0x2a   : > { %p6029_p3 = pnand %p6028_p5, %p6022_p0 }
  0x2c   : > { %6032 = shalt.err (!%p6029_p3)
}
  0x2d   : > { %s7678_s4 = sld [smem:[#allocation22_spill]]  ;;  %s6044_s23 = scalar_lea.vmem %s326_s28, 256 }
  0x2e   : > { %p6045_p10 = scmp.ne.s32.totalorder %s326_s28, %s6044_s23  ;;  %p6052_p9 = scmp.lt.s32.totalorder %s326_s28, %s326_s28 }
  0x2f   : > { %p6053_p13 = scmp.lt.s32.totalorder %s6044_s23, %s6044_s23 }
  0x30   : > { %p6047_p7 = pnand %p6045_p10, %p5983_p12 }
  0x31   : > { %p6054_p4 = por %p6053_p13, %p6052_p9 }
  0x32   : > { %p6048_p1 = pneg %p6047_p7 }
  0x33   : > { %5571 = dma.hbm_to_vmem [thread:$0]  (!%p6317_p11), %s7678_s4, 256, %s310_s26, [#allocation9], %s6196_s30, %s6196_s30, %s6197_s11  }
  0x34   : > { %p6055_p2 = pnand %p6054_p4, %p6048_p1 }
  0x36   : > { %6058 = shalt.err (!%p6055_p2)
}
  0x37   : > { %s7679_s6 = sld [smem:[#allocation23_spill]]  ;;  %s6348_s26 = sadd.s32 1, %s6191_s16  }
  0x38   : > { %7680 = sst [smem:[#allocation18_spill]] %s6348_s26  ;;  %s34_s24 = ssub.s32 %s6191_s16, %s6348_s26 }
  0x39   : > { %s37_s18 = sadd.s32 1, %s6187_s15  ;;  %p35_p4 = scmp.eq.s32.totalorder %s34_s24, 0 }
  0x3a   : > { %p44_p6 = scmp.ne.s32.totalorder %s6187_s15, %s6183_s14  ;;  %p45_p12 = scmp.eq.s32.totalorder %s6191_s16, 0 }
  0x3b   : > { %p5589_p0 = scmp.lt.s32.totalorder %s6191_s16, 2  ;;  %p7682_p3 = scmp.eq.s32.totalorder %s6289_s17, 1 }
  0x3c   : > { %s6358_s22 = scalar_select %p35_p4, %s6187_s15, %s37_s18  }
  0x3d   : > { %5574 = dma.hbm_to_vmem [thread:$0]  (!%p6317_p11), %s7679_s6, 256, %s326_s28, [#allocation9], %s6196_s30, %s6196_s30, %s6197_s11  }
  0x3e   : > { %7681 = sst [smem:[#allocation19_spill]] %s6358_s22  ;;  %p46_p5 = por %p45_p12, %p44_p6 }
  0x3f   : > { %p6362_p10 = por %p7682_p3, %p44_p6  ;;  %s348_s27 = sand.u32 1, %s6187_s15  }
  0x40   : > { %s7663_s23 = sshll.u32 %s6191_s16, 10  ;;  %s6368_s28 = sshll.u32 %s348_s27, 6 }
  0x41   : > { %s7683_s25 = scalar_select %p6362_p10, 1, 0 }
  0x42   : > { %s7684_s0 = sld [smem:[#allocation20_spill]]  ;;  %s352_s12 = scalar_lea.vmem [#allocation2], %s6368_s28 }
  0x43   : > { %s359_s24 = sshll.u32 %s352_s12, 4  ;;  %p6378_p11 = pnand %p5589_p0, %p46_p5  ;;  %s6382_s24 = int_to_ptr.vmem [resolvable:$true] %s359_s24 }
  0x44   : > { %s6384_s2 = scalar_lea.sflag [#allocation3], %s348_s27 }
  0x45   : > { %p6061_p1 = pneg %p6378_p11 }
  0x48   : > { %s6375_s29 = scalar_lea.hbm %s7684_s0, %s7663_s23  ;;  %s6064_s12 = scalar_lea.hbm %s7684_s0, 2048 }
  0x49   : > { %s6059_s4 = scalar_lea.hbm %s6375_s29, 1024  ;;  %p6065_p2 = scmp.lt.s32.totalorder %s6375_s29, %s7684_s0 }
  0x4a   : > { %p6060_p7 = scmp.ne.s32.totalorder %s6375_s29, %s6059_s4  ;;  %p6066_p4 = scmp.lt.s32.totalorder %s6064_s12, %s6059_s4 }
  0x4c   : > { %p6062_p9 = pnand %p6061_p1, %p6060_p7  ;;  %p6067_p6 = por %p6066_p4, %p6065_p2 }
  0x4e   : > { %p6063_p13 = pneg %p6062_p9 }
  0x50   : > { %p6068_p12 = pnand %p6067_p6, %p6063_p13 }
  0x52   : > { %6071 = shalt.err (!%p6068_p12)
}
  0x53   : > { %s6072_s27 = scalar_lea.vmem %s6382_s24, 1024  ;;  %s6198_s30 = smov [#allocation2]  }
  0x54   : > { %p6073_p0 = scmp.ne.s32.totalorder %s6382_s24, %s6072_s27  ;;  %s6077_s11 = sshll.u32 %s6198_s30, 4  ;;  %s6078_s11 = int_to_ptr.vmem [resolvable:$false] %s6077_s11 }
  0x55   : > { %s6079_s22 = scalar_lea.vmem %s6078_s11, 2048  ;;  %p6080_p7 = scmp.lt.s32.totalorder %s6382_s24, %s6078_s11 }
  0x56   : > { %p6075_p5 = pnand %p6073_p0, %p6061_p1  ;;  %p6081_p9 = scmp.lt.s32.totalorder %s6079_s22, %s6072_s27 }
  0x58   : > { %p6076_p3 = pneg %p6075_p5  ;;  %p6082_p10 = por %p6081_p9, %p6080_p7 }
  0x5a   : > { %p6083_p2 = pnand %p6082_p10, %p6076_p3 }
  0x5c   : > { %6086 = shalt.err (!%p6083_p2)
}
  0x5d   : > { %s6199_s4 = smov 128   ;;  %s6200_s6 = smov 8  }
  0x5e   : > { %5578 = dma.hbm_to_vmem [thread:$0]  (!%p6378_p11), %s6375_s29, 1024, %s6382_s24, %s6384_s2, %s6199_s4, %s6199_s4, %s6200_s6  }
  0x5f   : > { %s7686_s23 = sshll.u32 %s6191_s16, 10  ;;  %s373_s30 = scalar_lea.vmem [#allocation5], %s6368_s28 }
  0x60   : > { %s6419_s27 = scalar_lea.hbm %s7651_s1, %s7686_s23  ;;  %s380_s11 = sshll.u32 %s373_s30, 4  ;;  %s6423_s11 = int_to_ptr.vmem [resolvable:$true] %s380_s11 }
  0x61   : > { %s369_s0 = sand.u32 1, %s6191_s16   ;;  %s6087_s26 = scalar_lea.hbm %s6419_s27, 1024 }
  0x62   : > { %s370_s15 = scalar_lea.sflag [#allocation6], %s369_s0  ;;  %p6088_p10 = scmp.ne.s32.totalorder %s6419_s27, %s6087_s26 }
  0x63   : > { %s6092_s24 = scalar_lea.hbm %s7651_s1, 2048  ;;  %p6093_p6 = scmp.lt.s32.totalorder %s6419_s27, %s7651_s1 }
  0x64   : > { %p6090_p13 = pnand %p6088_p10, %p6061_p1  ;;  %p6094_p12 = scmp.lt.s32.totalorder %s6092_s24, %s6087_s26 }
  0x66   : > { %p6091_p4 = pneg %p6090_p13  ;;  %p6095_p0 = por %p6094_p12, %p6093_p6 }
  0x68   : > { %p6096_p5 = pnand %p6095_p0, %p6091_p4 }
  0x6a   : > { %6099 = shalt.err (!%p6096_p5)
}
  0x6b   : > { %s6100_s0 = scalar_lea.vmem %s6423_s11, 1024  ;;  %s6201_s28 = smov [#allocation5]  }
  0x6c   : > { %p6101_p3 = scmp.ne.s32.totalorder %s6423_s11, %s6100_s0  ;;  %s6105_s12 = sshll.u32 %s6201_s28, 4  ;;  %s6106_s12 = int_to_ptr.vmem [resolvable:$false] %s6105_s12 }
  0x6d   : > { %s6107_s30 = scalar_lea.vmem %s6106_s12, 2048  ;;  %p6108_p2 = scmp.lt.s32.totalorder %s6423_s11, %s6106_s12 }
  0x6e   : > { %p6103_p7 = pnand %p6101_p3, %p6061_p1  ;;  %p6109_p10 = scmp.lt.s32.totalorder %s6107_s30, %s6100_s0 }
  0x70   : > { %p6104_p9 = pneg %p6103_p7  ;;  %p6110_p13 = por %p6109_p10, %p6108_p2 }
  0x72   : > { %p6111_p6 = pnand %p6110_p13, %p6104_p9 }
  0x74   : > { %6114 = shalt.err (!%p6111_p6)
}
  0x75   : > { %5581 = dma.hbm_to_vmem [thread:$0]  (!%p6378_p11), %s6419_s27, 1024, %s6423_s11, %s370_s15, %s6199_s4, %s6199_s4, %s6200_s6  }
  0x76   : > { %392 = sbr.rel (%p6308_p8) target bundleno = 2114 (0x842), region = 60  ;;  %s6453_s26 = sand.u32 (!%p6308_p8), 1, %s6183_s14  }
  0x77   : > { %s6456_s2 = sshll.u32 (!%p6308_p8), %s6453_s26, 6  ;;  %s395_s29 = scalar_lea.sflag (!%p6308_p8), [#allocation3], %s6453_s26 }
  0x78   : > { %s6460_s18 = scalar_lea.vmem (!%p6308_p8), [#allocation2], %s6456_s2  ;;  %p7687_p1 = scmp.ne.s32.totalorder (!%p6308_p8), %s7673_s19, 0 }
  0x7b   : > { %6158 = dma.done.wait (%p7687_p1), %s395_s29, 1024  }
  0x7c   : > { %6160 = vsyncadd (%p7687_p1), %s395_s29, 4294966272  ;;  %s403_s15 = sand.u32 1, %s6289_s17   ;;  %s6468_s4 = scalar_lea.vmem [#allocation5], %s6456_s2 }
  0x7d   : > { %s404_s21 = scalar_lea.sflag [#allocation6], %s403_s15 }
  0x7e   : > { %6162 = dma.done.wait (%p7687_p1), %s404_s21, 1024  }
  0x7f   : > { %6164 = vsyncadd (%p7687_p1), %s404_s21, 4294966272  ;;  %p7688_p8 = scmp.eq.s32.totalorder %s6289_s17, 0 }
  0x81   : > { %6166 = dma.done.wait (%p7688_p8), [#allocation6], 256   ;;  %p7689_p11 = pmov %p7688_p8 }
  0x82   : > { %p7690_p4 = pmov %p7688_p8 }
  0x83   : > { %6168 = vsyncadd (%p7689_p11), [#allocation6], 4294967040 }
  0x84   : > { %6170 = dma.done.wait (%p7690_p4), [#allocation9], 512   ;;  %p7691_p12 = pmov %p7690_p4 }
  0x85   : > { %v5823_v0 = vld [vmem:[#allocation7 + $0x8] sm:$0xff]   ;;  %v5824_v1 = vld [vmem:[#allocation7] sm:$0xff]   ;;  %v467_v12 = vld [vmem:[%s6460_s18 + $0x10] sm:$0xff]  ;;  %vm516_vm0 = vcmask 261120   ;;  %v6202_v55 = vmov 0.0   ;;  %s6203_s27 = smov 120  }
  0x86   : > { %6172 = vsyncadd (%p7691_p12), [#allocation9], 4294966784  ;;  %5123 = vmatprep.subr.bf16.mxu0 %v5823_v0  ;;  %5543 = vmatprep.subr.bf16.mxu1 %v5823_v0  ;;  %v465_v2 = vld [vmem:[%s6460_s18] sm:$0xff]  ;;  %v466_v3 = vld [vmem:[%s6460_s18 + $0x8] sm:$0xff]  ;;  %vm6204_vm1 = vmmov 0   ;;  %s6205_s11 = smov 96  }
  0x87   : > { %v473_v4 = vld [vmem:[%s6468_s4] sm:$0xff]  ;;  %5124 = vmatpush3.bf16.msra.mxu0 %v5823_v0  ;;  %5545 = vmatpush3.bf16.msra.mxu1 %v5823_v0  ;;  %v474_v5 = vld [vmem:[%s6468_s4 + $0x8] sm:$0xff]  ;;  %v468_v15 = vld [vmem:[%s6460_s18 + $0x18] sm:$0xff]  ;;  %v594_v32 = vpack.c.bf16 %v466_v3, %v465_v2  ;;  %s6206_s24 = smov 112   ;;  %vm925_vm2 = vcmask 64512   ;;  %s6207_s23 = smov 104  }
  0x88   : > { %v481_v6 = vadd.f32 %v473_v4, %v465_v2  ;;  %v469_v7 = vld [vmem:[%s6460_s18 + $0x20] sm:$0xff]  ;;  %v470_v8 = vld [vmem:[%s6460_s18 + $0x28] sm:$0xff]  ;;  %5125 = vmatprep.subr.bf16.mxu0 %v5824_v1  ;;  %5544 = vmatprep.subr.bf16.mxu1 %v5824_v1  ;;  %v482_v9 = vadd.f32 %v474_v5, %v466_v3  ;;  %v475_v16 = vld [vmem:[%s6468_s4 + $0x10] sm:$0xff]  ;;  %v595_v33 = vpack.c.bf16 %v468_v15, %v467_v12  ;;  %vm2878_vm3 = vcmask 1043456   ;;  %s6208_s28 = smov 8   ;;  %s6209_s12 = smov 16  }
  0x89   : > { %v477_v10 = vld [vmem:[%s6468_s4 + $0x20] sm:$0xff]  ;;  %v478_v11 = vld [vmem:[%s6468_s4 + $0x28] sm:$0xff]  ;;  %v476_v17 = vld [vmem:[%s6468_s4 + $0x18] sm:$0xff]  ;;  %v483_v19 = vadd.f32 %v475_v16, %v467_v12  ;;  %v596_v34 = vpack.c.bf16 %v470_v8, %v469_v7  ;;  %s6210_s30 = smov 24   ;;  %vm4452_vm4 = vcmask 130048   ;;  %vm4461_vm5 = vcmask 195584  }
  0x8a   : > { %v485_v13 = vadd.f32 %v477_v10, %v469_v7  ;;  %v486_v14 = vadd.f32 %v478_v11, %v470_v8  ;;  %v489_v18 = vpack.c.bf16 %v482_v9, %v481_v6  ;;  %v484_v20 = vadd.f32 %v476_v17, %v468_v15  ;;  %v471_v21 = vld [vmem:[%s6460_s18 + $0x30] sm:$0xff]  ;;  %v472_v22 = vld [vmem:[%s6460_s18 + $0x38] sm:$0xff]  ;;  %v4882_v39 = vld [vmem:[%s7653_s3] ss:$0 sm:$0xff]  ;;  %s7575_s6 = scalar_lea.vmem [#allocation11], %s6456_s2  ;;  %s4976_s2 = sshll.u32 %s6289_s17, 10 }
  0x8b   : > { %v479_v23 = vld [vmem:[%s6468_s4 + $0x30] sm:$0xff]  ;;  %5126 = vmatpush3.bf16.msra.mxu0 %v5824_v1  ;;  %5546 = vmatpush3.bf16.msra.mxu1 %v5824_v1  ;;  %v480_v25 = vld [vmem:[%s6468_s4 + $0x38] sm:$0xff]  ;;  %v597_v35 = vpack.c.bf16 %v472_v22, %v471_v21  ;;  %s4726_s17 = scalar_lea.sflag [#allocation4], %s6453_s26  ;;  %p7692_p5 = scmp.ne.s32.totalorder %s7683_s25, 0 }
  0x8c   : > { %v491_v24 = vpack.c.bf16 %v486_v14, %v485_v13  ;;  %v487_v26 = vadd.f32 %v479_v23, %v471_v21  ;;  %5127 = vmatprep.mubr.msk.bf16.mxu0 %vm516_vm0, %v489_v18  ;;  %v490_v27 = vpack.c.bf16 %v484_v20, %v483_v19  ;;  %v488_v28 = vadd.f32 %v480_v25, %v472_v22  ;;  %v5825_v30 = vld [vmem:[#allocation8 + $0x8] sm:$0xff]   ;;  %v5826_v31 = vld [vmem:[#allocation8] sm:$0xff]   ;;  %s6211_s0 = smov [#allocation11]  }
  0x8d   : > { %5135 = vmatprep.subr.bf16.mxu1 %v5825_v30  ;;  %5147 = vmatprep.subr.bf16.mxu0 %v6202_v55 }
  0x8e   : > { %5131 = vmatprep.mubr.msk.bf16.mxu1 %vm516_vm0, %v491_v24  ;;  %5128 = vmatmul.mubr.msk.bf16.vlgmr.msra.gmra.mxu0 %vm516_vm0, %v490_v27  ;;  %v492_v29 = vpack.c.bf16 %v488_v28, %v487_v26 }
  0x8f   : > { %5149 = vmatprep.mubr.msk.bf16.mxu0 %vm6204_vm1, %v6202_v55 }
  0x90   : > { %5132 = vmatmul.mubr.msk.bf16.vlgmr.msra.gmra.mxu1 %vm516_vm0, %v492_v29 }
  0x91   : > { %5139 = vmatprep.mubr.msk.bf16.mxu1 %vm516_vm0, %v594_v32  ;;  %5136 = vmatpush3.bf16.msra.mxu1 %v5825_v30 }
  0x92   : > { %5137 = vmatprep.subr.bf16.mxu1 %v5826_v31 }
  0x95   : > { %5138 = vmatpush3.bf16.msra.mxu1 %v5826_v31 }
  0x96   : > { %5153 = vmatprep.subr.bf16.mxu1 %v6202_v55 }
  0x98   : > { %5140 = vmatmul.mubr.msk.bf16.vlgmr.msra.gmra.mxu1 %vm516_vm0, %v595_v33 }
  0x99   : > { %5143 = vmatprep.mubr.msk.bf16.mxu1 %vm516_vm0, %v596_v34 }
  0xa0   : > { %5144 = vmatmul.mubr.msk.bf16.gmra.mxu1 %vm516_vm0, %v597_v35 }
  0xa1   : > { %5155 = vmatprep.mubr.msk.bf16.mxu1 %vm6204_vm1, %v6202_v55 }
 0x14e   : > { %v5129_v36 = vpop.f32.mrf.mxu0 }
 0x14f   : > { %v572_v43 = vadd.f32 %v5129_v36, %v4882_v39 }
 0x150   : > { %v5133_v37 = vpop.f32.mrf.mxu1  ;;  %v563_v38 = vpop.f32.mrf.mxu0 }
 0x151   : > { %v564_v46 = vadd.f32 %v4882_v39, %v563_v38  ;;  %v588_v51 = vadd.f32 %v5133_v37, %v4882_v39  ;;  %v6536_v60 = vpack.c.bf16 %v572_v43, %v572_v43 }
 0x152   : > { %v579_v40 = vpop.f32.mrf.mxu1  ;;  %v5130_v41 = vpop.f32.mrf.mxu0 }
 0x153   : > { %v575_v42 = vadd.f32 %v5130_v41, %v4882_v39  ;;  %v580_v47 = vadd.f32 %v4882_v39, %v579_v40  ;;  %v6528_v58 = vpack.c.bf16 %v564_v46, %v564_v46  ;;  %v6555_v0 = vpack.c.bf16 %v588_v51, %v588_v51 }
 0x154   : > { %v5134_v44 = vpop.f32.mrf.mxu1  ;;  %v566_v45 = vpop.f32.mrf.mxu0 }
 0x155   : > { %v567_v48 = vadd.f32 %v4882_v39, %v566_v45  ;;  %v6509_v50 = vpack.i.bf16 %v575_v42, %v572_v43  ;;  %v591_v52 = vadd.f32 %v5134_v44, %v4882_v39  ;;  %v6541_v61 = vpack.c.bf16 %v575_v42, %v575_v42 }
 0x156   : > { %v582_v49 = vpop.f32.mrf.mxu1  ;;  %v6547_v62 = vpack.c.bf16 %v580_v47, %v580_v47 }
 0x157   : > { %v583_v53 = vadd.f32 %v4882_v39, %v582_v49  ;;  %v5643_v54 = vpack.i.bf16 %v567_v48, %v564_v46  ;;  %v6516_v57 = vpack.i.bf16 %v591_v52, %v588_v51  ;;  %v6530_v59 = vpack.c.bf16 %v567_v48, %v567_v48 }
 0x158   : > { %v6561_v1 = vpack.c.bf16 %v591_v52, %v591_v52 }
 0x159   : > { %v6513_v56 = vpack.i.bf16 %v583_v53, %v580_v47  ;;  %5644 = vrot.lane.b32.xlu0 %v5643_v54, %s6203_s27  ;;  %v6549_v63 = vpack.c.bf16 %v583_v53, %v583_v53 }
 0x15b   : > { %5654 = vrot.lane.b32.xlu1 %v6513_v56, %s6203_s27 }
 0x15d   : > { %5649 = vrot.lane.b32.xlu0 %v6509_v50, %s6203_s27 }
 0x15f   : > { %5659 = vrot.lane.b32.xlu1 %v6516_v57, %s6203_s27 }
 0x161   : > { %923 = vrot.lane.b32.xlu0 %v6528_v58, %s6205_s11 }
 0x163   : > { %973 = vrot.lane.b32.xlu1 %v6530_v59, %s6205_s11 }
 0x165   : > { %5664 = vrot.lane.b32.xlu0 %v5643_v54, %s6206_s24 }
 0x167   : > { %1022 = vrot.lane.b32.xlu1 %v6536_v60, %s6205_s11 }
 0x169   : > { %1071 = vrot.lane.b32.xlu0 %v6541_v61, %s6205_s11 }
 0x16b   : > { %5669 = vrot.lane.b32.xlu1 %v6509_v50, %s6206_s24 }
 0x16d   : > { %1120 = vrot.lane.b32.xlu0 %v6547_v62, %s6205_s11 }
 0x16f   : > { %1169 = vrot.lane.b32.xlu1 %v6549_v63, %s6205_s11 }
 0x171   : > { %5674 = vrot.lane.b32.xlu0 %v6513_v56, %s6206_s24 }
 0x173   : > { %1218 = vrot.lane.b32.xlu1 %v6555_v0, %s6205_s11 }
 0x175   : > { %1267 = vrot.lane.b32.xlu0 %v6561_v1, %s6205_s11 }
 0x177   : > { %5679 = vrot.lane.b32.xlu1 %v6516_v57, %s6206_s24 }
 0x1cb   : > { %v5645_v2 = vpop.permute.xlu0 %5644 }
 0x1cc   : > { %v5647_v3 = vunpack.i.h.bf16 %v5645_v2  ;;  %v5646_v4 = vunpack.i.l.bf16 %v5645_v2 }
 0x1cd   : > { %v5655_v5 = vpop.permute.xlu1 %5654 }
 0x1ce   : > { %v6567_v6 = vpack.c.bf16 %v5647_v3, %v5647_v3  ;;  %v6569_v7 = vpack.c.bf16 %v5646_v4, %v5646_v4  ;;  %v5657_v16 = vunpack.i.h.bf16 %v5655_v5  ;;  %v5656_v17 = vunpack.i.l.bf16 %v5655_v5  ;;  %v4889_v3 = vld [vmem:[%s7655_s5] ss:$0 sm:$0xff] }
 0x1cf   : > { %v5650_v8 = vpop.permute.xlu0 %5649 }
 0x1d0   : > { %v5651_v9 = vunpack.i.l.bf16 %v5650_v8  ;;  %1365 = vrot.lane.b32.xlu1 %v6567_v6, %s6205_s11  ;;  %1316 = vrot.lane.b32.xlu0 %v6569_v7, %s6205_s11  ;;  %v5652_v11 = vunpack.i.h.bf16 %v5650_v8  ;;  %v6590_v23 = vpack.c.bf16 %v5657_v16, %v5657_v16  ;;  %v6592_v24 = vpack.c.bf16 %v5656_v17, %v5656_v17 }
 0x1d1   : > { %v5660_v10 = vpop.permute.xlu1 %5659 }
 0x1d2   : > { %v6575_v12 = vpack.c.bf16 %v5651_v9, %v5651_v9  ;;  %v6582_v19 = vpack.c.bf16 %v5652_v11, %v5652_v11  ;;  %v5661_v22 = vunpack.i.l.bf16 %v5660_v10  ;;  %v5662_v29 = vunpack.i.h.bf16 %v5660_v10 }
 0x1d3   : > { %v924_v13 = vpop.permute.xlu0 %923 }
 0x1d4   : > { %v930_v14 = vsel %vm925_vm2, %v924_v13, 0  ;;  %1414 = vrot.lane.b32.xlu1 %v6575_v12, %s6205_s11  ;;  %5684 = vrot.lane.b32.xlu0 %v5643_v54, %s6207_s23  ;;  %v6604_v30 = vpack.c.bf16 %v5661_v22, %v5661_v22  ;;  %v6615_v35 = vpack.c.bf16 %v5662_v29, %v5662_v29 }
 0x1d5   : > { %v974_v15 = vpop.permute.xlu1 %973  ;;  %5148 = vmatpush3.bf16.xpose.msra.mxu0 %v930_v14 }
 0x1d6   : > { %v979_v18 = vsel %vm925_vm2, %v974_v15, 0  ;;  %5159 = vmatprep.subr.bf16.mxu0 %v6202_v55 }
 0x1d7   : > { %5154 = vmatpush3.bf16.xpose.msra.mxu1 %v979_v18  ;;  %v5665_v20 = vpop.permute.xlu0 %5664 }
 0x1d8   : > { %5689 = vrot.lane.b32.xlu1 %v6509_v50, %s6207_s23  ;;  %1463 = vrot.lane.b32.xlu0 %v6582_v19, %s6205_s11  ;;  %v5667_v32 = vunpack.i.h.bf16 %v5665_v20  ;;  %v5666_v34 = vunpack.i.l.bf16 %v5665_v20 }
 0x1d9   : > { %v1023_v21 = vpop.permute.xlu1 %1022  ;;  %5165 = vmatprep.subr.bf16.mxu1 %v6202_v55 }
 0x1da   : > { %v1028_v27 = vsel %vm925_vm2, %v1023_v21, 0  ;;  %v6625_v39 = vpack.c.bf16 %v5667_v32, %v5667_v32  ;;  %v6630_v43 = vpack.c.bf16 %v5666_v34, %v5666_v34 }
 0x1db   : > { %v1072_v25 = vpop.permute.xlu0 %1071 }
 0x1dc   : > { %v1077_v26 = vsel %vm925_vm2, %v1072_v25, 0  ;;  %1561 = vrot.lane.b32.xlu1 %v6590_v23, %s6205_s11  ;;  %1512 = vrot.lane.b32.xlu0 %v6592_v24, %s6205_s11 }
 0x1dd   : > { %v5670_v28 = vpop.permute.xlu1 %5669  ;;  %5150 = vmatmul.mubr.msk.bf16.vlgmr.msra.gmra.mxu0 %vm925_vm2, %v6528_v58 }
 0x1de   : > { %5156 = vmatmul.mubr.msk.bf16.vlgmr.msra.gmra.mxu1 %vm925_vm2, %v6530_v59  ;;  %5160 = vmatpush3.bf16.xpose.msra.mxu0 %v1028_v27  ;;  %v5672_v40 = vunpack.i.h.bf16 %v5670_v28  ;;  %v5671_v41 = vunpack.i.l.bf16 %v5670_v28  ;;  %v5141_v59 = vpop.f32.mrf.mxu1 }
 0x1df   : > { %5166 = vmatpush3.bf16.xpose.msra.mxu1 %v1077_v26  ;;  %v1121_v31 = vpop.permute.xlu0 %1120  ;;  %5167 = vmatprep.mubr.msk.bf16.mxu1 %vm6204_vm1, %v6202_v55 }
 0x1e0   : > { %1610 = vrot.lane.b32.xlu1 %v6604_v30, %s6205_s11  ;;  %5694 = vrot.lane.b32.xlu0 %v6513_v56, %s6207_s23  ;;  %v1126_v36 = vsel %vm925_vm2, %v1121_v31, 0  ;;  %v6642_v46 = vpack.c.bf16 %v5672_v40, %v5672_v40  ;;  %v6644_v47 = vpack.c.bf16 %v5671_v41, %v5671_v41 }
 0x1e1   : > { %v1170_v33 = vpop.permute.xlu1 %1169  ;;  %5161 = vmatprep.mubr.msk.bf16.mxu0 %vm6204_vm1, %v6202_v55  ;;  %5171 = vmatprep.subr.bf16.mxu0 %v6202_v55 }
 0x1e2   : > { %5177 = vmatprep.subr.bf16.mxu1 %v6202_v55  ;;  %v1175_v42 = vsel %vm925_vm2, %v1170_v33, 0 }
 0x1e3   : > { %v5675_v38 = vpop.permute.xlu0 %5674 }
 0x1e4   : > { %5699 = vrot.lane.b32.xlu1 %v6516_v57, %s6207_s23  ;;  %1659 = vrot.lane.b32.xlu0 %v6615_v35, %s6205_s11  ;;  %v5677_v44 = vunpack.i.h.bf16 %v5675_v38  ;;  %v5676_v45 = vunpack.i.l.bf16 %v5675_v38 }
 0x1e5   : > { %v1219_v37 = vpop.permute.xlu1 %1218  ;;  %5162 = vmatmul.mubr.msk.bf16.vlgmr.msra.gmra.mxu0 %vm925_vm2, %v6536_v60  ;;  %v667_v60 = vpop.f32.mrf.mxu1 }
 0x1e6   : > { %5168 = vmatmul.mubr.msk.bf16.vlgmr.msra.gmra.mxu1 %vm925_vm2, %v6541_v61  ;;  %5172 = vmatpush3.bf16.xpose.msra.mxu0 %v1126_v36  ;;  %v1224_v50 = vsel %vm925_vm2, %v1219_v37, 0  ;;  %v6653_v51 = vpack.c.bf16 %v5677_v44, %v5677_v44  ;;  %v6658_v56 = vpack.c.bf16 %v5676_v45, %v5676_v45 }
 0x1e7   : > { %5178 = vmatpush3.bf16.xpose.msra.mxu1 %v1175_v42  ;;  %5173 = vmatprep.mubr.msk.bf16.mxu0 %vm6204_vm1, %v6202_v55  ;;  %v1268_v49 = vpop.permute.xlu0 %1267  ;;  %v5142_v61 = vpop.f32.mrf.mxu1 }
 0x1e8   : > { %1757 = vrot.lane.b32.xlu1 %v6625_v39, %s6205_s11  ;;  %1708 = vrot.lane.b32.xlu0 %v6630_v43, %s6205_s11  ;;  %v1273_v54 = vsel %vm925_vm2, %v1268_v49, 0  ;;  %v6691_v5 = vadd.f32 %v5142_v61, %v4889_v3 }
 0x1e9   : > { %5179 = vmatprep.mubr.msk.bf16.mxu1 %vm6204_vm1, %v6202_v55  ;;  %5183 = vmatprep.subr.bf16.mxu0 %v6202_v55  ;;  %v5680_v48 = vpop.permute.xlu1 %5679 }
 0x1ea   : > { %5189 = vmatprep.subr.bf16.mxu1 %v6202_v55  ;;  %v5682_v52 = vunpack.i.h.bf16 %v5680_v48  ;;  %v5681_v53 = vunpack.i.l.bf16 %v5680_v48 }
 0x1ec   : > { %1855 = vrot.lane.b32.xlu1 %v6642_v46, %s6205_s11  ;;  %1806 = vrot.lane.b32.xlu0 %v6644_v47, %s6205_s11  ;;  %v6669_v57 = vpack.c.bf16 %v5682_v52, %v5682_v52  ;;  %v6671_v58 = vpack.c.bf16 %v5681_v53, %v5681_v53 }
 0x1ed   : > { %5174 = vmatmul.mubr.msk.bf16.vlgmr.msra.gmra.mxu0 %vm925_vm2, %v6547_v62  ;;  %v670_v62 = vpop.f32.mrf.mxu1 }
 0x1ee   : > { %5180 = vmatmul.mubr.msk.bf16.vlgmr.msra.gmra.mxu1 %vm925_vm2, %v6549_v63  ;;  %5184 = vmatpush3.bf16.xpose.msra.mxu0 %v1224_v50  ;;  %v6695_v8 = vadd.f32 %v4889_v3, %v670_v62 }
 0x1ef   : > { %5190 = vmatpush3.bf16.xpose.msra.mxu1 %v1273_v54  ;;  %5185 = vmatprep.mubr.msk.bf16.mxu0 %vm6204_vm1, %v6202_v55  ;;  %v5145_v63 = vpop.f32.mrf.mxu1 }
 0x1f0   : > { %1953 = vrot.lane.b32.xlu1 %v6653_v51, %s6205_s11  ;;  %1904 = vrot.lane.b32.xlu0 %v6658_v56, %s6205_s11  ;;  %v6709_v15 = vadd.f32 %v5145_v63, %v4889_v3 }
 0x1f1   : > { %5191 = vmatprep.mubr.msk.bf16.mxu1 %vm6204_vm1, %v6202_v55  ;;  %5195 = vmatprep.subr.bf16.mxu0 %v6202_v55  ;;  %v683_v2 = vpop.f32.mrf.mxu1 }
 0x1f2   : > { %5201 = vmatprep.subr.bf16.mxu1 %v6202_v55  ;;  %v6705_v13 = vadd.f32 %v4889_v3, %v683_v2 }
 0x1f3   : > { %v5146_v4 = vpop.f32.mrf.mxu1 }
 0x1f4   : > { %2051 = vrot.lane.b32.xlu1 %v6669_v57, %s6205_s11  ;;  %2002 = vrot.lane.b32.xlu0 %v6671_v58, %s6205_s11  ;;  %v6711_v16 = vadd.f32 %v5146_v4, %v4889_v3 }
 0x1f5   : > { %5186 = vmatmul.mubr.msk.bf16.vlgmr.msra.gmra.mxu0 %vm925_vm2, %v6555_v0  ;;  %v6689_v0 = vadd.f32 %v5141_v59, %v4889_v3  ;;  %v686_v10 = vpop.f32.mrf.mxu1 }
 0x1f6   : > { %5192 = vmatmul.mubr.msk.bf16.vlgmr.msra.gmra.mxu1 %vm925_vm2, %v6561_v1  ;;  %5197 = vmatprep.mubr.msk.bf16.mxu0 %vm6204_vm1, %v6202_v55  ;;  %v6693_v1 = vadd.f32 %v4889_v3, %v667_v60  ;;  %v6707_v14 = vadd.f32 %v4889_v3, %v686_v10  ;;  %v6719_v18 = vpack.i.bf16 %v6711_v16, %v6709_v15 }
 0x1f7   : > { %5203 = vmatprep.mubr.msk.bf16.mxu1 %vm6204_vm1, %v6202_v55  ;;  %v6699_v9 = vpack.i.bf16 %v6691_v5, %v6689_v0 }
 0x1f8   : > { %v6703_v11 = vpack.i.bf16 %v6695_v8, %v6693_v1  ;;  %v6715_v17 = vpack.i.bf16 %v6707_v14, %v6705_v13 }
 0x242   : > { %v1366_v20 = vpop.permute.xlu1 %1365  ;;  %v1317_v21 = vpop.permute.xlu0 %1316 }
 0x243   : > { %v1371_v22 = vsel %vm925_vm2, %v1366_v20, 0  ;;  %v1322_v25 = vsel %vm925_vm2, %v1317_v21, 0 }
 0x244   : > { %5196 = vmatpush3.bf16.xpose.msra.mxu0 %v1322_v25  ;;  %5202 = vmatpush3.bf16.xpose.msra.mxu1 %v1371_v22 }
 0x245   : > { %5207 = vmatprep.subr.bf16.mxu0 %v6202_v55  ;;  %5213 = vmatprep.subr.bf16.mxu1 %v6202_v55 }
 0x246   : > { %v1415_v26 = vpop.permute.xlu1 %1414  ;;  %v5685_v27 = vpop.permute.xlu0 %5684 }
 0x247   : > { %v5687_v28 = vunpack.i.h.bf16 %v5685_v27  ;;  %v5686_v29 = vunpack.i.l.bf16 %v5685_v27  ;;  %v1420_v40 = vsel %vm925_vm2, %v1415_v26, 0 }
 0x249   : > { %v6725_v31 = vpack.c.bf16 %v5687_v28, %v5687_v28  ;;  %v6727_v32 = vpack.c.bf16 %v5686_v29, %v5686_v29 }
 0x24a   : > { %v5690_v33 = vpop.permute.xlu1 %5689  ;;  %v1464_v34 = vpop.permute.xlu0 %1463 }
 0x24b   : > { %v5692_v36 = vunpack.i.h.bf16 %v5690_v33  ;;  %v5691_v37 = vunpack.i.l.bf16 %v5690_v33  ;;  %v1469_v38 = vsel %vm925_vm2, %v1464_v34, 0  ;;  %5198 = vmatmul.mubr.msk.bf16.vlgmr.msra.gmra.mxu0 %vm925_vm2, %v6569_v7  ;;  %5204 = vmatmul.mubr.msk.bf16.vlgmr.msra.gmra.mxu1 %vm925_vm2, %v6567_v6 }
 0x24c   : > { %2149 = vrot.lane.b32.xlu1 %v6725_v31, %s6205_s11  ;;  %2100 = vrot.lane.b32.xlu0 %v6727_v32, %s6205_s11 }
 0x24d   : > { %5208 = vmatpush3.bf16.xpose.msra.mxu0 %v1420_v40  ;;  %5214 = vmatpush3.bf16.xpose.msra.mxu1 %v1469_v38  ;;  %v6739_v41 = vpack.c.bf16 %v5692_v36, %v5692_v36  ;;  %v6741_v42 = vpack.c.bf16 %v5691_v37, %v5691_v37 }
 0x24e   : > { %v1562_v44 = vpop.permute.xlu1 %1561  ;;  %v1513_v45 = vpop.permute.xlu0 %1512  ;;  %5209 = vmatprep.mubr.msk.bf16.mxu0 %vm6204_vm1, %v6202_v55  ;;  %5215 = vmatprep.mubr.msk.bf16.mxu1 %vm6204_vm1, %v6202_v55 }
 0x24f   : > { %5219 = vmatprep.subr.bf16.mxu0 %v6202_v55  ;;  %5225 = vmatprep.subr.bf16.mxu1 %v6202_v55  ;;  %v1567_v50 = vsel %vm925_vm2, %v1562_v44, 0  ;;  %v1518_v52 = vsel %vm925_vm2, %v1513_v45, 0 }
 0x250   : > { %2247 = vrot.lane.b32.xlu1 %v6739_v41, %s6205_s11  ;;  %2198 = vrot.lane.b32.xlu0 %v6741_v42, %s6205_s11 }
 0x252   : > { %v1611_v6 = vpop.permute.xlu1 %1610  ;;  %v5695_v7 = vpop.permute.xlu0 %5694 }
 0x253   : > { %v5697_v48 = vunpack.i.h.bf16 %v5695_v7  ;;  %v5696_v49 = vunpack.i.l.bf16 %v5695_v7  ;;  %v1616_v63 = vsel %vm925_vm2, %v1611_v6, 0 }
 0x254   : > { %5210 = vmatmul.mubr.msk.bf16.vlgmr.msra.gmra.mxu0 %vm925_vm2, %v6575_v12  ;;  %5216 = vmatmul.mubr.msk.bf16.vlgmr.msra.gmra.mxu1 %vm925_vm2, %v6582_v19 }
 0x255   : > { %5220 = vmatpush3.bf16.xpose.msra.mxu0 %v1518_v52  ;;  %5226 = vmatpush3.bf16.xpose.msra.mxu1 %v1567_v50  ;;  %v6759_v53 = vpack.c.bf16 %v5697_v48, %v5697_v48  ;;  %v6761_v54 = vpack.c.bf16 %v5696_v49, %v5696_v49 }
 0x256   : > { %v5700_v59 = vpop.permute.xlu1 %5699  ;;  %5221 = vmatprep.mubr.msk.bf16.mxu0 %vm6204_vm1, %v6202_v55  ;;  %5227 = vmatprep.mubr.msk.bf16.mxu1 %vm6204_vm1, %v6202_v55  ;;  %v1660_v12 = vpop.permute.xlu0 %1659 }
 0x257   : > { %v5702_v60 = vunpack.i.h.bf16 %v5700_v59  ;;  %v5701_v61 = vunpack.i.l.bf16 %v5700_v59  ;;  %2345 = vrot.lane.b32.xlu1 %v6759_v53, %s6205_s11  ;;  %2296 = vrot.lane.b32.xlu0 %v6761_v54, %s6205_s11  ;;  %v1665_v2 = vsel %vm925_vm2, %v1660_v12, 0 }
 0x258   : > { %5231 = vmatprep.subr.bf16.mxu0 %v6202_v55  ;;  %5237 = vmatprep.subr.bf16.mxu1 %v6202_v55 }
 0x259   : > { %v6773_v19 = vpack.c.bf16 %v5702_v60, %v5702_v60  ;;  %v6775_v62 = vpack.c.bf16 %v5701_v61, %v5701_v61 }
 0x25b   : > { %2443 = vrot.lane.b32.xlu1 %v6773_v19, %s6205_s11  ;;  %2394 = vrot.lane.b32.xlu0 %v6775_v62, %s6205_s11 }
 0x25c   : > { %5222 = vmatmul.mubr.msk.bf16.vlgmr.msra.gmra.mxu0 %vm925_vm2, %v6592_v24  ;;  %5228 = vmatmul.mubr.msk.bf16.vlgmr.msra.gmra.mxu1 %vm925_vm2, %v6590_v23  ;;  %v1758_v24 = vpop.permute.xlu1 %1757  ;;  %v1709_v23 = vpop.permute.xlu0 %1708 }
 0x25d   : > { %5232 = vmatpush3.bf16.xpose.msra.mxu0 %v1616_v63  ;;  %5238 = vmatpush3.bf16.xpose.msra.mxu1 %v1665_v2  ;;  %v1763_v3 = vsel %vm925_vm2, %v1758_v24, 0  ;;  %v1714_v4 = vsel %vm925_vm2, %v1709_v23, 0 }
 0x25e   : > { %5233 = vmatprep.mubr.msk.bf16.mxu0 %vm6204_vm1, %v6202_v55  ;;  %5239 = vmatprep.mubr.msk.bf16.mxu1 %vm6204_vm1, %v6202_v55 }
 0x25f   : > { %5243 = vmatprep.subr.bf16.mxu0 %v6202_v55  ;;  %5249 = vmatprep.subr.bf16.mxu1 %v6202_v55 }
 0x260   : > { %5704 = vrot.lane.b32.xlu1 %v6703_v11, %s6203_s27  ;;  %5709 = vrot.lane.b32.xlu0 %v6699_v9, %s6203_s27 }
 0x264   : > { %5234 = vmatmul.mubr.msk.bf16.vlgmr.msra.gmra.mxu0 %vm925_vm2, %v6604_v30  ;;  %5240 = vmatmul.mubr.msk.bf16.vlgmr.msra.gmra.mxu1 %vm925_vm2, %v6615_v35  ;;  %v1856_v30 = vpop.permute.xlu1 %1855  ;;  %v1807_v35 = vpop.permute.xlu0 %1806 }
 0x265   : > { %5244 = vmatpush3.bf16.xpose.msra.mxu0 %v1714_v4  ;;  %5250 = vmatpush3.bf16.xpose.msra.mxu1 %v1763_v3  ;;  %v1861_v10 = vsel %vm925_vm2, %v1856_v30, 0  ;;  %v1812_v20 = vsel %vm925_vm2, %v1807_v35, 0 }
 0x266   : > { %5245 = vmatprep.mubr.msk.bf16.mxu0 %vm6204_vm1, %v6202_v55  ;;  %5251 = vmatprep.mubr.msk.bf16.mxu1 %vm6204_vm1, %v6202_v55 }
 0x267   : > { %5255 = vmatprep.subr.bf16.mxu0 %v6202_v55  ;;  %5261 = vmatprep.subr.bf16.mxu1 %v6202_v55 }
 0x268   : > { %5714 = vrot.lane.b32.xlu1 %v6715_v17, %s6203_s27  ;;  %5724 = vrot.lane.b32.xlu0 %v6703_v11, %s6206_s24  ;;  %v1954_v21 = vpop.permute.xlu1 %1953 }
 0x269   : > { %v1959_v22 = vsel %vm925_vm2, %v1954_v21, 0 }
 0x26c   : > { %5246 = vmatmul.mubr.msk.bf16.vlgmr.msra.gmra.mxu0 %vm925_vm2, %v6630_v43  ;;  %5252 = vmatmul.mubr.msk.bf16.vlgmr.msra.gmra.mxu1 %vm925_vm2, %v6625_v39  ;;  %v1905_v43 = vpop.permute.xlu0 %1904  ;;  %v2052_v25 = vpop.permute.xlu1 %2051 }
 0x26d   : > { %5256 = vmatpush3.bf16.xpose.msra.mxu0 %v1812_v20  ;;  %5262 = vmatpush3.bf16.xpose.msra.mxu1 %v1861_v10  ;;  %v1910_v39 = vsel %vm925_vm2, %v1905_v43, 0  ;;  %v2057_v26 = vsel %vm925_vm2, %v2052_v25, 0 }
 0x26e   : > { %5257 = vmatprep.mubr.msk.bf16.mxu0 %vm6204_vm1, %v6202_v55  ;;  %5263 = vmatprep.mubr.msk.bf16.mxu1 %vm6204_vm1, %v6202_v55 }
 0x26f   : > { %5267 = vmatprep.subr.bf16.mxu0 %v6202_v55  ;;  %5273 = vmatprep.subr.bf16.mxu1 %v6202_v55 }
 0x270   : > { %5719 = vrot.lane.b32.xlu1 %v6719_v18, %s6203_s27  ;;  %s4739_s27 = sshll.u32 %s7575_s6, 4  ;;  %s7604_s27 = int_to_ptr.vmem [resolvable:$true] %s4739_s27 }
 0x271   : > { %s6115_s22 = scalar_lea.vmem %s7604_s27, 1024 }
 0x272   : > { %p6116_p0 = scmp.ne.s32.totalorder %s7604_s27, %s6115_s22 }
 0x274   : > { %5258 = vmatmul.mubr.msk.bf16.vlgmr.msra.gmra.mxu0 %vm925_vm2, %v6644_v47  ;;  %5264 = vmatmul.mubr.msk.bf16.vlgmr.msra.gmra.mxu1 %vm925_vm2, %v6642_v46  ;;  %v2003_v47 = vpop.permute.xlu0 %2002  ;;  %p6117_p3 = pnand %p6116_p0, %p7692_p5 }
 0x275   : > { %5268 = vmatpush3.bf16.xpose.msra.mxu0 %v1910_v39  ;;  %5274 = vmatpush3.bf16.xpose.msra.mxu1 %v1959_v22  ;;  %v2008_v46 = vsel %vm925_vm2, %v2003_v47, 0 }
 0x276   : > { %5729 = vrot.lane.b32.xlu1 %v6699_v9, %s6206_s24  ;;  %5269 = vmatprep.mubr.msk.bf16.mxu0 %vm6204_vm1, %v6202_v55  ;;  %p6118_p7 = pneg %p6117_p3 }
 0x277   : > { %5275 = vmatprep.mubr.msk.bf16.mxu1 %vm6204_vm1, %v6202_v55  ;;  %5285 = vmatprep.subr.bf16.mxu1 %v6202_v55 }
 0x278   : > { %5279 = vmatprep.subr.bf16.mxu0 %v6202_v55 }
 0x27c   : > { %5276 = vmatmul.mubr.msk.bf16.vlgmr.msra.gmra.mxu1 %vm925_vm2, %v6653_v51  ;;  %5270 = vmatmul.mubr.msk.bf16.vlgmr.msra.gmra.mxu0 %vm925_vm2, %v6658_v56 }
 0x27d   : > { %5280 = vmatpush3.bf16.xpose.msra.mxu0 %v2008_v46  ;;  %5286 = vmatpush3.bf16.xpose.msra.mxu1 %v2057_v26 }
 0x27e   : > { %5281 = vmatprep.mubr.msk.bf16.mxu0 %vm6204_vm1, %v6202_v55  ;;  %5287 = vmatprep.mubr.msk.bf16.mxu1 %vm6204_vm1, %v6202_v55 }
 0x27f   : > { %5291 = vmatprep.subr.bf16.mxu0 %v6202_v55  ;;  %5297 = vmatprep.subr.bf16.mxu1 %v6202_v55 }
 0x284   : > { %5282 = vmatmul.mubr.msk.bf16.vlgmr.msra.gmra.mxu0 %vm925_vm2, %v6671_v58  ;;  %5288 = vmatmul.mubr.msk.bf16.vlgmr.msra.gmra.mxu1 %vm925_vm2, %v6669_v57 }
 0x285   : > { %5293 = vmatprep.mubr.msk.bf16.mxu0 %vm6204_vm1, %v6202_v55  ;;  %5299 = vmatprep.mubr.msk.bf16.mxu1 %vm6204_vm1, %v6202_v55 }
 0x29d   : > { %v6861_v51 = vpop.f32.mrf.mxu0 }
 0x29e   : > { %v6863_v56 = vpop.f32.mrf.mxu1  ;;  %v2491_v27 = vsel %vm925_vm2, %v6861_v51, -inf }
 0x29f   : > { %v5151_v28 = vpop.f32.mrf.mxu0  ;;  %v2494_v58 = vsel %vm925_vm2, %v6863_v56, -inf  ;;  %2492 = vmax.xlane.f32.xlu0 %v2491_v27 }
 0x2a0   : > { %v5157_v29 = vpop.f32.mrf.mxu1  ;;  %2495 = vmax.xlane.f32.xlu1 %v2494_v58 }
 0x2a1   : > { %v969_v57 = vpop.f32.mrf.mxu0 }
 0x2a2   : > { %v1018_v33 = vpop.f32.mrf.mxu1 }
 0x2a3   : > { %v5152_v34 = vpop.f32.mrf.mxu0 }
 0x2a4   : > { %v5158_v36 = vpop.f32.mrf.mxu1 }
 0x2a5   : > { %v6869_v37 = vpop.f32.mrf.mxu0 }
 0x2a6   : > { %v6871_v38 = vpop.f32.mrf.mxu1  ;;  %v2497_v40 = vsel %vm925_vm2, %v6869_v37, -inf }
 0x2a7   : > { %v5163_v44 = vpop.f32.mrf.mxu0  ;;  %2498 = vmax.xlane.f32.xlu0 %v2497_v40  ;;  %v2500_v48 = vsel %vm925_vm2, %v6871_v38, -inf }
 0x2a8   : > { %v5169_v45 = vpop.f32.mrf.mxu1 }
 0x2a9   : > { %v1067_v6 = vpop.f32.mrf.mxu0 }
 0x2aa   : > { %v1116_v7 = vpop.f32.mrf.mxu1 }
 0x2ab   : > { %v5164_v49 = vpop.f32.mrf.mxu0  ;;  %2501 = vmax.xlane.f32.xlu0 %v2500_v48 }
 0x2ac   : > { %v5170_v50 = vpop.f32.mrf.mxu1 }
 0x2ad   : > { %v6877_v52 = vpop.f32.mrf.mxu0 }
 0x2ae   : > { %v6879_v59 = vpop.f32.mrf.mxu1  ;;  %v2503_v60 = vsel %vm925_vm2, %v6877_v52, -inf }
 0x2af   : > { %v5175_v61 = vpop.f32.mrf.mxu0  ;;  %2504 = vmax.xlane.f32.xlu1 %v2503_v60  ;;  %v2506_v12 = vsel %vm925_vm2, %v6879_v59, -inf }
 0x2b0   : > { %v5181_v63 = vpop.f32.mrf.mxu1  ;;  %2507 = vmax.xlane.f32.xlu0 %v2506_v12 }
 0x2b1   : > { %v1165_v2 = vpop.f32.mrf.mxu0 }
 0x2b2   : > { %v1214_v24 = vpop.f32.mrf.mxu1 }
 0x2b3   : > { %v5176_v23 = vpop.f32.mrf.mxu0 }
 0x2b4   : > { %v5182_v3 = vpop.f32.mrf.mxu1 }
 0x2b5   : > { %v6885_v4 = vpop.f32.mrf.mxu0 }
 0x2b6   : > { %v6887_v30 = vpop.f32.mrf.mxu1  ;;  %v2509_v35 = vsel %vm925_vm2, %v6885_v4, -inf }
 0x2b7   : > { %v5187_v10 = vpop.f32.mrf.mxu0  ;;  %2510 = vmax.xlane.f32.xlu1 %v2509_v35  ;;  %v2512_v20 = vsel %vm925_vm2, %v6887_v30, -inf }
 0x2b8   : > { %v5193_v21 = vpop.f32.mrf.mxu1  ;;  %2513 = vmax.xlane.f32.xlu0 %v2512_v20 }
 0x2b9   : > { %v1263_v43 = vpop.f32.mrf.mxu0 }
 0x2ba   : > { %v1312_v22 = vpop.f32.mrf.mxu1 }
 0x2bb   : > { %v5188_v39 = vpop.f32.mrf.mxu0 }
 0x2bc   : > { %v5194_v25 = vpop.f32.mrf.mxu1 }
 0x2be   : > { %v2150_v47 = vpop.permute.xlu1 %2149  ;;  %v2101_v26 = vpop.permute.xlu0 %2100 }
 0x2bf   : > { %v2155_v46 = vsel %vm925_vm2, %v2150_v47, 0  ;;  %v2106_v27 = vsel %vm925_vm2, %v2101_v26, 0 }
 0x2c0   : > { %5292 = vmatpush3.bf16.xpose.msra.mxu0 %v2106_v27  ;;  %5298 = vmatpush3.bf16.xpose.msra.mxu1 %v2155_v46 }
 0x2c1   : > { %5303 = vmatprep.subr.bf16.mxu0 %v6202_v55  ;;  %5309 = vmatprep.subr.bf16.mxu1 %v6202_v55 }
 0x2c2   : > { %v2248_v28 = vpop.permute.xlu1 %2247  ;;  %v2199_v58 = vpop.permute.xlu0 %2198 }
 0x2c3   : > { %v2253_v29 = vsel %vm925_vm2, %v2248_v28, 0  ;;  %v2204_v57 = vsel %vm925_vm2, %v2199_v58, 0 }
 0x2c7   : > { %5294 = vmatmul.mubr.msk.bf16.vlgmr.msra.gmra.mxu0 %vm925_vm2, %v6727_v32  ;;  %5300 = vmatmul.mubr.msk.bf16.vlgmr.msra.gmra.mxu1 %vm925_vm2, %v6725_v31 }
 0x2c8   : > { %5304 = vmatpush3.bf16.xpose.msra.mxu0 %v2204_v57  ;;  %5310 = vmatpush3.bf16.xpose.msra.mxu1 %v2253_v29 }
 0x2c9   : > { %5311 = vmatprep.mubr.msk.bf16.mxu1 %vm6204_vm1, %v6202_v55  ;;  %5305 = vmatprep.mubr.msk.bf16.mxu0 %vm6204_vm1, %v6202_v55  ;;  %v2346_v33 = vpop.permute.xlu1 %2345  ;;  %v2297_v34 = vpop.permute.xlu0 %2296 }
 0x2ca   : > { %5315 = vmatprep.subr.bf16.mxu0 %v6202_v55  ;;  %5321 = vmatprep.subr.bf16.mxu1 %v6202_v55  ;;  %v2351_v32 = vsel %vm925_vm2, %v2346_v33, 0  ;;  %v2302_v31 = vsel %vm925_vm2, %v2297_v34, 0 }
 0x2cd   : > { %v2444_v36 = vpop.permute.xlu1 %2443  ;;  %v2395_v40 = vpop.permute.xlu0 %2394 }
 0x2ce   : > { %5734 = vrot.lane.b32.xlu0 %v6715_v17, %s6206_s24  ;;  %v2449_v44 = vsel %vm925_vm2, %v2444_v36, 0 }
 0x2cf   : > { %5306 = vmatmul.mubr.msk.bf16.vlgmr.msra.gmra.mxu0 %vm925_vm2, %v6741_v42  ;;  %5312 = vmatmul.mubr.msk.bf16.vlgmr.msra.gmra.mxu1 %vm925_vm2, %v6739_v41  ;;  %v2400_v42 = vsel %vm925_vm2, %v2395_v40, 0  ;;  %v890_v41 = vpack.c.bf16 %v6693_v1, %v6693_v1 }
 0x2d0   : > { %5316 = vmatpush3.bf16.xpose.msra.mxu0 %v2302_v31  ;;  %5322 = vmatpush3.bf16.xpose.msra.mxu1 %v2351_v32 }
 0x2d1   : > { %5317 = vmatprep.mubr.msk.bf16.mxu0 %vm6204_vm1, %v6202_v55  ;;  %5323 = vmatprep.mubr.msk.bf16.mxu1 %vm6204_vm1, %v6202_v55 }
 0x2d2   : > { %5327 = vmatprep.subr.bf16.mxu0 %v6202_v55  ;;  %5333 = vmatprep.subr.bf16.mxu1 %v6202_v55  ;;  %v6959_v61 = vpop.permute.xlu1 %5704  ;;  %v6981_v33 = vpop.permute.xlu0 %5709 }
 0x2d7   : > { %5318 = vmatmul.mubr.msk.bf16.vlgmr.msra.gmra.mxu0 %vm925_vm2, %v6761_v54  ;;  %5324 = vmatmul.mubr.msk.bf16.vlgmr.msra.gmra.mxu1 %vm925_vm2, %v6759_v53  ;;  %v891_v54 = vpack.c.bf16 %v6695_v8, %v6695_v8  ;;  %v2880_v53 = vsel %vm2878_vm3, %v890_v41, 0 }
 0x2d8   : > { %5328 = vmatpush3.bf16.xpose.msra.mxu0 %v2400_v42  ;;  %5334 = vmatpush3.bf16.xpose.msra.mxu1 %v2449_v44 }
 0x2d9   : > { %5329 = vmatprep.mubr.msk.bf16.mxu0 %vm6204_vm1, %v6202_v55  ;;  %5335 = vmatprep.mubr.msk.bf16.mxu1 %vm6204_vm1, %v6202_v55  ;;  %v2926_v45 = vsel %vm2878_vm3, %v891_v54, 0 }
 0x2da   : > { %5339 = vmatprep.subr.bf16.mxu0 %v6202_v55  ;;  %5345 = vmatprep.subr.bf16.mxu1 %v6202_v55  ;;  %v6969_v20 = vpop.permute.xlu1 %5714 }
 0x2df   : > { %5330 = vmatmul.mubr.msk.bf16.vlgmr.msra.gmra.mxu0 %vm925_vm2, %v6775_v62  ;;  %5336 = vmatmul.mubr.msk.bf16.vlgmr.msra.gmra.mxu1 %vm925_vm2, %v6773_v19 }
 0x2e0   : > { %5340 = vmatpush3.bf16.msra.mxu0 %v2880_v53  ;;  %5346 = vmatpush3.bf16.msra.mxu1 %v2926_v45  ;;  %v6993_v53 = vpop.permute.xlu0 %5724 }
 0x2e1   : > { %5347 = vmatprep.mubr.msk.bf16.mxu1 %vm6204_vm1, %v6202_v55  ;;  %5357 = vmatprep.subr.bf16.mxu1 %v6202_v55 }
 0x2e2   : > { %5341 = vmatprep.mubr.msk.bf16.mxu0 %vm6204_vm1, %v6202_v55  ;;  %5351 = vmatprep.subr.bf16.mxu0 %v6202_v55  ;;  %v6979_v27 = vpop.permute.xlu1 %5719 }
 0x2e8   : > { %v6987_v31 = vpop.permute.xlu1 %5729 }
 0x30b   : > { %v6951_v1 = vpop.f32.mrf.mxu0  ;;  %v6953_v8 = vpop.f32.mrf.mxu1 }
 0x30c   : > { %v2515_v19 = vsel %vm925_vm2, %v6951_v1, -inf  ;;  %v2518_v62 = vsel %vm925_vm2, %v6953_v8, -inf }
 0x30d   : > { %v5199_v6 = vpop.f32.mrf.mxu0  ;;  %v5205_v7 = vpop.f32.mrf.mxu1  ;;  %2516 = vmax.xlane.f32.xlu1 %v2515_v19  ;;  %2519 = vmax.xlane.f32.xlu0 %v2518_v62 }
 0x30f   : > { %v1361_v48 = vpop.f32.mrf.mxu0  ;;  %v1410_v49 = vpop.f32.mrf.mxu1 }
 0x311   : > { %v5200_v50 = vpop.f32.mrf.mxu0  ;;  %v5206_v60 = vpop.f32.mrf.mxu1 }
 0x314   : > { %v6961_v12 = vpop.f32.mrf.mxu0  ;;  %v6963_v63 = vpop.f32.mrf.mxu1 }
 0x315   : > { %v2521_v2 = vsel %vm925_vm2, %v6961_v12, -inf  ;;  %v2524_v24 = vsel %vm925_vm2, %v6963_v63, -inf }
 0x316   : > { %v5211_v23 = vpop.f32.mrf.mxu0  ;;  %v5217_v3 = vpop.f32.mrf.mxu1  ;;  %2522 = vmax.xlane.f32.xlu1 %v2521_v2  ;;  %2525 = vmax.xlane.f32.xlu0 %v2524_v24 }
 0x318   : > { %v1459_v35 = vpop.f32.mrf.mxu0  ;;  %v1508_v10 = vpop.f32.mrf.mxu1 }
 0x31a   : > { %v5212_v21 = vpop.f32.mrf.mxu0  ;;  %v5218_v43 = vpop.f32.mrf.mxu1 }
 0x31c   : > { %v6971_v22 = vpop.f32.mrf.mxu0  ;;  %v6973_v39 = vpop.f32.mrf.mxu1 }
 0x31d   : > { %v2527_v25 = vsel %vm925_vm2, %v6971_v22, -inf  ;;  %v2530_v47 = vsel %vm925_vm2, %v6973_v39, -inf }
 0x31e   : > { %v5223_v26 = vpop.f32.mrf.mxu0  ;;  %v5229_v46 = vpop.f32.mrf.mxu1  ;;  %2528 = vmax.xlane.f32.xlu1 %v2527_v25  ;;  %2531 = vmax.xlane.f32.xlu0 %v2530_v47 }
 0x320   : > { %v1557_v28 = vpop.f32.mrf.mxu0  ;;  %v1606_v58 = vpop.f32.mrf.mxu1 }
 0x322   : > { %v5224_v29 = vpop.f32.mrf.mxu0  ;;  %v5230_v57 = vpop.f32.mrf.mxu1 }
 0x324   : > { %v6983_v34 = vpop.f32.mrf.mxu0  ;;  %v6985_v32 = vpop.f32.mrf.mxu1 }
 0x325   : > { %v2533_v36 = vsel %vm925_vm2, %v6983_v34, -inf  ;;  %v2536_v40 = vsel %vm925_vm2, %v6985_v32, -inf }
 0x326   : > { %v5235_v44 = vpop.f32.mrf.mxu0  ;;  %v5241_v42 = vpop.f32.mrf.mxu1  ;;  %2534 = vmax.xlane.f32.xlu1 %v2533_v36  ;;  %2537 = vmax.xlane.f32.xlu0 %v2536_v40 }
 0x328   : > { %v1655_v41 = vpop.f32.mrf.mxu0  ;;  %v1704_v54 = vpop.f32.mrf.mxu1 }
 0x329   : > { %v2496_v45 = vpop.xlane.xlu1 %2495  ;;  %v2493_v50 = vpop.xlane.xlu0 %2492 }
 0x32a   : > { %v2588_v19 = vsub.f32 %v6863_v56, %v2496_v45  ;;  %v5236_v62 = vpop.f32.mrf.mxu0  ;;  %v5242_v6 = vpop.f32.mrf.mxu1 }
 0x32c   : > { %v2621_v7 = vmul.f32 1.442695, %v2588_v19  ;;  %v6996_v48 = vpop.f32.mrf.mxu0  ;;  %v6998_v49 = vpop.f32.mrf.mxu1 }
 0x32d   : > { %v2542_v60 = vsel %vm925_vm2, %v6998_v49, -inf }
 0x32e   : > { %5829 = vpow2.f32 %v2621_v7  ;;  %v5253_v2 = vpop.f32.mrf.mxu1  ;;  %2543 = vmax.xlane.f32.xlu0 %v2542_v60  ;;  %v5247_v24 = vpop.f32.mrf.mxu0 }
 0x330   : > { %v1753_v23 = vpop.f32.mrf.mxu0  ;;  %v1802_v3 = vpop.f32.mrf.mxu1 }
 0x331   : > { %v2499_v35 = vpop.xlane.xlu0 %2498 }
 0x332   : > { %v5248_v10 = vpop.f32.mrf.mxu0  ;;  %v5254_v56 = vpop.f32.mrf.mxu1 }
 0x334   : > { %v7002_v21 = vpop.f32.mrf.mxu0  ;;  %v7004_v43 = vpop.f32.mrf.mxu1 }
 0x335   : > { %v2502_v25 = vpop.xlane.xlu0 %2501  ;;  %v2548_v47 = vsel %vm925_vm2, %v7004_v43, -inf }
 0x336   : > { %v2590_v26 = vsub.f32 %v6871_v38, %v2502_v25  ;;  %v5265_v46 = vpop.f32.mrf.mxu1  ;;  %2549 = vmax.xlane.f32.xlu0 %v2548_v47  ;;  %v5259_v28 = vpop.f32.mrf.mxu0 }
 0x337   : > { %5739 = vrot.lane.b32.xlu1 %v6719_v18, %s6206_s24  ;;  %v2587_v28 = vsub.f32 %v6861_v51, %v2493_v50  ;;  %v2539_v50 = vsel %vm925_vm2, %v6996_v48, -inf }
 0x338   : > { %v2625_v58 = vmul.f32 1.442695, %v2590_v26  ;;  %v1900_v29 = vpop.f32.mrf.mxu1  ;;  %v1851_v57 = vpop.f32.mrf.mxu0 }
 0x339   : > { %v2508_v36 = vpop.xlane.xlu0 %2507 }
 0x33a   : > { %5831 = vpow2.f32 %v2625_v58  ;;  %v2592_v40 = vsub.f32 %v6879_v59, %v2508_v36  ;;  %v5266_v44 = vpop.f32.mrf.mxu1  ;;  %v5260_v41 = vpop.f32.mrf.mxu0 }
 0x33b   : > { %v7012_v42 = vpop.eup %5829  ;;  %v2589_v41 = vsub.f32 %v6869_v37, %v2499_v35 }
 0x33c   : > { %v2629_v54 = vmul.f32 1.442695, %v2592_v40  ;;  %v7014_v45 = vpop.f32.mrf.mxu1  ;;  %v2686_v38 = vsel %vm925_vm2, %v7012_v42, 0.0  ;;  %v7018_v19 = vpop.f32.mrf.mxu0  ;;  %v2619_v40 = vmul.f32 1.442695, %v2587_v28 }
 0x33d   : > { %2687 = vadd.xlane.f32.xlu0 %v2686_v38  ;;  %v2554_v59 = vsel %vm925_vm2, %v7014_v45, -inf  ;;  %v2505_v38 = vpop.xlane.xlu1 %2504  ;;  %v2551_v35 = vsel %vm925_vm2, %v7018_v19, -inf }
 0x33e   : > { %v5277_v62 = vpop.f32.mrf.mxu1  ;;  %v5271_v6 = vpop.f32.mrf.mxu0  ;;  %5833 = vpow2.f32 %v2629_v54  ;;  %v2623_v54 = vmul.f32 1.442695, %v2589_v41  ;;  %v2591_v51 = vsub.f32 %v6877_v52, %v2505_v38 }
 0x33f   : > { %5835 = vpow2.f32 %v2619_v40  ;;  %v2545_v6 = vsel %vm925_vm2, %v7002_v21, -inf }
 0x340   : > { %v1998_v7 = vpop.f32.mrf.mxu1  ;;  %v1949_v60 = vpop.f32.mrf.mxu0  ;;  %5837 = vpow2.f32 %v2623_v54  ;;  %v2627_v62 = vmul.f32 1.442695, %v2591_v51 }
 0x341   : > { %2555 = vmax.xlane.f32.xlu0 %v2554_v59 }
 0x342   : > { %v5278_v2 = vpop.f32.mrf.mxu1  ;;  %v5272_v24 = vpop.f32.mrf.mxu0  ;;  %5839 = vpow2.f32 %v2627_v62 }
 0x343   : > { %v2511_v24 = vpop.xlane.xlu1 %2510 }
 0x344   : > { %v7022_v23 = vpop.f32.mrf.mxu1  ;;  %v7024_v3 = vpop.f32.mrf.mxu0 }
 0x345   : > { %v2560_v57 = vsel %vm925_vm2, %v7022_v23, -inf  ;;  %v2557_v60 = vsel %vm925_vm2, %v7024_v3, -inf }
 0x346   : > { %v5289_v10 = vpop.f32.mrf.mxu1  ;;  %v5283_v25 = vpop.f32.mrf.mxu0 }
 0x347   : > { %v7026_v56 = vpop.eup %5831  ;;  %v2514_v10 = vpop.xlane.xlu0 %2513 }
 0x348   : > { %v2096_v47 = vpop.f32.mrf.mxu1  ;;  %v2692_v26 = vsel %vm925_vm2, %v7026_v56, 0.0  ;;  %v2047_v46 = vpop.f32.mrf.mxu0 }
 0x349   : > { %2693 = vadd.xlane.f32.xlu0 %v2692_v26  ;;  %v2593_v47 = vsub.f32 %v6885_v4, %v2511_v24  ;;  %v2594_v26 = vsub.f32 %v6887_v30, %v2514_v10 }
 0x34a   : > { %v5290_v58 = vpop.f32.mrf.mxu1  ;;  %v5284_v29 = vpop.f32.mrf.mxu0 }
 0x34b   : > { %v7033_v36 = vpop.eup %5833  ;;  %v2631_v46 = vmul.f32 1.442695, %v2593_v47  ;;  %v2633_v28 = vmul.f32 1.442695, %v2594_v26 }
 0x34c   : > { %v2698_v44 = vsel %vm925_vm2, %v7033_v36, 0.0  ;;  %v7043_v7 = vpop.eup %5835 }
 0x34d   : > { %2561 = vmax.xlane.f32.xlu0 %v2560_v57  ;;  %v2683_v37 = vsel %vm925_vm2, %v7043_v7, 0.0  ;;  %v7049_v52 = vpop.eup %5837  ;;  %5841 = vpow2.f32 %v2631_v46 }
 0x34e   : > { %v2689_v59 = vsel %vm925_vm2, %v7049_v52, 0.0  ;;  %5843 = vpow2.f32 %v2633_v28 }
 0x34f   : > { %v7055_v2 = vpop.eup %5839 }
 0x350   : > { %v2695_v25 = vsel %vm925_vm2, %v7055_v2, 0.0 }
 0x351   : > { %2699 = vadd.xlane.f32.xlu0 %v2698_v44 }
 0x35a   : > { %v7065_v57 = vpop.eup %5841 }
 0x35b   : > { %2540 = vmax.xlane.f32.xlu1 %v2539_v50  ;;  %v7071_v4 = vpop.eup %5843  ;;  %v2701_v51 = vsel %vm925_vm2, %v7065_v57, 0.0 }
 0x35c   : > { %v2704_v50 = vsel %vm925_vm2, %v7071_v4, 0.0 }
 0x35f   : > { %2546 = vmax.xlane.f32.xlu1 %v2545_v6 }
 0x363   : > { %2684 = vadd.xlane.f32.xlu1 %v2683_v37 }
 0x367   : > { %2552 = vmax.xlane.f32.xlu1 %v2551_v35 }
 0x36b   : > { %2690 = vadd.xlane.f32.xlu1 %v2689_v59 }
 0x36f   : > { %2558 = vmax.xlane.f32.xlu1 %v2557_v60 }
 0x373   : > { %2696 = vadd.xlane.f32.xlu1 %v2695_v25  ;;  %v7085_v25 = vpop.permute.xlu0 %5734 }
 0x387   : > { %v7061_v58 = vpop.f32.mrf.mxu0  ;;  %v7063_v29 = vpop.f32.mrf.mxu1 }
 0x388   : > { %v2563_v40 = vsel %vm925_vm2, %v7061_v58, -inf  ;;  %v2566_v44 = vsel %vm925_vm2, %v7063_v29, -inf }
 0x389   : > { %v5295_v41 = vpop.f32.mrf.mxu0  ;;  %v5301_v30 = vpop.f32.mrf.mxu1  ;;  %2564 = vmax.xlane.f32.xlu1 %v2563_v40  ;;  %2567 = vmax.xlane.f32.xlu0 %v2566_v44 }
 0x38b   : > { %v2145_v54 = vpop.f32.mrf.mxu0  ;;  %v2194_v38 = vpop.f32.mrf.mxu1 }
 0x38d   : > { %v5296_v62 = vpop.f32.mrf.mxu0  ;;  %v5302_v6 = vpop.f32.mrf.mxu1  ;;  %2702 = vadd.xlane.f32.xlu1 %v2701_v51  ;;  %2705 = vadd.xlane.f32.xlu0 %v2704_v50 }
 0x38f   : > { %v7077_v37 = vpop.f32.mrf.mxu0  ;;  %v7079_v35 = vpop.f32.mrf.mxu1 }
 0x390   : > { %v2569_v59 = vsel %vm925_vm2, %v7077_v37, -inf  ;;  %v2572_v60 = vsel %vm925_vm2, %v7079_v35, -inf }
 0x391   : > { %v5307_v24 = vpop.f32.mrf.mxu0  ;;  %v5313_v10 = vpop.f32.mrf.mxu1  ;;  %2570 = vmax.xlane.f32.xlu1 %v2569_v59  ;;  %2573 = vmax.xlane.f32.xlu0 %v2572_v60 }
 0x393   : > { %v2243_v47 = vpop.f32.mrf.mxu0  ;;  %v2292_v26 = vpop.f32.mrf.mxu1 }
 0x395   : > { %v5308_v46 = vpop.f32.mrf.mxu0  ;;  %v5314_v28 = vpop.f32.mrf.mxu1 }
 0x396   : > { %v2517_v40 = vpop.xlane.xlu1 %2516  ;;  %v2520_v44 = vpop.xlane.xlu0 %2519 }
 0x397   : > { %v7087_v41 = vpop.f32.mrf.mxu1  ;;  %v2595_v30 = vsub.f32 %v6951_v1, %v2517_v40  ;;  %v7090_v54 = vpop.f32.mrf.mxu0  ;;  %v2596_v38 = vsub.f32 %v6953_v8, %v2520_v44 }
 0x398   : > { %v2575_v51 = vsel %vm925_vm2, %v7090_v54, -inf  ;;  %v2578_v50 = vsel %vm925_vm2, %v7087_v41, -inf }
 0x399   : > { %v2635_v62 = vmul.f32 1.442695, %v2595_v30  ;;  %v2637_v6 = vmul.f32 1.442695, %v2596_v38  ;;  %v5319_v59 = vpop.f32.mrf.mxu0  ;;  %v5325_v60 = vpop.f32.mrf.mxu1  ;;  %2576 = vmax.xlane.f32.xlu1 %v2575_v51  ;;  %2579 = vmax.xlane.f32.xlu0 %v2578_v50 }
 0x39b   : > { %5845 = vpow2.f32 %v2635_v62  ;;  %v2341_v24 = vpop.f32.mrf.mxu0  ;;  %v2390_v10 = vpop.f32.mrf.mxu1 }
 0x39c   : > { %5847 = vpow2.f32 %v2637_v6 }
 0x39d   : > { %v5320_v1 = vpop.f32.mrf.mxu0  ;;  %v5326_v47 = vpop.f32.mrf.mxu1 }
 0x39f   : > { %v7097_v26 = vpop.f32.mrf.mxu1  ;;  %v2523_v8 = vpop.xlane.xlu1 %2522 }
 0x3a0   : > { %v2597_v46 = vsub.f32 %v6961_v12, %v2523_v8  ;;  %v7100_v28 = vpop.f32.mrf.mxu0  ;;  %v2526_v40 = vpop.xlane.xlu0 %2525  ;;  %v2584_v44 = vsel %vm925_vm2, %v7097_v26, -inf }
 0x3a1   : > { %v2598_v30 = vsub.f32 %v6963_v63, %v2526_v40  ;;  %v5337_v38 = vpop.f32.mrf.mxu1  ;;  %v2581_v51 = vsel %vm925_vm2, %v7100_v28, -inf  ;;  %2585 = vmax.xlane.f32.xlu0 %v2584_v44 }
 0x3a2   : > { %v2639_v50 = vmul.f32 1.442695, %v2597_v46  ;;  %v5331_v62 = vpop.f32.mrf.mxu0  ;;  %2582 = vmax.xlane.f32.xlu1 %v2581_v51 }
 0x3a3   : > { %v2641_v6 = vmul.f32 1.442695, %v2598_v30  ;;  %v2488_v59 = vpop.f32.mrf.mxu1 }
 0x3a4   : > { %5849 = vpow2.f32 %v2639_v50  ;;  %v2439_v12 = vpop.f32.mrf.mxu0 }
 0x3a5   : > { %5851 = vpow2.f32 %v2641_v6  ;;  %v5338_v60 = vpop.f32.mrf.mxu1 }
 0x3a6   : > { %v5332_v24 = vpop.f32.mrf.mxu0 }
 0x3a7   : > { %v2529_v10 = vpop.xlane.xlu1 %2528  ;;  %v2532_v1 = vpop.xlane.xlu0 %2531 }
 0x3a8   : > { %v7107_v47 = vpop.eup %5845  ;;  %v2599_v63 = vsub.f32 %v6971_v22, %v2529_v10  ;;  %v2600_v8 = vsub.f32 %v6973_v39, %v2532_v1 }
 0x3a9   : > { %v7111_v40 = vpop.eup %5847  ;;  %v2707_v46 = vsel %vm925_vm2, %v7107_v47, 0.0 }
 0x3aa   : > { %v2643_v44 = vmul.f32 1.442695, %v2599_v63  ;;  %v2645_v30 = vmul.f32 1.442695, %v2600_v8  ;;  %2708 = vadd.xlane.f32.xlu1 %v2707_v46  ;;  %v2710_v38 = vsel %vm925_vm2, %v7111_v40, 0.0 }
 0x3ab   : > { %2711 = vadd.xlane.f32.xlu0 %v2710_v38 }
 0x3ac   : > { %5853 = vpow2.f32 %v2643_v44 }
 0x3ad   : > { %5855 = vpow2.f32 %v2645_v30 }
 0x3af   : > { %v2535_v51 = vpop.xlane.xlu1 %2534  ;;  %v2538_v50 = vpop.xlane.xlu0 %2537 }
 0x3b0   : > { %v2601_v22 = vsub.f32 %v6983_v34, %v2535_v51  ;;  %v2602_v39 = vsub.f32 %v6985_v32, %v2538_v50 }
 0x3b1   : > { %v7119_v62 = vpop.eup %5849 }
 0x3b2   : > { %v7121_v6 = vpop.eup %5851  ;;  %v2647_v59 = vmul.f32 1.442695, %v2601_v22  ;;  %v2649_v12 = vmul.f32 1.442695, %v2602_v39  ;;  %v2713_v60 = vsel %vm925_vm2, %v7119_v62, 0.0 }
 0x3b3   : > { %2714 = vadd.xlane.f32.xlu1 %v2713_v60  ;;  %v2716_v24 = vsel %vm925_vm2, %v7121_v6, 0.0 }
 0x3b4   : > { %5857 = vpow2.f32 %v2647_v59  ;;  %2717 = vadd.xlane.f32.xlu0 %v2716_v24 }
 0x3b5   : > { %5859 = vpow2.f32 %v2649_v12 }
 0x3b7   : > { %v2544_v10 = vpop.xlane.xlu0 %2543 }
 0x3b8   : > { %v2604_v34 = vsub.f32 %v6998_v49, %v2544_v10  ;;  %v893_v10 = vpack.c.bf16 %v6691_v5, %v6691_v5  ;;  %v895_v5 = vpack.c.bf16 %v6707_v14, %v6707_v14 }
 0x3b9   : > { %v7128_v32 = vpop.eup %5853 }
 0x3ba   : > { %v7130_v1 = vpop.eup %5855  ;;  %v2653_v63 = vmul.f32 1.442695, %v2604_v34  ;;  %v2719_v8 = vsel %vm925_vm2, %v7128_v32, 0.0 }
 0x3bb   : > { %2720 = vadd.xlane.f32.xlu1 %v2719_v8  ;;  %v2722_v46 = vsel %vm925_vm2, %v7130_v1, 0.0  ;;  %v3018_v8 = vsel %vm2878_vm3, %v893_v10, 0 }
 0x3bc   : > { %5861 = vpow2.f32 %v2653_v63  ;;  %2723 = vadd.xlane.f32.xlu0 %v2722_v46 }
 0x3bf   : > { %v2550_v30 = vpop.xlane.xlu0 %2549 }
 0x3c0   : > { %v2606_v10 = vsub.f32 %v7004_v43, %v2550_v30 }
 0x3c1   : > { %v7136_v44 = vpop.eup %5857 }
 0x3c2   : > { %v2725_v49 = vsel %vm925_vm2, %v7136_v44, 0.0  ;;  %v7140_v38 = vpop.eup %5859 }
 0x3c3   : > { %2726 = vadd.xlane.f32.xlu0 %v2725_v49  ;;  %v2728_v50 = vsel %vm925_vm2, %v7140_v38, 0.0 }
 0x3c6   : > { %v2688_v51 = vpop.xlane.xlu0 %2687 }
 0x3c7   : > { %5863 = vrcp.f32 %v2688_v51  ;;  %2729 = vadd.xlane.f32.xlu0 %v2728_v50  ;;  %v7156_v51 = vpop.permute.xlu1 %5739 }
 0x3c9   : > { %v7144_v22 = vpop.eup %5861 }
 0x3ca   : > { %v2734_v39 = vsel %vm925_vm2, %v7144_v22, 0.0  ;;  %v2556_v59 = vpop.xlane.xlu0 %2555 }
 0x3cb   : > { %2735 = vadd.xlane.f32.xlu0 %v2734_v39  ;;  %v2608_v50 = vsub.f32 %v7014_v45, %v2556_v59 }
 0x3d2   : > { %v2694_v12 = vpop.xlane.xlu0 %2693 }
 0x3d3   : > { %5865 = vrcp.f32 %v2694_v12 }
 0x3d4   : > { %v5864_v60 = vpop.eup %5863 }
 0x3d5   : > { %v2812_v24 = vmul.f32 %v5864_v60, %v7012_v42 }
 0x3d6   : > { %v2562_v34 = vpop.xlane.xlu0 %2561 }
 0x3d7   : > { %v2844_v63 = vpack.c.bf16 %v2812_v24, %v2812_v24  ;;  %v3110_v24 = vsel %vm2878_vm3, %v895_v5, 0  ;;  %v2610_v14 = vsub.f32 %v7022_v23, %v2562_v34 }
 0x3d9   : > { %5348 = vmatmul.mubr.msk.bf16.vlgmr.msra.gmra.mxu1 %vm925_vm2, %v2844_v63  ;;  %v2665_v43 = vmul.f32 1.442695, %v2610_v14 }
 0x3da   : > { %5358 = vmatpush3.bf16.msra.mxu1 %v3018_v8  ;;  %v2700_v46 = vpop.xlane.xlu0 %2699  ;;  %5359 = vmatprep.mubr.msk.bf16.mxu1 %vm6204_vm1, %v6202_v55 }
 0x3db   : > { %5369 = vmatprep.subr.bf16.mxu1 %v6202_v55  ;;  %5867 = vrcp.f32 %v2700_v46  ;;  %v897_v46 = vpack.c.bf16 %v6711_v16, %v6711_v16 }
 0x3dd   : > { %v3202_v23 = vsel %vm2878_vm3, %v897_v46, 0 }
 0x3e0   : > { %v5866_v49 = vpop.eup %5865 }
 0x3e1   : > { %v2814_v42 = vmul.f32 %v5866_v49, %v7026_v56  ;;  %v2661_v56 = vmul.f32 1.442695, %v2608_v50  ;;  %v2657_v49 = vmul.f32 1.442695, %v2606_v10 }
 0x3e3   : > { %v2846_v39 = vpack.c.bf16 %v2814_v42, %v2814_v42 }
 0x3e4   : > { %v2541_v12 = vpop.xlane.xlu1 %2540 }
 0x3e5   : > { %v2603_v60 = vsub.f32 %v6996_v48, %v2541_v12  ;;  %5360 = vmatmul.mubr.msk.bf16.vlgmr.msra.gmra.mxu1 %vm925_vm2, %v2846_v39 }
 0x3e6   : > { %5370 = vmatpush3.bf16.msra.mxu1 %v3110_v24  ;;  %5371 = vmatprep.mubr.msk.bf16.mxu1 %vm6204_vm1, %v6202_v55 }
 0x3e7   : > { %v2651_v63 = vmul.f32 1.442695, %v2603_v60  ;;  %5381 = vmatprep.subr.bf16.mxu1 %v6202_v55 }
 0x3e8   : > { %v2547_v45 = vpop.xlane.xlu1 %2546  ;;  %v5868_v59 = vpop.eup %5867 }
 0x3e9   : > { %5869 = vpow2.f32 %v2651_v63  ;;  %v2605_v48 = vsub.f32 %v7002_v21, %v2547_v45  ;;  %v2816_v8 = vmul.f32 %v5868_v59, %v7033_v36 }
 0x3ea   : > { %5871 = vpow2.f32 %v2661_v56 }
 0x3eb   : > { %v2655_v42 = vmul.f32 1.442695, %v2605_v48  ;;  %v2848_v5 = vpack.c.bf16 %v2816_v8, %v2816_v8 }
 0x3ec   : > { %v2685_v30 = vpop.xlane.xlu1 %2684 }
 0x3ed   : > { %5873 = vpow2.f32 %v2655_v42  ;;  %5372 = vmatmul.mubr.msk.bf16.vlgmr.msra.gmra.mxu1 %vm925_vm2, %v2848_v5 }
 0x3ee   : > { %5875 = vrcp.f32 %v2685_v30  ;;  %5382 = vmatpush3.bf16.msra.mxu1 %v3202_v23  ;;  %5383 = vmatprep.mubr.msk.bf16.mxu1 %vm6204_vm1, %v6202_v55  ;;  %v894_v23 = vpack.c.bf16 %v6705_v13, %v6705_v13 }
 0x3ef   : > { %5877 = vpow2.f32 %v2657_v49  ;;  %5393 = vmatprep.subr.bf16.mxu1 %v6202_v55 }
 0x3f0   : > { %5879 = vpow2.f32 %v2665_v43  ;;  %v2553_v21 = vpop.xlane.xlu1 %2552 }
 0x3f1   : > { %v2607_v16 = vsub.f32 %v7018_v19, %v2553_v21 }
 0x3f3   : > { %v2659_v36 = vmul.f32 1.442695, %v2607_v16  ;;  %v3064_v16 = vsel %vm2878_vm3, %v894_v23, 0 }
 0x3f4   : > { %v2691_v34 = vpop.xlane.xlu1 %2690 }
 0x3f5   : > { %5881 = vpow2.f32 %v2659_v36 }
 0x3f6   : > { %v7180_v50 = vpop.eup %5869  ;;  %5883 = vrcp.f32 %v2691_v34 }
 0x3f7   : > { %v2731_v39 = vsel %vm925_vm2, %v7180_v50, 0.0  ;;  %v7184_v12 = vpop.eup %5871 }
 0x3f8   : > { %2732 = vadd.xlane.f32.xlu1 %v2731_v39  ;;  %v2559_v60 = vpop.xlane.xlu1 %2558  ;;  %v2746_v14 = vsel %vm925_vm2, %v7184_v12, 0.0  ;;  %v896_v39 = vpack.c.bf16 %v6709_v15, %v6709_v15 }
 0x3f9   : > { %v2609_v24 = vsub.f32 %v7024_v3, %v2559_v60  ;;  %v892_v3 = vpack.c.bf16 %v6689_v0, %v6689_v0 }
 0x3fa   : > { %v7187_v10 = vpop.eup %5873 }
 0x3fb   : > { %v5876_v56 = vpop.eup %5875  ;;  %v2663_v63 = vmul.f32 1.442695, %v2609_v24  ;;  %v2737_v19 = vsel %vm925_vm2, %v7187_v10, 0.0  ;;  %v2972_v42 = vsel %vm2878_vm3, %v892_v3, 0  ;;  %v3156_v24 = vsel %vm2878_vm3, %v896_v39, 0 }
 0x3fc   : > { %v7193_v45 = vpop.eup %5877  ;;  %v2697_v59 = vpop.xlane.xlu1 %2696  ;;  %2738 = vadd.xlane.f32.xlu0 %v2737_v19  ;;  %2747 = vadd.xlane.f32.xlu1 %v2746_v14  ;;  %v2811_v48 = vmul.f32 %v5876_v56, %v7043_v7 }
 0x3fd   : > { %v7198_v8 = vpop.eup %5879  ;;  %5885 = vpow2.f32 %v2663_v63  ;;  %v2740_v49 = vsel %vm925_vm2, %v7193_v45, 0.0 }
 0x3fe   : > { %5887 = vrcp.f32 %v2697_v59  ;;  %v2843_v46 = vpack.c.bf16 %v2811_v48, %v2811_v48  ;;  %v2752_v43 = vsel %vm925_vm2, %v7198_v8, 0.0 }
 0x400   : > { %5342 = vmatmul.mubr.msk.bf16.vlgmr.msra.gmra.mxu0 %vm925_vm2, %v2843_v46  ;;  %2741 = vadd.xlane.f32.xlu0 %v2740_v49  ;;  %v5707_v46 = vunpack.i.h.bf16 %v6959_v61 }
 0x401   : > { %5352 = vmatpush3.bf16.msra.mxu0 %v2972_v42  ;;  %2753 = vadd.xlane.f32.xlu1 %v2752_v43 }
 0x402   : > { %v7206_v7 = vpop.eup %5881  ;;  %5353 = vmatprep.mubr.msk.bf16.mxu0 %vm6204_vm1, %v6202_v55  ;;  %5363 = vmatprep.subr.bf16.mxu0 %v6202_v55  ;;  %v899_v23 = vpack.c.bf16 %v5707_v46, %v5707_v46 }
 0x403   : > { %v5884_v0 = vpop.eup %5883  ;;  %v2743_v30 = vsel %vm925_vm2, %v7206_v7, 0.0 }
 0x404   : > { %2744 = vadd.xlane.f32.xlu0 %v2743_v30  ;;  %v2813_v5 = vmul.f32 %v5884_v0, %v7049_v52 }
 0x406   : > { %v2845_v21 = vpack.c.bf16 %v2813_v5, %v2813_v5 }
 0x408   : > { %5354 = vmatmul.mubr.msk.bf16.vlgmr.msra.gmra.mxu0 %vm925_vm2, %v2845_v21 }
 0x409   : > { %5364 = vmatpush3.bf16.msra.mxu0 %v3064_v16  ;;  %5365 = vmatprep.mubr.msk.bf16.mxu0 %vm6204_vm1, %v6202_v55 }
 0x40a   : > { %v7220_v36 = vpop.eup %5885  ;;  %5375 = vmatprep.subr.bf16.mxu0 %v6202_v55 }
 0x40b   : > { %v5888_v34 = vpop.eup %5887  ;;  %v2749_v52 = vsel %vm925_vm2, %v7220_v36, 0.0 }
 0x40c   : > { %2750 = vadd.xlane.f32.xlu0 %v2749_v52  ;;  %v2815_v13 = vmul.f32 %v5888_v34, %v7055_v2 }
 0x40e   : > { %v2847_v60 = vpack.c.bf16 %v2815_v13, %v2815_v13 }
 0x410   : > { %5366 = vmatmul.mubr.msk.bf16.vlgmr.msra.gmra.mxu0 %vm925_vm2, %v2847_v60 }
 0x411   : > { %5376 = vmatpush3.bf16.msra.mxu0 %v3156_v24  ;;  %5377 = vmatprep.mubr.msk.bf16.mxu0 %vm6204_vm1, %v6202_v55 }
 0x412   : > { %5749 = vrot.lane.b32.xlu1 %v6699_v9, %s6207_s23  ;;  %v2565_v56 = vpop.xlane.xlu1 %2564  ;;  %v2568_v63 = vpop.xlane.xlu0 %2567  ;;  %5387 = vmatprep.subr.bf16.mxu0 %v6202_v55  ;;  %v5706_v9 = vunpack.i.l.bf16 %v6959_v61 }
 0x413   : > { %v2612_v15 = vsub.f32 %v7063_v29, %v2568_v63 }
 0x414   : > { %v898_v30 = vpack.c.bf16 %v5706_v9, %v5706_v9 }
 0x415   : > { %v2669_v59 = vmul.f32 1.442695, %v2612_v15 }
 0x416   : > { %v2703_v2 = vpop.xlane.xlu1 %2702  ;;  %v2706_v19 = vpop.xlane.xlu0 %2705 }
 0x417   : > { %5889 = vrcp.f32 %v2703_v2 }
 0x418   : > { %5891 = vrcp.f32 %v2706_v19 }
 0x419   : > { %5893 = vpow2.f32 %v2669_v59 }
 0x41a   : > { %v2574_v14 = vpop.xlane.xlu0 %2573  ;;  %v2571_v29 = vpop.xlane.xlu1 %2570 }
 0x41b   : > { %v2614_v48 = vsub.f32 %v7079_v35, %v2574_v14  ;;  %v2611_v35 = vsub.f32 %v7061_v58, %v2565_v56  ;;  %v2613_v52 = vsub.f32 %v7077_v37, %v2571_v29  ;;  %v3294_v58 = vsel %vm2878_vm3, %v899_v23, 0 }
 0x41d   : > { %v2673_v49 = vmul.f32 1.442695, %v2614_v48  ;;  %v2671_v37 = vmul.f32 1.442695, %v2613_v52 }
 0x41f   : > { %5895 = vpow2.f32 %v2673_v49 }
 0x422   : > { %5744 = vrot.lane.b32.xlu0 %v6703_v11, %s6207_s23  ;;  %v2580_v3 = vpop.xlane.xlu0 %2579  ;;  %v2577_v13 = vpop.xlane.xlu1 %2576 }
 0x423   : > { %v2616_v42 = vsub.f32 %v7087_v41, %v2580_v3  ;;  %v3248_v41 = vsel %vm2878_vm3, %v898_v30, 0 }
 0x424   : > { %v5890_v43 = vpop.eup %5889 }
 0x425   : > { %v5892_v0 = vpop.eup %5891  ;;  %v2817_v5 = vmul.f32 %v5890_v43, %v7065_v57  ;;  %v2677_v21 = vmul.f32 1.442695, %v2616_v42  ;;  %v2667_v57 = vmul.f32 1.442695, %v2611_v35  ;;  %v5711_v42 = vunpack.i.l.bf16 %v6981_v33 }
 0x426   : > { %v2818_v11 = vmul.f32 %v5892_v0, %v7071_v4  ;;  %v7258_v24 = vpop.eup %5893  ;;  %v5712_v43 = vunpack.i.h.bf16 %v6981_v33 }
 0x427   : > { %v2849_v16 = vpack.c.bf16 %v2817_v5, %v2817_v5  ;;  %5897 = vpow2.f32 %v2677_v21  ;;  %v2758_v15 = vsel %vm925_vm2, %v7258_v24, 0.0  ;;  %v900_v35 = vpack.c.bf16 %v5711_v42, %v5711_v42 }
 0x428   : > { %v2850_v34 = vpack.c.bf16 %v2818_v11, %v2818_v11  ;;  %5899 = vpow2.f32 %v2667_v57  ;;  %v901_v21 = vpack.c.bf16 %v5712_v43, %v5712_v43  ;;  %v5717_v57 = vunpack.i.h.bf16 %v6969_v20 }
 0x429   : > { %5378 = vmatmul.mubr.msk.bf16.vlgmr.msra.gmra.mxu0 %vm925_vm2, %v2849_v16 }
 0x42a   : > { %v2586_v61 = vpop.xlane.xlu0 %2585  ;;  %5384 = vmatmul.mubr.msk.bf16.vlgmr.msra.gmra.mxu1 %vm925_vm2, %v2850_v34  ;;  %5388 = vmatpush3.bf16.msra.mxu0 %v3248_v41 }
 0x42b   : > { %v2618_v39 = vsub.f32 %v7097_v26, %v2586_v61  ;;  %5394 = vmatpush3.bf16.msra.mxu1 %v3294_v58  ;;  %5389 = vmatprep.mubr.msk.bf16.mxu0 %vm6204_vm1, %v6202_v55  ;;  %v2583_v60 = vpop.xlane.xlu1 %2582  ;;  %v2615_v26 = vsub.f32 %v7090_v54, %v2577_v13 }
 0x42c   : > { %5395 = vmatprep.mubr.msk.bf16.mxu1 %vm6204_vm1, %v6202_v55  ;;  %5399 = vmatprep.subr.bf16.mxu0 %v6202_v55  ;;  %v2617_v2 = vsub.f32 %v7100_v28, %v2583_v60  ;;  %v7263_v14 = vpop.eup %5895 }
 0x42d   : > { %v2681_v4 = vmul.f32 1.442695, %v2618_v39  ;;  %5405 = vmatprep.subr.bf16.mxu1 %v6202_v55  ;;  %v2675_v63 = vmul.f32 1.442695, %v2615_v26  ;;  %v2764_v54 = vsel %vm925_vm2, %v7263_v14, 0.0  ;;  %v3340_v39 = vsel %vm2878_vm3, %v900_v35, 0 }
 0x42e   : > { %v2679_v59 = vmul.f32 1.442695, %v2617_v2 }
 0x42f   : > { %5901 = vpow2.f32 %v2681_v4 }
 0x430   : > { %5903 = vpow2.f32 %v2671_v37 }
 0x433   : > { %v2709_v56 = vpop.xlane.xlu1 %2708 }
 0x434   : > { %5905 = vrcp.f32 %v2709_v56  ;;  %v2712_v19 = vpop.xlane.xlu0 %2711  ;;  %v7267_v48 = vpop.eup %5897  ;;  %v903_v56 = vpack.c.bf16 %v5717_v57, %v5717_v57 }
 0x435   : > { %5907 = vrcp.f32 %v2712_v19  ;;  %v7269_v28 = vpop.eup %5899  ;;  %v2770_v46 = vsel %vm925_vm2, %v7267_v48, 0.0 }
 0x436   : > { %2759 = vadd.xlane.f32.xlu1 %v2758_v15  ;;  %5909 = vpow2.f32 %v2675_v63  ;;  %v2755_v30 = vsel %vm925_vm2, %v7269_v28, 0.0 }
 0x437   : > { %5911 = vpow2.f32 %v2679_v59 }
 0x43a   : > { %2765 = vadd.xlane.f32.xlu1 %v2764_v54  ;;  %v5721_v54 = vunpack.i.l.bf16 %v6979_v27 }
 0x43c   : > { %v2715_v3 = vpop.xlane.xlu1 %2714  ;;  %v7273_v49 = vpop.eup %5901  ;;  %v904_v43 = vpack.c.bf16 %v5721_v54, %v5721_v54 }
 0x43d   : > { %5913 = vrcp.f32 %v2715_v3  ;;  %v2718_v9 = vpop.xlane.xlu0 %2717  ;;  %v7277_v0 = vpop.eup %5903  ;;  %v2776_v5 = vsel %vm925_vm2, %v7273_v49, 0.0 }
 0x43e   : > { %5915 = vrcp.f32 %v2718_v9  ;;  %2771 = vadd.xlane.f32.xlu1 %v2770_v46  ;;  %v2761_v33 = vsel %vm925_vm2, %v7277_v0, 0.0  ;;  %v5722_v9 = vunpack.i.h.bf16 %v6979_v27 }
 0x441   : > { %v5906_v29 = vpop.eup %5905  ;;  %2756 = vadd.xlane.f32.xlu0 %v2755_v30  ;;  %v905_v30 = vpack.c.bf16 %v5722_v9, %v5722_v9  ;;  %v5736_v9 = vunpack.i.l.bf16 %v7085_v25 }
 0x442   : > { %v5908_v23 = vpop.eup %5907  ;;  %2777 = vadd.xlane.f32.xlu1 %v2776_v5  ;;  %v2819_v11 = vmul.f32 %v5906_v29, %v7107_v47  ;;  %v5716_v47 = vunpack.i.l.bf16 %v6969_v20 }
 0x443   : > { %v2820_v16 = vmul.f32 %v5908_v23, %v7111_v40  ;;  %v7287_v52 = vpop.eup %5909  ;;  %v3386_v40 = vsel %vm2878_vm3, %v901_v21, 0  ;;  %v3524_v21 = vsel %vm2878_vm3, %v904_v43, 0 }
 0x444   : > { %v2721_v34 = vpop.xlane.xlu1 %2720  ;;  %v2851_v61 = vpack.c.bf16 %v2819_v11, %v2819_v11  ;;  %v2767_v58 = vsel %vm925_vm2, %v7287_v52, 0.0  ;;  %v7299_v4 = vpop.eup %5911  ;;  %v902_v20 = vpack.c.bf16 %v5716_v47, %v5716_v47  ;;  %v5726_v11 = vunpack.i.l.bf16 %v6993_v53 }
 0x445   : > { %5917 = vrcp.f32 %v2721_v34  ;;  %v2724_v13 = vpop.xlane.xlu0 %2723  ;;  %2762 = vadd.xlane.f32.xlu0 %v2761_v33  ;;  %v2852_v41 = vpack.c.bf16 %v2820_v16, %v2820_v16  ;;  %v2773_v2 = vsel %vm925_vm2, %v7299_v4, 0.0 }
 0x446   : > { %5919 = vrcp.f32 %v2724_v13  ;;  %5390 = vmatmul.mubr.msk.bf16.vlgmr.msra.gmra.mxu0 %vm925_vm2, %v2851_v61  ;;  %v3432_v3 = vsel %vm2878_vm3, %v902_v20, 0  ;;  %v906_v16 = vpack.c.bf16 %v5726_v11, %v5726_v11  ;;  %v5741_v11 = vunpack.i.l.bf16 %v7156_v51 }
 0x447   : > { %5396 = vmatmul.mubr.msk.bf16.vlgmr.msra.gmra.mxu1 %vm925_vm2, %v2852_v41  ;;  %5400 = vmatpush3.bf16.msra.mxu0 %v3340_v39 }
 0x448   : > { %5406 = vmatpush3.bf16.msra.mxu1 %v3386_v40  ;;  %5401 = vmatprep.mubr.msk.bf16.mxu0 %vm6204_vm1, %v6202_v55  ;;  %v3616_v41 = vsel %vm2878_vm3, %v906_v16, 0  ;;  %v912_v16 = vpack.c.bf16 %v5741_v11, %v5741_v11 }
 0x449   : > { %2768 = vadd.xlane.f32.xlu0 %v2767_v58  ;;  %5407 = vmatprep.mubr.msk.bf16.mxu1 %vm6204_vm1, %v6202_v55 }
 0x44a   : > { %v5914_v37 = vpop.eup %5913  ;;  %5411 = vmatprep.subr.bf16.mxu0 %v6202_v55  ;;  %5417 = vmatprep.subr.bf16.mxu1 %v6202_v55 }
 0x44b   : > { %v5916_v60 = vpop.eup %5915  ;;  %v2821_v26 = vmul.f32 %v5914_v37, %v7119_v62  ;;  %v3478_v62 = vsel %vm2878_vm3, %v903_v56, 0 }
 0x44c   : > { %v2727_v63 = vpop.xlane.xlu0 %2726  ;;  %v2822_v19 = vmul.f32 %v5916_v60, %v7121_v6 }
 0x44d   : > { %5921 = vrcp.f32 %v2727_v63  ;;  %2774 = vadd.xlane.f32.xlu0 %v2773_v2  ;;  %v2853_v15 = vpack.c.bf16 %v2821_v26, %v2821_v26 }
 0x44e   : > { %v2854_v59 = vpack.c.bf16 %v2822_v19, %v2822_v19 }
 0x44f   : > { %5402 = vmatmul.mubr.msk.bf16.vlgmr.msra.gmra.mxu0 %vm925_vm2, %v2853_v15 }
 0x450   : > { %5408 = vmatmul.mubr.msk.bf16.vlgmr.msra.gmra.mxu1 %vm925_vm2, %v2854_v59  ;;  %5412 = vmatpush3.bf16.msra.mxu0 %v3432_v3  ;;  %v2730_v46 = vpop.xlane.xlu0 %2729  ;;  %v5737_v3 = vunpack.i.h.bf16 %v7085_v25 }
 0x451   : > { %5418 = vmatpush3.bf16.msra.mxu1 %v3478_v62  ;;  %5923 = vrcp.f32 %v2730_v46  ;;  %5413 = vmatprep.mubr.msk.bf16.mxu0 %vm6204_vm1, %v6202_v55 }
 0x452   : > { %v5918_v6 = vpop.eup %5917  ;;  %5419 = vmatprep.mubr.msk.bf16.mxu1 %vm6204_vm1, %v6202_v55  ;;  %5423 = vmatprep.subr.bf16.mxu0 %v6202_v55 }
 0x453   : > { %v5920_v42 = vpop.eup %5919  ;;  %5759 = vrot.lane.b32.xlu1 %v6719_v18, %s6207_s23  ;;  %5429 = vmatprep.subr.bf16.mxu1 %v6202_v55  ;;  %v2823_v27 = vmul.f32 %v5918_v6, %v7128_v32  ;;  %v3570_v18 = vsel %vm2878_vm3, %v905_v30, 0  ;;  %v911_v6 = vpack.c.bf16 %v5737_v3, %v5737_v3 }
 0x454   : > { %v2736_v29 = vpop.xlane.xlu0 %2735  ;;  %v2824_v5 = vmul.f32 %v5920_v42, %v7130_v1  ;;  %v5727_v1 = vunpack.i.h.bf16 %v6993_v53  ;;  %v910_v42 = vpack.c.bf16 %v5736_v9, %v5736_v9 }
 0x455   : > { %5925 = vrcp.f32 %v2736_v29  ;;  %v2855_v23 = vpack.c.bf16 %v2823_v27, %v2823_v27 }
 0x456   : > { %v2856_v35 = vpack.c.bf16 %v2824_v5, %v2824_v5  ;;  %v907_v13 = vpack.c.bf16 %v5727_v1, %v5727_v1 }
 0x457   : > { %5414 = vmatmul.mubr.msk.bf16.vlgmr.msra.gmra.mxu0 %vm925_vm2, %v2855_v23 }
 0x458   : > { %5420 = vmatmul.mubr.msk.bf16.vlgmr.msra.gmra.mxu1 %vm925_vm2, %v2856_v35  ;;  %5424 = vmatpush3.bf16.msra.mxu0 %v3524_v21  ;;  %v3662_v40 = vsel %vm2878_vm3, %v907_v13, 0  ;;  %v5742_v35 = vunpack.i.h.bf16 %v7156_v51  ;;  %v3846_v21 = vsel %vm2878_vm3, %v911_v6, 0 }
 0x459   : > { %5430 = vmatpush3.bf16.msra.mxu1 %v3570_v18  ;;  %5425 = vmatprep.mubr.msk.bf16.mxu0 %vm6204_vm1, %v6202_v55 }
 0x45a   : > { %v5922_v32 = vpop.eup %5921  ;;  %5435 = vmatprep.subr.bf16.mxu0 %v6202_v55  ;;  %5431 = vmatprep.mubr.msk.bf16.mxu1 %vm6204_vm1, %v6202_v55  ;;  %v913_v1 = vpack.c.bf16 %v5742_v35, %v5742_v35 }
 0x45b   : > { %v2825_v34 = vmul.f32 %v5922_v32, %v7136_v44  ;;  %5441 = vmatprep.subr.bf16.mxu1 %v6202_v55  ;;  %v5732_v44 = vunpack.i.h.bf16 %v6987_v31 }
 0x45d   : > { %v2857_v33 = vpack.c.bf16 %v2825_v34, %v2825_v34  ;;  %v909_v57 = vpack.c.bf16 %v5732_v44, %v5732_v44 }
 0x45e   : > { %v5924_v61 = vpop.eup %5923 }
 0x45f   : > { %5426 = vmatmul.mubr.msk.bf16.vlgmr.msra.gmra.mxu0 %vm925_vm2, %v2857_v33  ;;  %v2826_v39 = vmul.f32 %v5924_v61, %v7140_v38  ;;  %v3754_v37 = vsel %vm2878_vm3, %v909_v57, 0 }
 0x460   : > { %5436 = vmatpush3.bf16.msra.mxu0 %v3616_v41  ;;  %5437 = vmatprep.mubr.msk.bf16.mxu0 %vm6204_vm1, %v6202_v55 }
 0x461   : > { %v2858_v47 = vpack.c.bf16 %v2826_v39, %v2826_v39  ;;  %5447 = vmatprep.subr.bf16.mxu0 %v6202_v55 }
 0x462   : > { %v5926_v53 = vpop.eup %5925 }
 0x463   : > { %5754 = vrot.lane.b32.xlu0 %v6715_v17, %s6207_s23  ;;  %5432 = vmatmul.mubr.msk.bf16.vlgmr.msra.gmra.mxu1 %vm925_vm2, %v2858_v47  ;;  %v2828_v38 = vmul.f32 %v5926_v53, %v7144_v22  ;;  %v5731_v22 = vunpack.i.l.bf16 %v6987_v31  ;;  %v3938_v47 = vsel %vm2878_vm3, %v913_v1, 0  ;;  %s7602_s23 = scalar_lea.hbm %s7660_s10, %s4976_s2 }
 0x464   : > { %5442 = vmatpush3.bf16.msra.mxu1 %v3662_v40  ;;  %5443 = vmatprep.mubr.msk.bf16.mxu1 %vm6204_vm1, %v6202_v55 }
 0x465   : > { %5453 = vmatprep.subr.bf16.mxu1 %v6202_v55  ;;  %v2860_v58 = vpack.c.bf16 %v2828_v38, %v2828_v38  ;;  %v908_v2 = vpack.c.bf16 %v5731_v22, %v5731_v22 }
 0x467   : > { %v3708_v62 = vsel %vm2878_vm3, %v908_v2, 0 }
 0x46b   : > { %5444 = vmatmul.mubr.msk.bf16.vlgmr.msra.gmra.mxu1 %vm925_vm2, %v2860_v58 }
 0x46c   : > { %5454 = vmatpush3.bf16.msra.mxu1 %v3754_v37  ;;  %5455 = vmatprep.mubr.msk.bf16.mxu1 %vm6204_vm1, %v6202_v55 }
 0x46d   : > { %5465 = vmatprep.subr.bf16.mxu1 %v6202_v55 }
 0x481   : > { %v2733_v17 = vpop.xlane.xlu1 %2732 }
 0x482   : > { %5927 = vrcp.f32 %v2733_v17 }
 0x485   : > { %v2739_v60 = vpop.xlane.xlu0 %2738  ;;  %v2748_v26 = vpop.xlane.xlu1 %2747 }
 0x486   : > { %5929 = vrcp.f32 %v2739_v60 }
 0x489   : > { %v2742_v20 = vpop.xlane.xlu0 %2741 }
 0x48a   : > { %5931 = vrcp.f32 %v2742_v20  ;;  %v2754_v15 = vpop.xlane.xlu1 %2753 }
 0x48b   : > { %5933 = vrcp.f32 %v2748_v26 }
 0x48d   : > { %v2745_v56 = vpop.xlane.xlu0 %2744 }
 0x48e   : > { %5935 = vrcp.f32 %v2745_v56  ;;  %v5750_v2 = vpop.permute.xlu1 %5749 }
 0x48f   : > { %v5928_v63 = vpop.eup %5927  ;;  %5937 = vrcp.f32 %v2754_v15 }
 0x490   : > { %v2827_v19 = vmul.f32 %v5928_v63, %v7180_v50 }
 0x492   : > { %v2859_v59 = vpack.c.bf16 %v2827_v19, %v2827_v19 }
 0x493   : > { %v5930_v54 = vpop.eup %5929 }
 0x494   : > { %5438 = vmatmul.mubr.msk.bf16.vlgmr.msra.gmra.mxu0 %vm925_vm2, %v2859_v59  ;;  %v2829_v50 = vmul.f32 %v5930_v54, %v7187_v10  ;;  %v3800_v10 = vsel %vm2878_vm3, %v910_v42, 0 }
 0x495   : > { %5448 = vmatpush3.bf16.msra.mxu0 %v3708_v62  ;;  %v2751_v31 = vpop.xlane.xlu0 %2750  ;;  %5449 = vmatprep.mubr.msk.bf16.mxu0 %vm6204_vm1, %v6202_v55 }
 0x496   : > { %5939 = vrcp.f32 %v2751_v31  ;;  %5459 = vmatprep.subr.bf16.mxu0 %v6202_v55  ;;  %v2861_v29 = vpack.c.bf16 %v2829_v50, %v2829_v50  ;;  %v5752_v50 = vunpack.i.h.bf16 %v5750_v2 }
 0x497   : > { %v5932_v46 = vpop.eup %5931 }
 0x498   : > { %v2830_v25 = vmul.f32 %v5932_v46, %v7193_v45  ;;  %v5934_v27 = vpop.eup %5933 }
 0x499   : > { %v7369_v43 = vpop.f32.mrf.mxu1  ;;  %v2832_v18 = vmul.f32 %v5934_v27, %v7184_v12  ;;  %v5745_v34 = vpop.permute.xlu0 %5744  ;;  %v917_v27 = vpack.c.bf16 %v5752_v50, %v5752_v50 }
 0x49a   : > { %v2862_v30 = vpack.c.bf16 %v2830_v25, %v2830_v25  ;;  %v5747_v41 = vunpack.i.h.bf16 %v5745_v34  ;;  %v5746_v39 = vunpack.i.l.bf16 %v5745_v34 }
 0x49b   : > { %v5936_v5 = vpop.eup %5935  ;;  %v5349_v23 = vpop.f32.mrf.mxu1  ;;  %v2864_v61 = vpack.c.bf16 %v2832_v18, %v2832_v18 }
 0x49c   : > { %5450 = vmatmul.mubr.msk.bf16.vlgmr.msra.gmra.mxu0 %vm925_vm2, %v2861_v29  ;;  %5456 = vmatmul.mubr.msk.bf16.vlgmr.msra.gmra.mxu1 %vm925_vm2, %v2862_v30  ;;  %v2831_v51 = vmul.f32 %v5936_v5, %v7206_v7  ;;  %v5938_v33 = vpop.eup %5937  ;;  %v3892_v7 = vsel %vm2878_vm3, %v912_v16, 0  ;;  %v915_v57 = vpack.c.bf16 %v5747_v41, %v5747_v41  ;;  %v914_v58 = vpack.c.bf16 %v5746_v39, %v5746_v39 }
 0x49d   : > { %v2965_v45 = vpop.f32.mrf.mxu1  ;;  %5460 = vmatpush3.bf16.msra.mxu0 %v3800_v10  ;;  %5466 = vmatpush3.bf16.msra.mxu1 %v3846_v21  ;;  %v2834_v44 = vmul.f32 %v5938_v33, %v7198_v8 }
 0x49e   : > { %5461 = vmatprep.mubr.msk.bf16.mxu0 %vm6204_vm1, %v6202_v55  ;;  %5467 = vmatprep.mubr.msk.bf16.mxu1 %vm6204_vm1, %v6202_v55  ;;  %v2863_v13 = vpack.c.bf16 %v2831_v51, %v2831_v51  ;;  %v3984_v8 = vsel %vm2878_vm3, %v914_v58, 0  ;;  %v4122_v45 = vsel %vm2878_vm3, %v917_v27, 0 }
 0x49f   : > { %v5350_v32 = vpop.f32.mrf.mxu1  ;;  %5471 = vmatprep.subr.bf16.mxu0 %v6202_v55  ;;  %5477 = vmatprep.subr.bf16.mxu1 %v6202_v55  ;;  %v2866_v17 = vpack.c.bf16 %v2834_v44, %v2834_v44 }
 0x4a0   : > { %v5751_v32 = vunpack.i.l.bf16 %v5750_v2 }
 0x4a3   : > { %v5940_v12 = vpop.eup %5939 }
 0x4a4   : > { %5462 = vmatmul.mubr.msk.bf16.vlgmr.msra.gmra.mxu0 %vm925_vm2, %v2863_v13  ;;  %5468 = vmatmul.mubr.msk.bf16.vlgmr.msra.gmra.mxu1 %vm925_vm2, %v2864_v61  ;;  %v2833_v40 = vmul.f32 %v5940_v12, %v7220_v36  ;;  %v4030_v36 = vsel %vm2878_vm3, %v915_v57, 0  ;;  %v916_v13 = vpack.c.bf16 %v5751_v32, %v5751_v32 }
 0x4a5   : > { %v7389_v53 = vpop.f32.mrf.mxu1  ;;  %5472 = vmatpush3.bf16.msra.mxu0 %v3892_v7  ;;  %5478 = vmatpush3.bf16.msra.mxu1 %v3938_v47 }
 0x4a6   : > { %5473 = vmatprep.mubr.msk.bf16.mxu0 %vm6204_vm1, %v6202_v55  ;;  %5479 = vmatprep.mubr.msk.bf16.mxu1 %vm6204_vm1, %v6202_v55  ;;  %v2865_v60 = vpack.c.bf16 %v2833_v40, %v2833_v40  ;;  %v4076_v58 = vsel %vm2878_vm3, %v916_v13, 0 }
 0x4a7   : > { %v5361_v38 = vpop.f32.mrf.mxu1  ;;  %5483 = vmatprep.subr.bf16.mxu0 %v6202_v55  ;;  %5489 = vmatprep.subr.bf16.mxu1 %v6202_v55 }
 0x4a9   : > { %v3057_v37 = vpop.f32.mrf.mxu1 }
 0x4ab   : > { %v5362_v20 = vpop.f32.mrf.mxu1 }
 0x4ac   : > { %5474 = vmatmul.mubr.msk.bf16.vlgmr.msra.gmra.mxu0 %vm925_vm2, %v2865_v60  ;;  %5480 = vmatmul.mubr.msk.bf16.vlgmr.msra.gmra.mxu1 %vm925_vm2, %v2866_v17 }
 0x4ad   : > { %5484 = vmatpush3.bf16.msra.mxu0 %v3984_v8  ;;  %5490 = vmatpush3.bf16.msra.mxu1 %v4030_v36  ;;  %v7403_v26 = vpop.f32.mrf.mxu1 }
 0x4ae   : > { %5491 = vmatprep.mubr.msk.bf16.mxu1 %vm6204_vm1, %v6202_v55  ;;  %5501 = vmatprep.subr.bf16.mxu1 %v6202_v55 }
 0x4af   : > { %5485 = vmatprep.mubr.msk.bf16.mxu0 %vm6204_vm1, %v6202_v55  ;;  %5495 = vmatprep.subr.bf16.mxu0 %v6202_v55  ;;  %v5373_v22 = vpop.f32.mrf.mxu1 }
 0x4b1   : > { %v3149_v56 = vpop.f32.mrf.mxu1 }
 0x4b3   : > { %v5374_v63 = vpop.f32.mrf.mxu1 }
 0x4bf   : > { %v2760_v19 = vpop.xlane.xlu1 %2759 }
 0x4c0   : > { %5941 = vrcp.f32 %v2760_v19  ;;  %v7411_v15 = vpop.f32.mrf.mxu0 }
 0x4c2   : > { %v5343_v59 = vpop.f32.mrf.mxu0 }
 0x4c3   : > { %v2766_v54 = vpop.xlane.xlu1 %2765 }
 0x4c4   : > { %5943 = vrcp.f32 %v2766_v54  ;;  %v2919_v3 = vpop.f32.mrf.mxu0 }
 0x4c6   : > { %v5344_v9 = vpop.f32.mrf.mxu0 }
 0x4c7   : > { %v2772_v31 = vpop.xlane.xlu1 %2771 }
 0x4c8   : > { %v7413_v62 = vpop.f32.mrf.mxu0 }
 0x4ca   : > { %v5355_v46 = vpop.f32.mrf.mxu0  ;;  %v2757_v6 = vpop.xlane.xlu0 %2756 }
 0x4cb   : > { %5945 = vrcp.f32 %v2757_v6  ;;  %v2778_v10 = vpop.xlane.xlu1 %2777 }
 0x4cc   : > { %v3011_v42 = vpop.f32.mrf.mxu0  ;;  %5947 = vrcp.f32 %v2772_v31 }
 0x4cd   : > { %v5942_v25 = vpop.eup %5941 }
 0x4ce   : > { %v2836_v30 = vmul.f32 %v5942_v25, %v7258_v24  ;;  %v5356_v29 = vpop.f32.mrf.mxu0  ;;  %v2763_v5 = vpop.xlane.xlu0 %2762 }
 0x4cf   : > { %5949 = vrcp.f32 %v2763_v5  ;;  %v5760_v61 = vpop.permute.xlu1 %5759 }
 0x4d0   : > { %v2868_v23 = vpack.c.bf16 %v2836_v30, %v2836_v30  ;;  %v7416_v35 = vpop.f32.mrf.mxu0  ;;  %5951 = vrcp.f32 %v2778_v10  ;;  %v5761_v56 = vunpack.i.l.bf16 %v5760_v61 }
 0x4d1   : > { %v5944_v11 = vpop.eup %5943 }
 0x4d2   : > { %v5367_v21 = vpop.f32.mrf.mxu0  ;;  %5492 = vmatmul.mubr.msk.bf16.vlgmr.msra.gmra.mxu1 %vm925_vm2, %v2868_v23  ;;  %v2769_v18 = vpop.xlane.xlu0 %2768  ;;  %v2838_v24 = vmul.f32 %v5944_v11, %v7263_v14  ;;  %v5762_v14 = vunpack.i.h.bf16 %v5760_v61  ;;  %v920_v59 = vpack.c.bf16 %v5761_v56, %v5761_v56 }
 0x4d3   : > { %5502 = vmatpush3.bf16.msra.mxu1 %v4122_v45  ;;  %5503 = vmatprep.mubr.msk.bf16.mxu1 %vm6204_vm1, %v6202_v55  ;;  %5953 = vrcp.f32 %v2769_v18 }
 0x4d4   : > { %v3103_v51 = vpop.f32.mrf.mxu0  ;;  %5513 = vmatprep.subr.bf16.mxu1 %v6202_v55  ;;  %v2870_v33 = vpack.c.bf16 %v2838_v24, %v2838_v24  ;;  %v4260_v50 = vsel %vm2878_vm3, %v920_v59, 0 }
 0x4d6   : > { %v5368_v1 = vpop.f32.mrf.mxu0  ;;  %v2775_v16 = vpop.xlane.xlu0 %2774 }
 0x4d7   : > { %5955 = vrcp.f32 %v2775_v16 }
 0x4d8   : > { %v5946_v34 = vpop.eup %5945 }
 0x4d9   : > { %v2835_v12 = vmul.f32 %v5946_v34, %v7269_v28  ;;  %v5948_v41 = vpop.eup %5947  ;;  %v921_v28 = vpack.c.bf16 %v5762_v14, %v5762_v14 }
 0x4da   : > { %5504 = vmatmul.mubr.msk.bf16.vlgmr.msra.gmra.mxu1 %vm925_vm2, %v2870_v33  ;;  %v5755_v39 = vpop.permute.xlu0 %5754  ;;  %v2840_v40 = vmul.f32 %v5948_v41, %v7267_v48 }
 0x4db   : > { %v2867_v7 = vpack.c.bf16 %v2835_v12, %v2835_v12  ;;  %v5757_v47 = vunpack.i.h.bf16 %v5755_v39  ;;  %5515 = vmatprep.mubr.msk.bf16.mxu1 %vm6204_vm1, %v6202_v55  ;;  %v5756_v57 = vunpack.i.l.bf16 %v5755_v39  ;;  %v4306_v36 = vsel %vm2878_vm3, %v921_v28, 0 }
 0x4dc   : > { %v5950_v44 = vpop.eup %5949  ;;  %v2872_v48 = vpack.c.bf16 %v2840_v40, %v2840_v40 }
 0x4dd   : > { %v919_v38 = vpack.c.bf16 %v5757_v47, %v5757_v47  ;;  %5486 = vmatmul.mubr.msk.bf16.vlgmr.msra.gmra.mxu0 %vm925_vm2, %v2867_v7  ;;  %v2837_v37 = vmul.f32 %v5950_v44, %v7277_v0  ;;  %v918_v60 = vpack.c.bf16 %v5756_v57, %v5756_v57  ;;  %v5952_v20 = vpop.eup %5951 }
 0x4de   : > { %5496 = vmatpush3.bf16.msra.mxu0 %v4076_v58  ;;  %5497 = vmatprep.mubr.msk.bf16.mxu0 %vm6204_vm1, %v6202_v55  ;;  %v2842_v0 = vmul.f32 %v5952_v20, %v7273_v49 }
 0x4df   : > { %v4214_v17 = vsel %vm2878_vm3, %v919_v38, 0  ;;  %5507 = vmatprep.subr.bf16.mxu0 %v6202_v55  ;;  %v2869_v8 = vpack.c.bf16 %v2837_v37, %v2837_v37  ;;  %v4168_v63 = vsel %vm2878_vm3, %v918_v60, 0 }
 0x4e0   : > { %5514 = vmatpush3.bf16.msra.mxu1 %v4214_v17  ;;  %v5954_v22 = vpop.eup %5953  ;;  %v2874_v19 = vpack.c.bf16 %v2842_v0, %v2842_v0 }
 0x4e1   : > { %5525 = vmatprep.subr.bf16.mxu1 %v6202_v55  ;;  %v2839_v2 = vmul.f32 %v5954_v22, %v7287_v52 }
 0x4e3   : > { %5516 = vmatmul.mubr.msk.bf16.vlgmr.msra.gmra.mxu1 %vm925_vm2, %v2872_v48  ;;  %v2871_v54 = vpack.c.bf16 %v2839_v2, %v2839_v2 }
 0x4e4   : > { %5526 = vmatpush3.bf16.msra.mxu1 %v4306_v36  ;;  %5527 = vmatprep.mubr.msk.bf16.mxu1 %vm6204_vm1, %v6202_v55  ;;  %v5956_v49 = vpop.eup %5955 }
 0x4e5   : > { %5498 = vmatmul.mubr.msk.bf16.vlgmr.msra.gmra.mxu0 %vm925_vm2, %v2869_v8  ;;  %v2841_v52 = vmul.f32 %v5956_v49, %v7299_v4 }
 0x4e6   : > { %5508 = vmatpush3.bf16.msra.mxu0 %v4168_v63  ;;  %5509 = vmatprep.mubr.msk.bf16.mxu0 %vm6204_vm1, %v6202_v55 }
 0x4e7   : > { %5519 = vmatprep.subr.bf16.mxu0 %v6202_v55  ;;  %v2873_v30 = vpack.c.bf16 %v2841_v52, %v2841_v52 }
 0x4e9   : > { %v7448_v3 = vpop.f32.mrf.mxu0 }
 0x4ea   : > { %v7451_v9 = vpop.f32.mrf.mxu1 }
 0x4eb   : > { %5528 = vmatmul.mubr.msk.bf16.vlgmr.msra.gmra.mxu1 %vm925_vm2, %v2874_v19  ;;  %v5379_v31 = vpop.f32.mrf.mxu0 }
 0x4ec   : > { %v5385_v46 = vpop.f32.mrf.mxu1 }
 0x4ed   : > { %5510 = vmatmul.mubr.msk.bf16.vlgmr.msra.gmra.mxu0 %vm925_vm2, %v2871_v54  ;;  %v3195_v6 = vpop.f32.mrf.mxu0 }
 0x4ee   : > { %5520 = vmatpush3.bf16.msra.mxu0 %v4260_v50  ;;  %5521 = vmatprep.mubr.msk.bf16.mxu0 %vm6204_vm1, %v6202_v55  ;;  %v3241_v42 = vpop.f32.mrf.mxu1 }
 0x4ef   : > { %v5380_v25 = vpop.f32.mrf.mxu0 }
 0x4f0   : > { %v5386_v27 = vpop.f32.mrf.mxu1 }
 0x4f5   : > { %5522 = vmatmul.mubr.msk.bf16.vlgmr.msra.gmra.mxu0 %vm925_vm2, %v2873_v30 }
 0x506   : > { %v3284_v29 = vpop.f32.mrf.mxu0 }
 0x507   : > { %v3330_v5 = vpop.f32.mrf.mxu1 }
 0x508   : > { %v5763_v23 = vpack.i.bf16 %v3330_v5, %v3284_v29  ;;  %v5391_v11 = vpop.f32.mrf.mxu0 }
 0x509   : > { %v5397_v10 = vpop.f32.mrf.mxu1 }
 0x50a   : > { %5764 = vrot.lane.b32.xlu1 %v5763_v23, %s6208_s28  ;;  %v3287_v21 = vpop.f32.mrf.mxu0 }
 0x50b   : > { %v3333_v45 = vpop.f32.mrf.mxu1 }
 0x50c   : > { %v5392_v55 = vpop.f32.mrf.mxu0 }
 0x50d   : > { %v5398_v18 = vpop.f32.mrf.mxu1 }
 0x50f   : > { %v3376_v4 = vpop.f32.mrf.mxu0 }
 0x510   : > { %v3422_v24 = vpop.f32.mrf.mxu1 }
 0x511   : > { %v5768_v51 = vpack.i.bf16 %v3422_v24, %v3376_v4  ;;  %v5403_v32 = vpop.f32.mrf.mxu0 }
 0x512   : > { %v5409_v1 = vpop.f32.mrf.mxu1 }
 0x513   : > { %5769 = vrot.lane.b32.xlu1 %v5768_v51, %s6208_s28  ;;  %v3379_v16 = vpop.f32.mrf.mxu0 }
 0x514   : > { %v3425_v34 = vpop.f32.mrf.mxu1 }
 0x515   : > { %v5404_v33 = vpop.f32.mrf.mxu0 }
 0x516   : > { %v5410_v61 = vpop.f32.mrf.mxu1 }
 0x517   : > { %v3468_v13 = vpop.f32.mrf.mxu0 }
 0x518   : > { %v3514_v12 = vpop.f32.mrf.mxu1 }
 0x519   : > { %v5773_v41 = vpack.i.bf16 %v3514_v12, %v3468_v13  ;;  %v5415_v39 = vpop.f32.mrf.mxu0  ;;  %v5827_v13 = vld [vmem:[#allocation10 + $0x8] sm:$0xff]  }
 0x51a   : > { %v5421_v7 = vpop.f32.mrf.mxu1  ;;  %5531 = vmatprep.subr.bf16.mxu0 %v5827_v13 }
 0x51b   : > { %5774 = vrot.lane.b32.xlu0 %v5773_v41, %s6208_s28  ;;  %v3471_v14 = vpop.f32.mrf.mxu0  ;;  %5532 = vmatpush3.bf16.msra.mxu0 %v5827_v13 }
 0x51c   : > { %v3517_v47 = vpop.f32.mrf.mxu1 }
 0x51d   : > { %v5416_v44 = vpop.f32.mrf.mxu0  ;;  %v5828_v47 = vld [vmem:[#allocation10] sm:$0xff]  }
 0x51e   : > { %v5422_v40 = vpop.f32.mrf.mxu1  ;;  %5533 = vmatprep.subr.bf16.mxu0 %v5828_v47 }
 0x51f   : > { %v3560_v38 = vpop.f32.mrf.mxu0  ;;  %5534 = vmatpush3.bf16.msra.mxu0 %v5828_v47 }
 0x521   : > { %v5427_v57 = vpop.f32.mrf.mxu0 }
 0x523   : > { %v3563_v58 = vpop.f32.mrf.mxu0  ;;  %v3606_v28 = vpop.f32.mrf.mxu1 }
 0x524   : > { %v5778_v37 = vpack.i.bf16 %v3606_v28, %v3560_v38 }
 0x525   : > { %v5428_v17 = vpop.f32.mrf.mxu0  ;;  %v5433_v48 = vpop.f32.mrf.mxu1 }
 0x526   : > { %5779 = vrot.lane.b32.xlu1 %v5778_v37, %s6208_s28 }
 0x527   : > { %v3609_v60 = vpop.f32.mrf.mxu1 }
 0x529   : > { %v5434_v20 = vpop.f32.mrf.mxu1 }
 0x52b   : > { %v3698_v8 = vpop.f32.mrf.mxu1 }
 0x52d   : > { %v5445_v36 = vpop.f32.mrf.mxu1 }
 0x52f   : > { %v3701_v22 = vpop.f32.mrf.mxu1 }
 0x531   : > { %v5446_v0 = vpop.f32.mrf.mxu1 }
 0x554   : > { %v3652_v56 = vpop.f32.mrf.mxu0 }
 0x555   : > { %v5783_v63 = vpack.i.bf16 %v3698_v8, %v3652_v56 }
 0x556   : > { %v5439_v2 = vpop.f32.mrf.mxu0 }
 0x557   : > { %5784 = vrot.lane.b32.xlu1 %v5783_v63, %s6209_s12 }
 0x558   : > { %v3655_v19 = vpop.f32.mrf.mxu0 }
 0x55a   : > { %v5440_v59 = vpop.f32.mrf.mxu0 }
 0x55c   : > { %v3744_v54 = vpop.f32.mrf.mxu0  ;;  %v3790_v49 = vpop.f32.mrf.mxu1 }
 0x55d   : > { %v5788_v31 = vpack.i.bf16 %v3790_v49, %v3744_v54 }
 0x55e   : > { %v5451_v50 = vpop.f32.mrf.mxu0  ;;  %v5457_v46 = vpop.f32.mrf.mxu1 }
 0x55f   : > { %5789 = vrot.lane.b32.xlu1 %v5788_v31, %s6209_s12 }
 0x560   : > { %v3747_v52 = vpop.f32.mrf.mxu0  ;;  %v3793_v6 = vpop.f32.mrf.mxu1 }
 0x562   : > { %v5452_v42 = vpop.f32.mrf.mxu0  ;;  %v5458_v25 = vpop.f32.mrf.mxu1 }
 0x564   : > { %v3836_v27 = vpop.f32.mrf.mxu0  ;;  %v3882_v30 = vpop.f32.mrf.mxu1 }
 0x565   : > { %v5798_v57 = vpack.i.bf16 %v3882_v30, %v3836_v27 }
 0x566   : > { %v5463_v29 = vpop.f32.mrf.mxu0  ;;  %v5469_v5 = vpop.f32.mrf.mxu1 }
 0x568   : > { %v3839_v23 = vpop.f32.mrf.mxu0  ;;  %v3885_v11 = vpop.f32.mrf.mxu1 }
 0x56a   : > { %v5464_v10 = vpop.f32.mrf.mxu0  ;;  %v5470_v21 = vpop.f32.mrf.mxu1 }
 0x56c   : > { %v3928_v45 = vpop.f32.mrf.mxu0  ;;  %v3974_v55 = vpop.f32.mrf.mxu1 }
 0x56d   : > { %v5808_v22 = vpack.i.bf16 %v3974_v55, %v3928_v45 }
 0x56e   : > { %v5475_v18 = vpop.f32.mrf.mxu0  ;;  %v5481_v4 = vpop.f32.mrf.mxu1 }
 0x570   : > { %v3931_v24 = vpop.f32.mrf.mxu0  ;;  %v3977_v51 = vpop.f32.mrf.mxu1 }
 0x572   : > { %v5476_v32 = vpop.f32.mrf.mxu0  ;;  %v5482_v1 = vpop.f32.mrf.mxu1 }
 0x57c   : > { %v5765_v27 = vpop.permute.xlu1 %5764 }
 0x57d   : > { %v5767_v11 = vunpack.i.h.bf16 %v5765_v27  ;;  %v5766_v10 = vunpack.i.l.bf16 %v5765_v27 }
 0x57f   : > { %v4445_v18 = vsel %vm925_vm2, %v7369_v43, %v5767_v11  ;;  %v4444_v4 = vsel %vm925_vm2, %v7411_v15, %v5766_v10 }
 0x585   : > { %v5770_v30 = vpop.permute.xlu1 %5769 }
 0x586   : > { %v5772_v13 = vunpack.i.h.bf16 %v5770_v30 }
 0x588   : > { %v4447_v15 = vsel %vm925_vm2, %v7389_v53, %v5772_v13 }
 0x58d   : > { %v5775_v23 = vpop.permute.xlu0 %5774 }
 0x592   : > { %v4066_v16 = vpop.f32.mrf.mxu1 }
 0x594   : > { %v5493_v34 = vpop.f32.mrf.mxu1 }
 0x596   : > { %v4069_v33 = vpop.f32.mrf.mxu1 }
 0x598   : > { %v5494_v61 = vpop.f32.mrf.mxu1  ;;  %v5780_v29 = vpop.permute.xlu1 %5779 }
 0x59a   : > { %v4158_v12 = vpop.f32.mrf.mxu1 }
 0x59c   : > { %v5505_v41 = vpop.f32.mrf.mxu1 }
 0x59d   : > { %v4020_v39 = vpop.f32.mrf.mxu0 }
 0x59e   : > { %v5793_v7 = vpack.i.bf16 %v4066_v16, %v4020_v39  ;;  %v4161_v14 = vpop.f32.mrf.mxu1 }
 0x59f   : > { %v5487_v44 = vpop.f32.mrf.mxu0 }
 0x5a0   : > { %v5506_v40 = vpop.f32.mrf.mxu1  ;;  %5794 = vrot.lane.b32.xlu0 %v5793_v7, %s6210_s30 }
 0x5a1   : > { %v4023_v38 = vpop.f32.mrf.mxu0 }
 0x5a3   : > { %v5488_v58 = vpop.f32.mrf.mxu0  ;;  %v4250_v28 = vpop.f32.mrf.mxu1 }
 0x5a4   : > { %5799 = vrot.lane.b32.xlu0 %v5798_v57, %s6209_s12 }
 0x5a5   : > { %v4112_v37 = vpop.f32.mrf.mxu0  ;;  %v5517_v17 = vpop.f32.mrf.mxu1 }
 0x5a6   : > { %v5803_v48 = vpack.i.bf16 %v4158_v12, %v4112_v37  ;;  %v5771_v12 = vunpack.i.l.bf16 %v5770_v30  ;;  %v5777_v37 = vunpack.i.h.bf16 %v5775_v23  ;;  %v5776_v17 = vunpack.i.l.bf16 %v5775_v23  ;;  %v5973_v23 = vld [vmem:[%s6460_s18 + $0x10] sm:$0xff] }
 0x5a7   : > { %v5499_v60 = vpop.f32.mrf.mxu0  ;;  %v4253_v20 = vpop.f32.mrf.mxu1 }
 0x5a8   : > { %5804 = vrot.lane.b32.xlu1 %v5803_v48, %s6210_s30  ;;  %v4446_v7 = vsel %vm925_vm2, %v7413_v62, %v5771_v12  ;;  %v4449_v62 = vsel %vm925_vm2, %v7403_v26, %v5777_v37  ;;  %v4448_v20 = vsel %vm925_vm2, %v7416_v35, %v5776_v17  ;;  %v5980_v17 = vld [vmem:[%s6460_s18 + $0x38] sm:$0xff] }
 0x5a9   : > { %v4115_v8 = vpop.f32.mrf.mxu0  ;;  %v5518_v36 = vpop.f32.mrf.mxu1 }
 0x5ab   : > { %v5500_v0 = vpop.f32.mrf.mxu0  ;;  %v4342_v56 = vpop.f32.mrf.mxu1 }
 0x5ac   : > { %5809 = vrot.lane.b32.xlu1 %v5808_v22, %s6209_s12  ;;  %s6119_s12 = sshll.u32 %s6211_s0, 4  ;;  %s6120_s12 = int_to_ptr.vmem [resolvable:$false] %s6119_s12 }
 0x5ad   : > { %v4204_v63 = vpop.f32.mrf.mxu0  ;;  %v5529_v2 = vpop.f32.mrf.mxu1  ;;  %p6122_p9 = scmp.lt.s32.totalorder %s7604_s27, %s6120_s12 }
 0x5ae   : > { %v5813_v19 = vpack.i.bf16 %v4250_v28, %v4204_v63 }
 0x5af   : > { %v5511_v59 = vpop.f32.mrf.mxu0  ;;  %v4345_v54 = vpop.f32.mrf.mxu1 }
 0x5b0   : > { %5814 = vrot.lane.b32.xlu0 %v5813_v19, %s6210_s30  ;;  %v5782_v59 = vunpack.i.h.bf16 %v5780_v29  ;;  %v5781_v54 = vunpack.i.l.bf16 %v5780_v29 }
 0x5b1   : > { %v4207_v49 = vpop.f32.mrf.mxu0  ;;  %v5530_v31 = vpop.f32.mrf.mxu1 }
 0x5b2   : > { %v4451_v35 = vsel %vm925_vm2, %v7451_v9, %v5782_v59  ;;  %v4960_v9 = vld [vmem:[%s7657_s7] ss:$0 sm:$0xff] }
 0x5b3   : > { %v5512_v50 = vpop.f32.mrf.mxu0 }
 0x5b4   : > { %v4450_v50 = vsel %vm925_vm2, %v7448_v3, %v5781_v54 }
 0x5b5   : > { %v4296_v46 = vpop.f32.mrf.mxu0 }
 0x5b6   : > { %v5818_v52 = vpack.i.bf16 %v4342_v56, %v4296_v46 }
 0x5b7   : > { %v5523_v6 = vpop.f32.mrf.mxu0 }
 0x5b8   : > { %5819 = vrot.lane.b32.xlu1 %v5818_v52, %s6210_s30  ;;  %s6121_s30 = scalar_lea.vmem %s6120_s12, 2048 }
 0x5b9   : > { %v4299_v42 = vpop.f32.mrf.mxu0  ;;  %p6123_p2 = scmp.lt.s32.totalorder %s6121_s30, %s6115_s22 }
 0x5bb   : > { %v5524_v25 = vpop.f32.mrf.mxu0  ;;  %p6124_p10 = por %p6123_p2, %p6122_p9 }
 0x5bd   : > { %p6125_p13 = pnand %p6124_p10, %p6118_p7 }
 0x5c9   : > { %v5785_v5 = vpop.permute.xlu1 %5784 }
 0x5ca   : > { %v5787_v21 = vunpack.i.h.bf16 %v5785_v5  ;;  %v5786_v45 = vunpack.i.l.bf16 %v5785_v5 }
 0x5cc   : > { %v4454_v32 = vsel %vm4452_vm4, %v4445_v18, %v5787_v21  ;;  %v4453_v1 = vsel %vm4452_vm4, %v4444_v4, %v5786_v45  ;;  %v5974_v45 = vld [vmem:[%s6460_s18] sm:$0xff] }
 0x5d1   : > { %v5790_v16 = vpop.permute.xlu1 %5789 }
 0x5d2   : > { %v5792_v41 = vunpack.i.h.bf16 %v5790_v16  ;;  %v5791_v39 = vunpack.i.l.bf16 %v5790_v16  ;;  %v5976_v16 = vld [vmem:[%s6460_s18 + $0x8] sm:$0xff] }
 0x5d4   : > { %v4456_v44 = vsel %vm4452_vm4, %v4447_v15, %v5792_v41  ;;  %v4455_v40 = vsel %vm4452_vm4, %v4446_v7, %v5791_v39  ;;  %v5977_v7 = vld [vmem:[%s6460_s18 + $0x20] sm:$0xff] }
 0x612   : > { %v5795_v55 = vpop.permute.xlu0 %5794 }
 0x613   : > { %v5797_v24 = vunpack.i.h.bf16 %v5795_v55  ;;  %v5796_v51 = vunpack.i.l.bf16 %v5795_v55 }
 0x615   : > { %v4463_v34 = vsel %vm4461_vm5, %v4454_v32, %v5797_v24  ;;  %v4462_v33 = vsel %vm4461_vm5, %v4453_v1, %v5796_v51  ;;  %v5975_v32 = vld [vmem:[%s6460_s18 + $0x18] sm:$0xff] }
 0x616   : > { %v4470_v61 = vpack.c.bf16 %v4463_v34, %v4462_v33  ;;  %v5800_v38 = vpop.permute.xlu0 %5799 }
 0x617   : > { %v5802_v48 = vunpack.i.h.bf16 %v5800_v38  ;;  %v5801_v60 = vunpack.i.l.bf16 %v5800_v38 }
 0x618   : > { %5535 = vmatprep.mubr.msk.bf16.mxu0 %vm516_vm0, %v4470_v61 }
 0x619   : > { %v4458_v22 = vsel %vm4452_vm4, %v4449_v62, %v5802_v48  ;;  %v4457_v0 = vsel %vm4452_vm4, %v4448_v20, %v5801_v60 }
 0x61a   : > { %v5805_v43 = vpop.permute.xlu1 %5804 }
 0x61b   : > { %v5807_v14 = vunpack.i.h.bf16 %v5805_v43  ;;  %v5806_v47 = vunpack.i.l.bf16 %v5805_v43 }
 0x61d   : > { %v4465_v57 = vsel %vm4461_vm5, %v4456_v44, %v5807_v14  ;;  %v4464_v58 = vsel %vm4461_vm5, %v4455_v40, %v5806_v47  ;;  %v5978_v44 = vld [vmem:[%s6460_s18 + $0x30] sm:$0xff] }
 0x61e   : > { %v4471_v28 = vpack.c.bf16 %v4465_v57, %v4464_v58  ;;  %v5810_v56 = vpop.permute.xlu1 %5809 }
 0x61f   : > { %v5812_v49 = vunpack.i.h.bf16 %v5810_v56  ;;  %v5811_v31 = vunpack.i.l.bf16 %v5810_v56 }
 0x620   : > { %5536 = vmatmul.mubr.msk.bf16.vlgmr.msra.gmra.mxu0 %vm516_vm0, %v4471_v28  ;;  %v5979_v28 = vld [vmem:[%s6460_s18 + $0x28] sm:$0xff] }
 0x621   : > { %v4460_v6 = vsel %vm4452_vm4, %v4451_v35, %v5812_v49  ;;  %v4459_v42 = vsel %vm4452_vm4, %v4450_v50, %v5811_v31 }
 0x622   : > { %v5815_v53 = vpop.permute.xlu0 %5814 }
 0x623   : > { %v5817_v8 = vunpack.i.h.bf16 %v5815_v53  ;;  %v5816_v36 = vunpack.i.l.bf16 %v5815_v53 }
 0x625   : > { %v4467_v63 = vsel %vm4461_vm5, %v4458_v22, %v5817_v8  ;;  %v4466_v2 = vsel %vm4461_vm5, %v4457_v0, %v5816_v36 }
 0x626   : > { %v4472_v19 = vpack.c.bf16 %v4467_v63, %v4466_v2 }
 0x628   : > { %5539 = vmatprep.mubr.msk.bf16.mxu0 %vm516_vm0, %v4472_v19 }
 0x62a   : > { %v5820_v26 = vpop.permute.xlu1 %5819 }
 0x62b   : > { %v5822_v46 = vunpack.i.h.bf16 %v5820_v26  ;;  %v5821_v52 = vunpack.i.l.bf16 %v5820_v26 }
 0x62d   : > { %v4469_v25 = vsel %vm4461_vm5, %v4460_v6, %v5822_v46  ;;  %v4468_v27 = vsel %vm4461_vm5, %v4459_v42, %v5821_v52 }
 0x62e   : > { %v4473_v30 = vpack.c.bf16 %v4469_v25, %v4468_v27 }
 0x630   : > { %5540 = vmatmul.mubr.msk.bf16.gmra.mxu0 %vm516_vm0, %v4473_v30 }
 0x6e0   : > { %v5537_v3 = vpop.f32.mrf.mxu0 }
 0x6e1   : > { %v4552_v29 = vadd.f32 %v5537_v3, %v4960_v9 }
 0x6e2   : > { %v4543_v5 = vpop.f32.mrf.mxu0 }
 0x6e3   : > { %v4576_v11 = vadd.f32 %v5973_v23, %v4552_v29  ;;  %v4544_v10 = vadd.f32 %v4960_v9, %v4543_v5 }
 0x6e4   : > { %v5538_v21 = vpop.f32.mrf.mxu0 }
 0x6e5   : > { %v4574_v55 = vadd.f32 %v5974_v45, %v4544_v10  ;;  %v4555_v18 = vadd.f32 %v5538_v21, %v4960_v9  ;;  %v4588_v4 = vsel %vm516_vm0, %v4576_v11, 0.0 }
 0x6e6   : > { %4589 = vadd.xlane.f32.xlu0 %v4588_v4  ;;  %v4546_v24 = vpop.f32.mrf.mxu0 }
 0x6e7   : > { %v4547_v51 = vadd.f32 %v4960_v9, %v4546_v24  ;;  %v4577_v1 = vadd.f32 %v5975_v32, %v4555_v18  ;;  %v4582_v33 = vsel %vm516_vm0, %v4574_v55, 0.0 }
 0x6e9   : > { %v4575_v34 = vadd.f32 %v5976_v16, %v4547_v51  ;;  %v4591_v13 = vsel %vm516_vm0, %v4577_v1, 0.0 }
 0x6ea   : > { %4583 = vadd.xlane.f32.xlu0 %v4582_v33 }
 0x6eb   : > { %v4585_v61 = vsel %vm516_vm0, %v4575_v34, 0.0 }
 0x6ec   : > { %4586 = vadd.xlane.f32.xlu1 %v4585_v61 }
 0x6ee   : > { %4592 = vadd.xlane.f32.xlu0 %v4591_v13 }
 0x6f0   : > { %v5541_v12 = vpop.f32.mrf.mxu0 }
 0x6f1   : > { %v4568_v39 = vadd.f32 %v5541_v12, %v4960_v9 }
 0x6f2   : > { %v4559_v41 = vpop.f32.mrf.mxu0 }
 0x6f3   : > { %v4560_v43 = vadd.f32 %v4960_v9, %v4559_v41  ;;  %v4580_v40 = vadd.f32 %v5978_v44, %v4568_v39 }
 0x6f4   : > { %v5542_v15 = vpop.f32.mrf.mxu0 }
 0x6f5   : > { %v4578_v14 = vadd.f32 %v5977_v7, %v4560_v43  ;;  %v4571_v38 = vadd.f32 %v5542_v15, %v4960_v9  ;;  %v4600_v60 = vsel %vm516_vm0, %v4580_v40, 0.0 }
 0x6f6   : > { %v4562_v47 = vpop.f32.mrf.mxu0 }
 0x6f7   : > { %v4563_v57 = vadd.f32 %v4960_v9, %v4562_v47  ;;  %v4594_v58 = vsel %vm516_vm0, %v4578_v14, 0.0  ;;  %v4581_v48 = vadd.f32 %v5980_v17, %v4571_v38 }
 0x6f8   : > { %4595 = vadd.xlane.f32.xlu1 %v4594_v58 }
 0x6f9   : > { %v4579_v37 = vadd.f32 %v5979_v28, %v4563_v57  ;;  %v4603_v62 = vsel %vm516_vm0, %v4581_v48, 0.0  ;;  %v4968_v28 = vld [vmem:[%s7659_s9] ss:$0 sm:$0xff] }
 0x6fb   : > { %v4597_v53 = vsel %vm516_vm0, %v4579_v37, 0.0 }
 0x6fc   : > { %4601 = vadd.xlane.f32.xlu1 %v4600_v60  ;;  %4598 = vadd.xlane.f32.xlu0 %v4597_v53 }
 0x700   : > { %4604 = vadd.xlane.f32.xlu0 %v4603_v62 }
 0x76f   : > { %v4590_v20 = vpop.xlane.xlu0 %4589 }
 0x770   : > { %v4609_v8 = vmul.f32 0.03125, %v4590_v20 }
 0x772   : > { %v7526_v36 = vsub.f32 %v4576_v11, %v4609_v8 }
 0x773   : > { %v4584_v22 = vpop.xlane.xlu0 %4583 }
 0x774   : > { %v4607_v0 = vmul.f32 0.03125, %v4584_v22  ;;  %v4625_v56 = vmul.f32 %v7526_v36, %v7526_v36 }
 0x775   : > { %v4587_v63 = vpop.xlane.xlu1 %4586 }
 0x776   : > { %v7530_v2 = vsub.f32 %v4574_v55, %v4607_v0  ;;  %v4608_v19 = vmul.f32 0.03125, %v4587_v63  ;;  %v4637_v59 = vsel %vm516_vm0, %v4625_v56, 0.0 }
 0x777   : > { %4638 = vadd.xlane.f32.xlu1 %v4637_v59  ;;  %v4593_v54 = vpop.xlane.xlu0 %4592 }
 0x778   : > { %v4610_v49 = vmul.f32 0.03125, %v4593_v54  ;;  %v4623_v31 = vmul.f32 %v7530_v2, %v7530_v2  ;;  %v7535_v26 = vsub.f32 %v4575_v34, %v4608_v19 }
 0x77a   : > { %v7537_v35 = vsub.f32 %v4577_v1, %v4610_v49  ;;  %v4631_v50 = vsel %vm516_vm0, %v4623_v31, 0.0  ;;  %v4624_v6 = vmul.f32 %v7535_v26, %v7535_v26 }
 0x77b   : > { %4632 = vadd.xlane.f32.xlu1 %v4631_v50 }
 0x77c   : > { %v4626_v46 = vmul.f32 %v7537_v35, %v7537_v35  ;;  %v4634_v27 = vsel %vm516_vm0, %v4624_v6, 0.0 }
 0x77e   : > { %v4640_v52 = vsel %vm516_vm0, %v4626_v46, 0.0 }
 0x77f   : > { %4641 = vadd.xlane.f32.xlu0 %v4640_v52 }
 0x781   : > { %v4596_v42 = vpop.xlane.xlu1 %4595 }
 0x782   : > { %v4611_v25 = vmul.f32 0.03125, %v4596_v42 }
 0x783   : > { %4635 = vadd.xlane.f32.xlu0 %v4634_v27 }
 0x784   : > { %v7546_v30 = vsub.f32 %v4578_v14, %v4611_v25 }
 0x785   : > { %v4602_v9 = vpop.xlane.xlu1 %4601  ;;  %v4599_v3 = vpop.xlane.xlu0 %4598 }
 0x786   : > { %v4613_v29 = vmul.f32 0.03125, %v4602_v9  ;;  %v4612_v5 = vmul.f32 0.03125, %v4599_v3  ;;  %v4627_v23 = vmul.f32 %v7546_v30, %v7546_v30 }
 0x788   : > { %v7550_v11 = vsub.f32 %v4580_v40, %v4613_v29  ;;  %v7552_v10 = vsub.f32 %v4579_v37, %v4612_v5  ;;  %v4643_v21 = vsel %vm516_vm0, %v4627_v23, 0.0  ;;  %v4967_v40 = vld [vmem:[%s7658_s8] ss:$0 sm:$0xff] }
 0x789   : > { %4644 = vadd.xlane.f32.xlu1 %v4643_v21  ;;  %v4605_v45 = vpop.xlane.xlu0 %4604 }
 0x78a   : > { %v4614_v55 = vmul.f32 0.03125, %v4605_v45  ;;  %v4629_v18 = vmul.f32 %v7550_v11, %v7550_v11  ;;  %v4628_v4 = vmul.f32 %v7552_v10, %v7552_v10 }
 0x78c   : > { %v7559_v24 = vsub.f32 %v4581_v48, %v4614_v55  ;;  %v4649_v51 = vsel %vm516_vm0, %v4629_v18, 0.0  ;;  %v4646_v32 = vsel %vm516_vm0, %v4628_v4, 0.0 }
 0x78d   : > { %4650 = vadd.xlane.f32.xlu1 %v4649_v51  ;;  %4647 = vadd.xlane.f32.xlu0 %v4646_v32 }
 0x78e   : > { %v4630_v1 = vmul.f32 %v7559_v24, %v7559_v24 }
 0x790   : > { %v4652_v16 = vsel %vm516_vm0, %v4630_v1, 0.0 }
 0x791   : > { %4653 = vadd.xlane.f32.xlu0 %v4652_v16 }
 0x800   : > { %v4639_v34 = vpop.xlane.xlu1 %4638 }
 0x801   : > { %v4657_v33 = vmul.f32 0.03125, %v4639_v34 }
 0x803   : > { %v4665_v61 = vadd.f32 1e-05, %v4657_v33 }
 0x804   : > { %v4633_v13 = vpop.xlane.xlu1 %4632 }
 0x805   : > { %5957 = vrsqrt.f32 %v4665_v61  ;;  %v4655_v12 = vmul.f32 0.03125, %v4633_v13 }
 0x807   : > { %v4663_v41 = vadd.f32 1e-05, %v4655_v12 }
 0x808   : > { %v4642_v39 = vpop.xlane.xlu0 %4641 }
 0x809   : > { %5959 = vrsqrt.f32 %v4663_v41  ;;  %v4658_v43 = vmul.f32 0.03125, %v4642_v39 }
 0x80b   : > { %v4666_v15 = vadd.f32 1e-05, %v4658_v43 }
 0x80c   : > { %v4636_v7 = vpop.xlane.xlu0 %4635 }
 0x80d   : > { %5961 = vrsqrt.f32 %v4666_v15  ;;  %v4656_v14 = vmul.f32 0.03125, %v4636_v7 }
 0x80f   : > { %v4664_v47 = vadd.f32 1e-05, %v4656_v14 }
 0x811   : > { %5963 = vrsqrt.f32 %v4664_v47 }
 0x812   : > { %v5958_v44 = vpop.eup %5957  ;;  %v4645_v38 = vpop.xlane.xlu1 %4644 }
 0x813   : > { %v4681_v57 = vmul.f32 %v5958_v44, %v7526_v36  ;;  %v4659_v58 = vmul.f32 0.03125, %v4645_v38 }
 0x815   : > { %v4696_v37 = vmul.f32 %v4967_v40, %v4681_v57  ;;  %v4667_v17 = vadd.f32 1e-05, %v4659_v58 }
 0x816   : > { %v5960_v48 = vpop.eup %5959  ;;  %v4651_v60 = vpop.xlane.xlu1 %4650 }
 0x817   : > { %v4648_v53 = vpop.xlane.xlu0 %4647  ;;  %v4711_v62 = vadd.f32 %v4968_v28, %v4696_v37  ;;  %v4679_v20 = vmul.f32 %v5960_v48, %v7530_v2  ;;  %5965 = vrsqrt.f32 %v4667_v17  ;;  %v4661_v8 = vmul.f32 0.03125, %v4651_v60 }
 0x818   : > { %v4660_v22 = vmul.f32 0.03125, %v4648_v53 }
 0x819   : > { %4719 = vst.msk [vmem:[%s7575_s6 + $0x10] sm:$0xff] %vm516_vm0, %v4711_v62  ;;  %v4694_v36 = vmul.f32 %v4967_v40, %v4679_v20  ;;  %v4669_v0 = vadd.f32 1e-05, %v4661_v8 }
 0x81a   : > { %v5962_v56 = vpop.eup %5961  ;;  %v4668_v63 = vadd.f32 1e-05, %v4660_v22 }
 0x81b   : > { %v4654_v19 = vpop.xlane.xlu0 %4653  ;;  %v4709_v59 = vadd.f32 %v4968_v28, %v4694_v36  ;;  %v4682_v54 = vmul.f32 %v5962_v56, %v7537_v35  ;;  %5967 = vrsqrt.f32 %v4669_v0 }
 0x81c   : > { %v4662_v2 = vmul.f32 0.03125, %v4654_v19  ;;  %5969 = vrsqrt.f32 %v4668_v63 }
 0x81d   : > { %4717 = vst.msk [vmem:[%s7575_s6] sm:$0xff] %vm516_vm0, %v4709_v59  ;;  %v4697_v49 = vmul.f32 %v4967_v40, %v4682_v54 }
 0x81e   : > { %v4670_v31 = vadd.f32 1e-05, %v4662_v2  ;;  %v5964_v50 = vpop.eup %5963 }
 0x81f   : > { %v4712_v46 = vadd.f32 %v4968_v28, %v4697_v49  ;;  %v4680_v52 = vmul.f32 %v5964_v50, %v7535_v26 }
 0x820   : > { %5971 = vrsqrt.f32 %v4670_v31 }
 0x821   : > { %4720 = vst.msk [vmem:[%s7575_s6 + $0x18] sm:$0xff] %vm516_vm0, %v4712_v46  ;;  %v4695_v6 = vmul.f32 %v4967_v40, %v4680_v52 }
 0x823   : > { %v4710_v42 = vadd.f32 %v4968_v28, %v4695_v6 }
 0x824   : > { %v5966_v25 = vpop.eup %5965 }
 0x825   : > { %4718 = vst.msk [vmem:[%s7575_s6 + $0x8] sm:$0xff] %vm516_vm0, %v4710_v42  ;;  %v4683_v35 = vmul.f32 %v5966_v25, %v7546_v30 }
 0x827   : > { %v4698_v27 = vmul.f32 %v4967_v40, %v4683_v35 }
 0x828   : > { %v5968_v9 = vpop.eup %5967 }
 0x829   : > { %v5970_v3 = vpop.eup %5969  ;;  %v4713_v29 = vadd.f32 %v4968_v28, %v4698_v27  ;;  %v4685_v26 = vmul.f32 %v5968_v9, %v7550_v11 }
 0x82a   : > { %v4684_v5 = vmul.f32 %v5970_v3, %v7552_v10 }
 0x82b   : > { %4721 = vst.msk [vmem:[%s7575_s6 + $0x20] sm:$0xff] %vm516_vm0, %v4713_v29  ;;  %v4700_v23 = vmul.f32 %v4967_v40, %v4685_v26 }
 0x82c   : > { %v4699_v45 = vmul.f32 %v4967_v40, %v4684_v5 }
 0x82d   : > { %v5972_v21 = vpop.eup %5971  ;;  %v4715_v55 = vadd.f32 %v4968_v28, %v4700_v23 }
 0x82e   : > { %v4686_v30 = vmul.f32 %v5972_v21, %v7559_v24  ;;  %v4714_v18 = vadd.f32 %v4968_v28, %v4699_v45 }
 0x82f   : > { %4723 = vst.msk [vmem:[%s7575_s6 + $0x30] sm:$0xff] %vm516_vm0, %v4715_v55 }
 0x830   : > { %v4701_v4 = vmul.f32 %v4967_v40, %v4686_v30  ;;  %4722 = vst.msk [vmem:[%s7575_s6 + $0x28] sm:$0xff] %vm516_vm0, %v4714_v18 }
 0x832   : > { %v4716_v11 = vadd.f32 %v4968_v28, %v4701_v4 }
 0x834   : > { %4724 = vst.msk [vmem:[%s7575_s6 + $0x38] sm:$0xff] %vm516_vm0, %v4716_v11 }
 0x835   : > { %6128 = shalt.err (!%p6125_p13)
}
 0x836   : > { %s6129_s29 = scalar_lea.hbm %s7602_s23, 1024  ;;  %s6133_s21 = scalar_lea.hbm %s7660_s10, 2048 }
 0x837   : > { %p6130_p6 = scmp.ne.s32.totalorder %s7602_s23, %s6129_s29  ;;  %p6134_p11 = scmp.lt.s32.totalorder %s7602_s23, %s7660_s10 }
 0x838   : > { %p6135_p4 = scmp.lt.s32.totalorder %s6133_s21, %s6129_s29 }
 0x839   : > { %p6131_p1 = pnand %p6130_p6, %p7692_p5 }
 0x83a   : > { %p6136_p12 = por %p6135_p4, %p6134_p11 }
 0x83b   : > { %p6132_p8 = pneg %p6131_p1 }
 0x83d   : > { %p6137_p0 = pnand %p6136_p12, %p6132_p8 }
 0x83f   : > { %6140 = shalt.err (!%p6137_p0)
}
 0x840   : > { %s6212_s6 = smov 128  }
 0x841   : > { %5563 = dma.vmem_to_hbm [thread:$0]  (%p7692_p5), %s7604_s27, 1024, %s7602_s23, %s4726_s17, %s6212_s6, %s6212_s6, %s6208_s28  }
 0x842 PF: > { %s4754_s2 = sand.u32 1, %s6179_s13   ;;  %p7693_p3 = scmp.ne.s32.totalorder %s7674_s20, 0 }
 0x843   : > { %p7694_p7 = scmp.ge.s32.totalorder %s6191_s16, 2  ;;  %s4755_s11 = scalar_lea.sflag [#allocation4], %s4754_s2 }
 0x845   : > { %p5583_p9 = pnand %p7694_p7, %p7693_p3 }
 0x847   : > { %p5584_p2 = pneg %p5583_p9 }
 0x849   : > { %6174 = dma.done.wait (%p5584_p2), %s4755_s11, 1024  }
 0x84a   : > { %6176 = vsyncadd (%p5584_p2), %s4755_s11, 4294966272  ;;  %s7695_s16 = sld [smem:[#allocation18_spill]]  ;;  %s7698_s13 = smov %s6183_s14 }
 0x84b   : > { %s7696_s25 = sld [smem:[#allocation17_spill]] }
 0x84c   : > { %s7697_s15 = sld [smem:[#allocation19_spill]] }
 0x850   : > { %p27_p10 = scmp.ge.s32.totalorder %s7695_s16, 4  }
 0x851   : > { %s7699_s14 = smov %s7696_s25 }
 0x852   :  { %29 = sbr.rel (!%p27_p10) target bundleno = 13 (0xd), region = 130 }
 0x857   :  { %4760 = vsyncpa [#allocation3], 1 }
 0x858   :  { %4762 = vsyncpa [#allocation3 + $0x1], 1 }
 0x859   :  { %4763 = vsyncpa [#allocation6], 1 }
 0x85a   :  { %4765 = vsyncpa [#allocation6 + $0x1], 1 }
 0x85b   :  { %4766 = vsyncpa [#allocation9], 1 }
 0x85c   :  { %4767 = vsyncpa [#allocation4], 1 }
 0x85d   :  { %4769 = vsyncpa [#allocation4 + $0x1], 1 }

// kernel: tpu_custom_call.1
= control target key start
LH: loop header
LB: loop body
LE: loop exit
PB: predicated region body
PF: predicated region fallthrough
CT: control target
= control target key end

     0   :  { %s7650_s0 = inlined_call_operand.hbm [shape: f32[16,8,32], index: 0, kind: input, shape index: {}]   ;;  %s7651_s1 = inlined_call_operand.hbm [shape: f32[16,8,32], index: 1, kind: input, shape index: {}]   ;;  %s7652_s2 = inlined_call_operand.hbm [shape: bf16[32,64], index: 2, kind: input, shape index: {}]   ;;  %s7653_s3 = inlined_call_operand.vmem [shape: f32[1,64], index: 3, kind: input, shape index: {}]   ;;  %s7654_s4 = inlined_call_operand.hbm [shape: bf16[32,32], index: 4, kind: input, shape index: {}]   ;;  %s7655_s5 = inlined_call_operand.vmem [shape: f32[1,32], index: 5, kind: input, shape index: {}]   ;;  %s7656_s6 = inlined_call_operand.hbm [shape: bf16[32,32], index: 6, kind: input, shape index: {}]   ;;  %s7657_s7 = inlined_call_operand.vmem [shape: f32[1,32], index: 7, kind: input, shape index: {}]   ;;  %s7658_s8 = inlined_call_operand.vmem [shape: f32[1,32], index: 8, kind: input, shape index: {}]   ;;  %s7659_s9 = inlined_call_operand.vmem [shape: f32[1,32], index: 9, kind: input, shape index: {}]   ;;  %s7660_s10 = inlined_call_operand.hbm [shape: f32[16,8,32], index: 10, kind: output, shape index: {}]  }
   0x1   :  { %7668 = sst [smem:[#allocation20_spill]] %s7650_s0 }
   0x2   :  { %7669 = sst [smem:[#allocation21_spill]] %s7652_s2 }
   0x3   :  { %7670 = sst [smem:[#allocation22_spill]] %s7654_s4 }
   0x4   :  { %7671 = sst [smem:[#allocation23_spill]] %s7656_s6 }
   0x5   :  { %15 = vsyncpa [#allocation3], 0 }
   0x6   :  { %17 = vsyncpa [#allocation3 + $0x1], 0 }
   0x7   :  { %18 = vsyncpa [#allocation6], 0 }
   0x8   :  { %20 = vsyncpa [#allocation6 + $0x1], 0 }
   0x9   :  { %21 = vsyncpa [#allocation9], 0 }
   0xa   :  { %22 = vsyncpa [#allocation4], 0 }
   0xb   :  { %24 = vsyncpa [#allocation4 + $0x1], 0  ;;  %s6268_s13 = smov 0   ;;  %s6270_s14 = smov 0  }
   0xc   :  { %s6272_s15 = smov 0   ;;  %s6274_s16 = smov 0  }
   0xd LB: > { %7672 = sst [smem:[#allocation17_spill]] %s6187_s15  ;;  %s6289_s17 = sadd.s32 4294967295, %s6191_s16   ;;  %s6191_s16 = sphi %s6274_s16, %s7695_s16   ;;  %s6187_s15 = sphi %s6272_s15, %s7697_s15   ;;  %s6183_s14 = sphi %s6270_s14, %s7699_s14   ;;  %s6179_s13 = sphi %s6268_s13, %s7698_s13  }
   0xe   : > { %s4863_s18 = sadd.s32 4294967294, %s6191_s16   ;;  %p50_p0 = scmp.ne.s32.totalorder %s6183_s14, %s6179_s13 }
   0xf   : > { %p7661_p1 = scmp.eq.s32.totalorder %s6289_s17, 0  ;;  %p274_p3 = scmp.eq.s32.totalorder %s4863_s18, 1 }
  0x10   : > { %p4864_p5 = scmp.ge.s32.totalorder %s6191_s16, 1  ;;  %p281_p7 = scmp.lt.s32.totalorder %s6191_s16, 3 }
  0x11   : > { %p6298_p4 = por %p7661_p1, %p50_p0  ;;  %p6303_p6 = por %p274_p3, %p50_p0 }
  0x12   : > { %p6308_p8 = pnand %p4864_p5, %p281_p7  ;;  %s6193_s22 = smov [#allocation7]  }
  0x13   : > { %s7673_s19 = scalar_select %p6298_p4, 1, 0 }
  0x14   : > { %s7674_s20 = scalar_select %p6303_p6, 1, 0 }
  0x15   : > { %s293_s23 = sshll.u32 %s6193_s22, 4  ;;  %p5565_p9 = pneg %p6308_p8  ;;  %s294_s23 = int_to_ptr.vmem [resolvable:$true] %s293_s23 }
  0x16   : > { %s6194_s25 = smov [#allocation8]   ;;  %s6195_s27 = smov [#allocation10]  }
  0x17   : > { %p6317_p11 = pnand %p5565_p9, %p7661_p1  ;;  %s309_s26 = sshll.u32 %s6194_s25, 4  ;;  %s310_s26 = int_to_ptr.vmem [resolvable:$true] %s309_s26 }
  0x18   : > { %s325_s28 = sshll.u32 %s6195_s27, 4  ;;  %s5992_s29 = scalar_lea.vmem %s294_s23, 256  ;;  %s326_s28 = int_to_ptr.vmem [resolvable:$true] %s325_s28 }
  0x19   : > { %p5983_p12 = pneg %p6317_p11  ;;  %p5993_p13 = scmp.ne.s32.totalorder %s294_s23, %s5992_s29 }
  0x1a   : > { %p6000_p5 = scmp.lt.s32.totalorder %s294_s23, %s294_s23  ;;  %p6001_p7 = scmp.lt.s32.totalorder %s5992_s29, %s5992_s29 }
  0x1b   : > { %p5995_p0 = pnand %p5993_p13, %p5983_p12 }
  0x1c   : > { %p6002_p9 = por %p6001_p7, %p6000_p5 }
  0x1d   : > { %p5996_p3 = pneg %p5995_p0 }
  0x1f   : > { %p6003_p10 = pnand %p6002_p9, %p5996_p3 }
  0x21   : > { %6006 = shalt.err (!%p6003_p10)
}
  0x22   : > { %s6196_s30 = smov 64   ;;  %s6197_s11 = smov 4  }
  0x23   : > { %s7677_s2 = sld [smem:[#allocation21_spill]]  ;;  %s6018_s22 = scalar_lea.vmem %s310_s26, 256 }
  0x24   : > { %p6019_p1 = scmp.ne.s32.totalorder %s310_s26, %s6018_s22  ;;  %p6026_p2 = scmp.lt.s32.totalorder %s310_s26, %s310_s26 }
  0x25   : > { %p6027_p6 = scmp.lt.s32.totalorder %s6018_s22, %s6018_s22 }
  0x26   : > { %p6021_p13 = pnand %p6019_p1, %p5983_p12 }
  0x27   : > { %p6028_p5 = por %p6027_p6, %p6026_p2 }
  0x28   : > { %p6022_p0 = pneg %p6021_p13 }
  0x29   : > { %5568 = dma.hbm_to_vmem [thread:$0]  (!%p6317_p11), %s7677_s2, 256, %s294_s23, [#allocation6], %s6196_s30, %s6196_s30, %s6197_s11  }
  0x2a   : > { %p6029_p3 = pnand %p6028_p5, %p6022_p0 }
  0x2c   : > { %6032 = shalt.err (!%p6029_p3)
}
  0x2d   : > { %s7678_s4 = sld [smem:[#allocation22_spill]]  ;;  %s6044_s23 = scalar_lea.vmem %s326_s28, 256 }
  0x2e   : > { %p6045_p10 = scmp.ne.s32.totalorder %s326_s28, %s6044_s23  ;;  %p6052_p9 = scmp.lt.s32.totalorder %s326_s28, %s326_s28 }
  0x2f   : > { %p6053_p13 = scmp.lt.s32.totalorder %s6044_s23, %s6044_s23 }
  0x30   : > { %p6047_p7 = pnand %p6045_p10, %p5983_p12 }
  0x31   : > { %p6054_p4 = por %p6053_p13, %p6052_p9 }
  0x32   : > { %p6048_p1 = pneg %p6047_p7 }
  0x33   : > { %5571 = dma.hbm_to_vmem [thread:$0]  (!%p6317_p11), %s7678_s4, 256, %s310_s26, [#allocation9], %s6196_s30, %s6196_s30, %s6197_s11  }
  0x34   : > { %p6055_p2 = pnand %p6054_p4, %p6048_p1 }
  0x36   : > { %6058 = shalt.err (!%p6055_p2)
}
  0x37   : > { %s7679_s6 = sld [smem:[#allocation23_spill]]  ;;  %s6348_s26 = sadd.s32 1, %s6191_s16  }
  0x38   : > { %7680 = sst [smem:[#allocation18_spill]] %s6348_s26  ;;  %s34_s24 = ssub.s32 %s6191_s16, %s6348_s26 }
  0x39   : > { %s37_s18 = sadd.s32 1, %s6187_s15  ;;  %p35_p4 = scmp.eq.s32.totalorder %s34_s24, 0 }
  0x3a   : > { %p44_p6 = scmp.ne.s32.totalorder %s6187_s15, %s6183_s14  ;;  %p45_p12 = scmp.eq.s32.totalorder %s6191_s16, 0 }
  0x3b   : > { %p5589_p0 = scmp.lt.s32.totalorder %s6191_s16, 2  ;;  %p7682_p3 = scmp.eq.s32.totalorder %s6289_s17, 1 }
  0x3c   : > { %s6358_s22 = scalar_select %p35_p4, %s6187_s15, %s37_s18  }
  0x3d   : > { %5574 = dma.hbm_to_vmem [thread:$0]  (!%p6317_p11), %s7679_s6, 256, %s326_s28, [#allocation9], %s6196_s30, %s6196_s30, %s6197_s11  }
  0x3e   : > { %7681 = sst [smem:[#allocation19_spill]] %s6358_s22  ;;  %p46_p5 = por %p45_p12, %p44_p6 }
  0x3f   : > { %p6362_p10 = por %p7682_p3, %p44_p6  ;;  %s348_s27 = sand.u32 1, %s6187_s15  }
  0x40   : > { %s7663_s23 = sshll.u32 %s6191_s16, 10  ;;  %s6368_s28 = sshll.u32 %s348_s27, 6 }
  0x41   : > { %s7683_s25 = scalar_select %p6362_p10, 1, 0 }
  0x42   : > { %s7684_s0 = sld [smem:[#allocation20_spill]]  ;;  %s352_s12 = scalar_lea.vmem [#allocation2], %s6368_s28 }
  0x43   : > { %s359_s24 = sshll.u32 %s352_s12, 4  ;;  %p6378_p11 = pnand %p5589_p0, %p46_p5  ;;  %s6382_s24 = int_to_ptr.vmem [resolvable:$true] %s359_s24 }
  0x44   : > { %s6384_s2 = scalar_lea.sflag [#allocation3], %s348_s27 }
  0x45   : > { %p6061_p1 = pneg %p6378_p11 }
  0x48   : > { %s6375_s29 = scalar_lea.hbm %s7684_s0, %s7663_s23  ;;  %s6064_s12 = scalar_lea.hbm %s7684_s0, 2048 }
  0x49   : > { %s6059_s4 = scalar_lea.hbm %s6375_s29, 1024  ;;  %p6065_p2 = scmp.lt.s32.totalorder %s6375_s29, %s7684_s0 }
  0x4a   : > { %p6060_p7 = scmp.ne.s32.totalorder %s6375_s29, %s6059_s4  ;;  %p6066_p4 = scmp.lt.s32.totalorder %s6064_s12, %s6059_s4 }
  0x4c   : > { %p6062_p9 = pnand %p6061_p1, %p6060_p7  ;;  %p6067_p6 = por %p6066_p4, %p6065_p2 }
  0x4e   : > { %p6063_p13 = pneg %p6062_p9 }
  0x50   : > { %p6068_p12 = pnand %p6067_p6, %p6063_p13 }
  0x52   : > { %6071 = shalt.err (!%p6068_p12)
}
  0x53   : > { %s6072_s27 = scalar_lea.vmem %s6382_s24, 1024  ;;  %s6198_s30 = smov [#allocation2]  }
  0x54   : > { %p6073_p0 = scmp.ne.s32.totalorder %s6382_s24, %s6072_s27  ;;  %s6077_s11 = sshll.u32 %s6198_s30, 4  ;;  %s6078_s11 = int_to_ptr.vmem [resolvable:$false] %s6077_s11 }
  0x55   : > { %s6079_s22 = scalar_lea.vmem %s6078_s11, 2048  ;;  %p6080_p7 = scmp.lt.s32.totalorder %s6382_s24, %s6078_s11 }
  0x56   : > { %p6075_p5 = pnand %p6073_p0, %p6061_p1  ;;  %p6081_p9 = scmp.lt.s32.totalorder %s6079_s22, %s6072_s27 }
  0x58   : > { %p6076_p3 = pneg %p6075_p5  ;;  %p6082_p10 = por %p6081_p9, %p6080_p7 }
  0x5a   : > { %p6083_p2 = pnand %p6082_p10, %p6076_p3 }
  0x5c   : > { %6086 = shalt.err (!%p6083_p2)
}
  0x5d   : > { %s6199_s4 = smov 128   ;;  %s6200_s6 = smov 8  }
  0x5e   : > { %5578 = dma.hbm_to_vmem [thread:$0]  (!%p6378_p11), %s6375_s29, 1024, %s6382_s24, %s6384_s2, %s6199_s4, %s6199_s4, %s6200_s6  }
  0x5f   : > { %s7686_s23 = sshll.u32 %s6191_s16, 10  ;;  %s373_s30 = scalar_lea.vmem [#allocation5], %s6368_s28 }
  0x60   : > { %s6419_s27 = scalar_lea.hbm %s7651_s1, %s7686_s23  ;;  %s380_s11 = sshll.u32 %s373_s30, 4  ;;  %s6423_s11 = int_to_ptr.vmem [resolvable:$true] %s380_s11 }
  0x61   : > { %s369_s0 = sand.u32 1, %s6191_s16   ;;  %s6087_s26 = scalar_lea.hbm %s6419_s27, 1024 }
  0x62   : > { %s370_s15 = scalar_lea.sflag [#allocation6], %s369_s0  ;;  %p6088_p10 = scmp.ne.s32.totalorder %s6419_s27, %s6087_s26 }
  0x63   : > { %s6092_s24 = scalar_lea.hbm %s7651_s1, 2048  ;;  %p6093_p6 = scmp.lt.s32.totalorder %s6419_s27, %s7651_s1 }
  0x64   : > { %p6090_p13 = pnand %p6088_p10, %p6061_p1  ;;  %p6094_p12 = scmp.lt.s32.totalorder %s6092_s24, %s6087_s26 }
  0x66   : > { %p6091_p4 = pneg %p6090_p13  ;;  %p6095_p0 = por %p6094_p12, %p6093_p6 }
  0x68   : > { %p6096_p5 = pnand %p6095_p0, %p6091_p4 }
  0x6a   : > { %6099 = shalt.err (!%p6096_p5)
}
  0x6b   : > { %s6100_s0 = scalar_lea.vmem %s6423_s11, 1024  ;;  %s6201_s28 = smov [#allocation5]  }
  0x6c   : > { %p6101_p3 = scmp.ne.s32.totalorder %s6423_s11, %s6100_s0  ;;  %s6105_s12 = sshll.u32 %s6201_s28, 4  ;;  %s6106_s12 = int_to_ptr.vmem [resolvable:$false] %s6105_s12 }
  0x6d   : > { %s6107_s30 = scalar_lea.vmem %s6106_s12, 2048  ;;  %p6108_p2 = scmp.lt.s32.totalorder %s6423_s11, %s6106_s12 }
  0x6e   : > { %p6103_p7 = pnand %p6101_p3, %p6061_p1  ;;  %p6109_p10 = scmp.lt.s32.totalorder %s6107_s30, %s6100_s0 }
  0x70   : > { %p6104_p9 = pneg %p6103_p7  ;;  %p6110_p13 = por %p6109_p10, %p6108_p2 }
  0x72   : > { %p6111_p6 = pnand %p6110_p13, %p6104_p9 }
  0x74   : > { %6114 = shalt.err (!%p6111_p6)
}
  0x75   : > { %5581 = dma.hbm_to_vmem [thread:$0]  (!%p6378_p11), %s6419_s27, 1024, %s6423_s11, %s370_s15, %s6199_s4, %s6199_s4, %s6200_s6  }
  0x76   : > { %392 = sbr.rel (%p6308_p8) target bundleno = 2114 (0x842), region = 60  ;;  %s6453_s26 = sand.u32 (!%p6308_p8), 1, %s6183_s14  }
  0x77   : > { %s6456_s2 = sshll.u32 (!%p6308_p8), %s6453_s26, 6  ;;  %s395_s29 = scalar_lea.sflag (!%p6308_p8), [#allocation3], %s6453_s26 }
  0x78   : > { %s6460_s18 = scalar_lea.vmem (!%p6308_p8), [#allocation2], %s6456_s2  ;;  %p7687_p1 = scmp.ne.s32.totalorder (!%p6308_p8), %s7673_s19, 0 }
  0x7b   : > { %6158 = dma.done.wait (%p7687_p1), %s395_s29, 1024  }
  0x7c   : > { %6160 = vsyncadd (%p7687_p1), %s395_s29, 4294966272  ;;  %s403_s15 = sand.u32 1, %s6289_s17   ;;  %s6468_s4 = scalar_lea.vmem [#allocation5], %s6456_s2 }
  0x7d   : > { %s404_s21 = scalar_lea.sflag [#allocation6], %s403_s15 }
  0x7e   : > { %6162 = dma.done.wait (%p7687_p1), %s404_s21, 1024  }
  0x7f   : > { %6164 = vsyncadd (%p7687_p1), %s404_s21, 4294966272  ;;  %p7688_p8 = scmp.eq.s32.totalorder %s6289_s17, 0 }
  0x81   : > { %6166 = dma.done.wait (%p7688_p8), [#allocation6], 256   ;;  %p7689_p11 = pmov %p7688_p8 }
  0x82   : > { %p7690_p4 = pmov %p7688_p8 }
  0x83   : > { %6168 = vsyncadd (%p7689_p11), [#allocation6], 4294967040 }
  0x84   : > { %6170 = dma.done.wait (%p7690_p4), [#allocation9], 512   ;;  %p7691_p12 = pmov %p7690_p4 }
  0x85   : > { %v5823_v0 = vld [vmem:[#allocation7 + $0x8] sm:$0xff]   ;;  %v5824_v1 = vld [vmem:[#allocation7] sm:$0xff]   ;;  %v467_v12 = vld [vmem:[%s6460_s18 + $0x10] sm:$0xff]  ;;  %vm516_vm0 = vcmask 261120   ;;  %v6202_v55 = vmov 0.0   ;;  %s6203_s27 = smov 120  }
  0x86   : > { %6172 = vsyncadd (%p7691_p12), [#allocation9], 4294966784  ;;  %5123 = vmatprep.subr.bf16.mxu0 %v5823_v0  ;;  %5543 = vmatprep.subr.bf16.mxu1 %v5823_v0  ;;  %v465_v2 = vld [vmem:[%s6460_s18] sm:$0xff]  ;;  %v466_v3 = vld [vmem:[%s6460_s18 + $0x8] sm:$0xff]  ;;  %vm6204_vm1 = vmmov 0   ;;  %s6205_s11 = smov 96  }
  0x87   : > { %v473_v4 = vld [vmem:[%s6468_s4] sm:$0xff]  ;;  %5124 = vmatpush3.bf16.msra.mxu0 %v5823_v0  ;;  %5545 = vmatpush3.bf16.msra.mxu1 %v5823_v0  ;;  %v474_v5 = vld [vmem:[%s6468_s4 + $0x8] sm:$0xff]  ;;  %v468_v15 = vld [vmem:[%s6460_s18 + $0x18] sm:$0xff]  ;;  %v594_v32 = vpack.c.bf16 %v466_v3, %v465_v2  ;;  %s6206_s24 = smov 112   ;;  %vm925_vm2 = vcmask 64512   ;;  %s6207_s23 = smov 104  }
  0x88   : > { %v481_v6 = vadd.f32 %v473_v4, %v465_v2  ;;  %v469_v7 = vld [vmem:[%s6460_s18 + $0x20] sm:$0xff]  ;;  %v470_v8 = vld [vmem:[%s6460_s18 + $0x28] sm:$0xff]  ;;  %5125 = vmatprep.subr.bf16.mxu0 %v5824_v1  ;;  %5544 = vmatprep.subr.bf16.mxu1 %v5824_v1  ;;  %v482_v9 = vadd.f32 %v474_v5, %v466_v3  ;;  %v475_v16 = vld [vmem:[%s6468_s4 + $0x10] sm:$0xff]  ;;  %v595_v33 = vpack.c.bf16 %v468_v15, %v467_v12  ;;  %vm2878_vm3 = vcmask 1043456   ;;  %s6208_s28 = smov 8   ;;  %s6209_s12 = smov 16  }
  0x89   : > { %v477_v10 = vld [vmem:[%s6468_s4 + $0x20] sm:$0xff]  ;;  %v478_v11 = vld [vmem:[%s6468_s4 + $0x28] sm:$0xff]  ;;  %v476_v17 = vld [vmem:[%s6468_s4 + $0x18] sm:$0xff]  ;;  %v483_v19 = vadd.f32 %v475_v16, %v467_v12  ;;  %v596_v34 = vpack.c.bf16 %v470_v8, %v469_v7  ;;  %s6210_s30 = smov 24   ;;  %vm4452_vm4 = vcmask 130048   ;;  %vm4461_vm5 = vcmask 195584  }
  0x8a   : > { %v485_v13 = vadd.f32 %v477_v10, %v469_v7  ;;  %v486_v14 = vadd.f32 %v478_v11, %v470_v8  ;;  %v489_v18 = vpack.c.bf16 %v482_v9, %v481_v6  ;;  %v484_v20 = vadd.f32 %v476_v17, %v468_v15  ;;  %v471_v21 = vld [vmem:[%s6460_s18 + $0x30] sm:$0xff]  ;;  %v472_v22 = vld [vmem:[%s6460_s18 + $0x38] sm:$0xff]  ;;  %v4882_v39 = vld [vmem:[%s7653_s3] ss:$0 sm:$0xff]  ;;  %s7575_s6 = scalar_lea.vmem [#allocation11], %s6456_s2  ;;  %s4976_s2 = sshll.u32 %s6289_s17, 10 }
  0x8b   : > { %v479_v23 = vld [vmem:[%s6468_s4 + $0x30] sm:$0xff]  ;;  %5126 = vmatpush3.bf16.msra.mxu0 %v5824_v1  ;;  %5546 = vmatpush3.bf16.msra.mxu1 %v5824_v1  ;;  %v480_v25 = vld [vmem:[%s6468_s4 + $0x38] sm:$0xff]  ;;  %v597_v35 = vpack.c.bf16 %v472_v22, %v471_v21  ;;  %s4726_s17 = scalar_lea.sflag [#allocation4], %s6453_s26  ;;  %p7692_p5 = scmp.ne.s32.totalorder %s7683_s25, 0 }
  0x8c   : > { %v491_v24 = vpack.c.bf16 %v486_v14, %v485_v13  ;;  %v487_v26 = vadd.f32 %v479_v23, %v471_v21  ;;  %5127 = vmatprep.mubr.msk.bf16.mxu0 %vm516_vm0, %v489_v18  ;;  %v490_v27 = vpack.c.bf16 %v484_v20, %v483_v19  ;;  %v488_v28 = vadd.f32 %v480_v25, %v472_v22  ;;  %v5825_v30 = vld [vmem:[#allocation8 + $0x8] sm:$0xff]   ;;  %v5826_v31 = vld [vmem:[#allocation8] sm:$0xff]   ;;  %s6211_s0 = smov [#allocation11]  }
  0x8d   : > { %5135 = vmatprep.subr.bf16.mxu1 %v5825_v30  ;;  %5147 = vmatprep.subr.bf16.mxu0 %v6202_v55 }
  0x8e   : > { %5131 = vmatprep.mubr.msk.bf16.mxu1 %vm516_vm0, %v491_v24  ;;  %5128 = vmatmul.mubr.msk.bf16.vlgmr.msra.gmra.mxu0 %vm516_vm0, %v490_v27  ;;  %v492_v29 = vpack.c.bf16 %v488_v28, %v487_v26 }
  0x8f   : > { %5149 = vmatprep.mubr.msk.bf16.mxu0 %vm6204_vm1, %v6202_v55 }
  0x90   : > { %5132 = vmatmul.mubr.msk.bf16.vlgmr.msra.gmra.mxu1 %vm516_vm0, %v492_v29 }
  0x91   : > { %5139 = vmatprep.mubr.msk.bf16.mxu1 %vm516_vm0, %v594_v32  ;;  %5136 = vmatpush3.bf16.msra.mxu1 %v5825_v30 }
  0x92   : > { %5137 = vmatprep.subr.bf16.mxu1 %v5826_v31 }
  0x95   : > { %5138 = vmatpush3.bf16.msra.mxu1 %v5826_v31 }
  0x96   : > { %5153 = vmatprep.subr.bf16.mxu1 %v6202_v55 }
  0x98   : > { %5140 = vmatmul.mubr.msk.bf16.vlgmr.msra.gmra.mxu1 %vm516_vm0, %v595_v33 }
  0x99   : > { %5143 = vmatprep.mubr.msk.bf16.mxu1 %vm516_vm0, %v596_v34 }
  0xa0   : > { %5144 = vmatmul.mubr.msk.bf16.gmra.mxu1 %vm516_vm0, %v597_v35 }
  0xa1   : > { %5155 = vmatprep.mubr.msk.bf16.mxu1 %vm6204_vm1, %v6202_v55 }
 0x14e   : > { %v5129_v36 = vpop.f32.mrf.mxu0 }
 0x14f   : > { %v572_v43 = vadd.f32 %v5129_v36, %v4882_v39 }
 0x150   : > { %v5133_v37 = vpop.f32.mrf.mxu1  ;;  %v563_v38 = vpop.f32.mrf.mxu0 }
 0x151   : > { %v564_v46 = vadd.f32 %v4882_v39, %v563_v38  ;;  %v588_v51 = vadd.f32 %v5133_v37, %v4882_v39  ;;  %v6536_v60 = vpack.c.bf16 %v572_v43, %v572_v43 }
 0x152   : > { %v579_v40 = vpop.f32.mrf.mxu1  ;;  %v5130_v41 = vpop.f32.mrf.mxu0 }
 0x153   : > { %v575_v42 = vadd.f32 %v5130_v41, %v4882_v39  ;;  %v580_v47 = vadd.f32 %v4882_v39, %v579_v40  ;;  %v6528_v58 = vpack.c.bf16 %v564_v46, %v564_v46  ;;  %v6555_v0 = vpack.c.bf16 %v588_v51, %v588_v51 }
 0x154   : > { %v5134_v44 = vpop.f32.mrf.mxu1  ;;  %v566_v45 = vpop.f32.mrf.mxu0 }
 0x155   : > { %v567_v48 = vadd.f32 %v4882_v39, %v566_v45  ;;  %v6509_v50 = vpack.i.bf16 %v575_v42, %v572_v43  ;;  %v591_v52 = vadd.f32 %v5134_v44, %v4882_v39  ;;  %v6541_v61 = vpack.c.bf16 %v575_v42, %v575_v42 }
 0x156   : > { %v582_v49 = vpop.f32.mrf.mxu1  ;;  %v6547_v62 = vpack.c.bf16 %v580_v47, %v580_v47 }
 0x157   : > { %v583_v53 = vadd.f32 %v4882_v39, %v582_v49  ;;  %v5643_v54 = vpack.i.bf16 %v567_v48, %v564_v46  ;;  %v6516_v57 = vpack.i.bf16 %v591_v52, %v588_v51  ;;  %v6530_v59 = vpack.c.bf16 %v567_v48, %v567_v48 }
 0x158   : > { %v6561_v1 = vpack.c.bf16 %v591_v52, %v591_v52 }
 0x159   : > { %v6513_v56 = vpack.i.bf16 %v583_v53, %v580_v47  ;;  %5644 = vrot.lane.b32.xlu0 %v5643_v54, %s6203_s27  ;;  %v6549_v63 = vpack.c.bf16 %v583_v53, %v583_v53 }
 0x15b   : > { %5654 = vrot.lane.b32.xlu1 %v6513_v56, %s6203_s27 }
 0x15d   : > { %5649 = vrot.lane.b32.xlu0 %v6509_v50, %s6203_s27 }
 0x15f   : > { %5659 = vrot.lane.b32.xlu1 %v6516_v57, %s6203_s27 }
 0x161   : > { %923 = vrot.lane.b32.xlu0 %v6528_v58, %s6205_s11 }
 0x163   : > { %973 = vrot.lane.b32.xlu1 %v6530_v59, %s6205_s11 }
 0x165   : > { %5664 = vrot.lane.b32.xlu0 %v5643_v54, %s6206_s24 }
 0x167   : > { %1022 = vrot.lane.b32.xlu1 %v6536_v60, %s6205_s11 }
 0x169   : > { %1071 = vrot.lane.b32.xlu0 %v6541_v61, %s6205_s11 }
 0x16b   : > { %5669 = vrot.lane.b32.xlu1 %v6509_v50, %s6206_s24 }
 0x16d   : > { %1120 = vrot.lane.b32.xlu0 %v6547_v62, %s6205_s11 }
 0x16f   : > { %1169 = vrot.lane.b32.xlu1 %v6549_v63, %s6205_s11 }
 0x171   : > { %5674 = vrot.lane.b32.xlu0 %v6513_v56, %s6206_s24 }
 0x173   : > { %1218 = vrot.lane.b32.xlu1 %v6555_v0, %s6205_s11 }
 0x175   : > { %1267 = vrot.lane.b32.xlu0 %v6561_v1, %s6205_s11 }
 0x177   : > { %5679 = vrot.lane.b32.xlu1 %v6516_v57, %s6206_s24 }
 0x1cb   : > { %v5645_v2 = vpop.permute.xlu0 %5644 }
 0x1cc   : > { %v5647_v3 = vunpack.i.h.bf16 %v5645_v2  ;;  %v5646_v4 = vunpack.i.l.bf16 %v5645_v2 }
 0x1cd   : > { %v5655_v5 = vpop.permute.xlu1 %5654 }
 0x1ce   : > { %v6567_v6 = vpack.c.bf16 %v5647_v3, %v5647_v3  ;;  %v6569_v7 = vpack.c.bf16 %v5646_v4, %v5646_v4  ;;  %v5657_v16 = vunpack.i.h.bf16 %v5655_v5  ;;  %v5656_v17 = vunpack.i.l.bf16 %v5655_v5  ;;  %v4889_v3 = vld [vmem:[%s7655_s5] ss:$0 sm:$0xff] }
 0x1cf   : > { %v5650_v8 = vpop.permute.xlu0 %5649 }
 0x1d0   : > { %v5651_v9 = vunpack.i.l.bf16 %v5650_v8  ;;  %1365 = vrot.lane.b32.xlu1 %v6567_v6, %s6205_s11  ;;  %1316 = vrot.lane.b32.xlu0 %v6569_v7, %s6205_s11  ;;  %v5652_v11 = vunpack.i.h.bf16 %v5650_v8  ;;  %v6590_v23 = vpack.c.bf16 %v5657_v16, %v5657_v16  ;;  %v6592_v24 = vpack.c.bf16 %v5656_v17, %v5656_v17 }
 0x1d1   : > { %v5660_v10 = vpop.permute.xlu1 %5659 }
 0x1d2   : > { %v6575_v12 = vpack.c.bf16 %v5651_v9, %v5651_v9  ;;  %v6582_v19 = vpack.c.bf16 %v5652_v11, %v5652_v11  ;;  %v5661_v22 = vunpack.i.l.bf16 %v5660_v10  ;;  %v5662_v29 = vunpack.i.h.bf16 %v5660_v10 }
 0x1d3   : > { %v924_v13 = vpop.permute.xlu0 %923 }
 0x1d4   : > { %v930_v14 = vsel %vm925_vm2, %v924_v13, 0  ;;  %1414 = vrot.lane.b32.xlu1 %v6575_v12, %s6205_s11  ;;  %5684 = vrot.lane.b32.xlu0 %v5643_v54, %s6207_s23  ;;  %v6604_v30 = vpack.c.bf16 %v5661_v22, %v5661_v22  ;;  %v6615_v35 = vpack.c.bf16 %v5662_v29, %v5662_v29 }
 0x1d5   : > { %v974_v15 = vpop.permute.xlu1 %973  ;;  %5148 = vmatpush3.bf16.xpose.msra.mxu0 %v930_v14 }
 0x1d6   : > { %v979_v18 = vsel %vm925_vm2, %v974_v15, 0  ;;  %5159 = vmatprep.subr.bf16.mxu0 %v6202_v55 }
 0x1d7   : > { %5154 = vmatpush3.bf16.xpose.msra.mxu1 %v979_v18  ;;  %v5665_v20 = vpop.permute.xlu0 %5664 }
 0x1d8   : > { %5689 = vrot.lane.b32.xlu1 %v6509_v50, %s6207_s23  ;;  %1463 = vrot.lane.b32.xlu0 %v6582_v19, %s6205_s11  ;;  %v5667_v32 = vunpack.i.h.bf16 %v5665_v20  ;;  %v5666_v34 = vunpack.i.l.bf16 %v5665_v20 }
 0x1d9   : > { %v1023_v21 = vpop.permute.xlu1 %1022  ;;  %5165 = vmatprep.subr.bf16.mxu1 %v6202_v55 }
 0x1da   : > { %v1028_v27 = vsel %vm925_vm2, %v1023_v21, 0  ;;  %v6625_v39 = vpack.c.bf16 %v5667_v32, %v5667_v32  ;;  %v6630_v43 = vpack.c.bf16 %v5666_v34, %v5666_v34 }
 0x1db   : > { %v1072_v25 = vpop.permute.xlu0 %1071 }
 0x1dc   : > { %v1077_v26 = vsel %vm925_vm2, %v1072_v25, 0  ;;  %1561 = vrot.lane.b32.xlu1 %v6590_v23, %s6205_s11  ;;  %1512 = vrot.lane.b32.xlu0 %v6592_v24, %s6205_s11 }
 0x1dd   : > { %v5670_v28 = vpop.permute.xlu1 %5669  ;;  %5150 = vmatmul.mubr.msk.bf16.vlgmr.msra.gmra.mxu0 %vm925_vm2, %v6528_v58 }
 0x1de   : > { %5156 = vmatmul.mubr.msk.bf16.vlgmr.msra.gmra.mxu1 %vm925_vm2, %v6530_v59  ;;  %5160 = vmatpush3.bf16.xpose.msra.mxu0 %v1028_v27  ;;  %v5672_v40 = vunpack.i.h.bf16 %v5670_v28  ;;  %v5671_v41 = vunpack.i.l.bf16 %v5670_v28  ;;  %v5141_v59 = vpop.f32.mrf.mxu1 }
 0x1df   : > { %5166 = vmatpush3.bf16.xpose.msra.mxu1 %v1077_v26  ;;  %v1121_v31 = vpop.permute.xlu0 %1120  ;;  %5167 = vmatprep.mubr.msk.bf16.mxu1 %vm6204_vm1, %v6202_v55 }
 0x1e0   : > { %1610 = vrot.lane.b32.xlu1 %v6604_v30, %s6205_s11  ;;  %5694 = vrot.lane.b32.xlu0 %v6513_v56, %s6207_s23  ;;  %v1126_v36 = vsel %vm925_vm2, %v1121_v31, 0  ;;  %v6642_v46 = vpack.c.bf16 %v5672_v40, %v5672_v40  ;;  %v6644_v47 = vpack.c.bf16 %v5671_v41, %v5671_v41 }
 0x1e1   : > { %v1170_v33 = vpop.permute.xlu1 %1169  ;;  %5161 = vmatprep.mubr.msk.bf16.mxu0 %vm6204_vm1, %v6202_v55  ;;  %5171 = vmatprep.subr.bf16.mxu0 %v6202_v55 }
 0x1e2   : > { %5177 = vmatprep.subr.bf16.mxu1 %v6202_v55  ;;  %v1175_v42 = vsel %vm925_vm2, %v1170_v33, 0 }
 0x1e3   : > { %v5675_v38 = vpop.permute.xlu0 %5674 }
 0x1e4   : > { %5699 = vrot.lane.b32.xlu1 %v6516_v57, %s6207_s23  ;;  %1659 = vrot.lane.b32.xlu0 %v6615_v35, %s6205_s11  ;;  %v5677_v44 = vunpack.i.h.bf16 %v5675_v38  ;;  %v5676_v45 = vunpack.i.l.bf16 %v5675_v38 }
 0x1e5   : > { %v1219_v37 = vpop.permute.xlu1 %1218  ;;  %5162 = vmatmul.mubr.msk.bf16.vlgmr.msra.gmra.mxu0 %vm925_vm2, %v6536_v60  ;;  %v667_v60 = vpop.f32.mrf.mxu1 }
 0x1e6   : > { %5168 = vmatmul.mubr.msk.bf16.vlgmr.msra.gmra.mxu1 %vm925_vm2, %v6541_v61  ;;  %5172 = vmatpush3.bf16.xpose.msra.mxu0 %v1126_v36  ;;  %v1224_v50 = vsel %vm925_vm2, %v1219_v37, 0  ;;  %v6653_v51 = vpack.c.bf16 %v5677_v44, %v5677_v44  ;;  %v6658_v56 = vpack.c.bf16 %v5676_v45, %v5676_v45 }
 0x1e7   : > { %5178 = vmatpush3.bf16.xpose.msra.mxu1 %v1175_v42  ;;  %5173 = vmatprep.mubr.msk.bf16.mxu0 %vm6204_vm1, %v6202_v55  ;;  %v1268_v49 = vpop.permute.xlu0 %1267  ;;  %v5142_v61 = vpop.f32.mrf.mxu1 }
 0x1e8   : > { %1757 = vrot.lane.b32.xlu1 %v6625_v39, %s6205_s11  ;;  %1708 = vrot.lane.b32.xlu0 %v6630_v43, %s6205_s11  ;;  %v1273_v54 = vsel %vm925_vm2, %v1268_v49, 0  ;;  %v6691_v5 = vadd.f32 %v5142_v61, %v4889_v3 }
 0x1e9   : > { %5179 = vmatprep.mubr.msk.bf16.mxu1 %vm6204_vm1, %v6202_v55  ;;  %5183 = vmatprep.subr.bf16.mxu0 %v6202_v55  ;;  %v5680_v48 = vpop.permute.xlu1 %5679 }
 0x1ea   : > { %5189 = vmatprep.subr.bf16.mxu1 %v6202_v55  ;;  %v5682_v52 = vunpack.i.h.bf16 %v5680_v48  ;;  %v5681_v53 = vunpack.i.l.bf16 %v5680_v48 }
 0x1ec   : > { %1855 = vrot.lane.b32.xlu1 %v6642_v46, %s6205_s11  ;;  %1806 = vrot.lane.b32.xlu0 %v6644_v47, %s6205_s11  ;;  %v6669_v57 = vpack.c.bf16 %v5682_v52, %v5682_v52  ;;  %v6671_v58 = vpack.c.bf16 %v5681_v53, %v5681_v53 }
 0x1ed   : > { %5174 = vmatmul.mubr.msk.bf16.vlgmr.msra.gmra.mxu0 %vm925_vm2, %v6547_v62  ;;  %v670_v62 = vpop.f32.mrf.mxu1 }
 0x1ee   : > { %5180 = vmatmul.mubr.msk.bf16.vlgmr.msra.gmra.mxu1 %vm925_vm2, %v6549_v63  ;;  %5184 = vmatpush3.bf16.xpose.msra.mxu0 %v1224_v50  ;;  %v6695_v8 = vadd.f32 %v4889_v3, %v670_v62 }
 0x1ef   : > { %5190 = vmatpush3.bf16.xpose.msra.mxu1 %v1273_v54  ;;  %5185 = vmatprep.mubr.msk.bf16.mxu0 %vm6204_vm1, %v6202_v55  ;;  %v5145_v63 = vpop.f32.mrf.mxu1 }
 0x1f0   : > { %1953 = vrot.lane.b32.xlu1 %v6653_v51, %s6205_s11  ;;  %1904 = vrot.lane.b32.xlu0 %v6658_v56, %s6205_s11  ;;  %v6709_v15 = vadd.f32 %v5145_v63, %v4889_v3 }
 0x1f1   : > { %5191 = vmatprep.mubr.msk.bf16.mxu1 %vm6204_vm1, %v6202_v55  ;;  %5195 = vmatprep.subr.bf16.mxu0 %v6202_v55  ;;  %v683_v2 = vpop.f32.mrf.mxu1 }
 0x1f2   : > { %5201 = vmatprep.subr.bf16.mxu1 %v6202_v55  ;;  %v6705_v13 = vadd.f32 %v4889_v3, %v683_v2 }
 0x1f3   : > { %v5146_v4 = vpop.f32.mrf.mxu1 }
 0x1f4   : > { %2051 = vrot.lane.b32.xlu1 %v6669_v57, %s6205_s11  ;;  %2002 = vrot.lane.b32.xlu0 %v6671_v58, %s6205_s11  ;;  %v6711_v16 = vadd.f32 %v5146_v4, %v4889_v3 }
 0x1f5   : > { %5186 = vmatmul.mubr.msk.bf16.vlgmr.msra.gmra.mxu0 %vm925_vm2, %v6555_v0  ;;  %v6689_v0 = vadd.f32 %v5141_v59, %v4889_v3  ;;  %v686_v10 = vpop.f32.mrf.mxu1 }
 0x1f6   : > { %5192 = vmatmul.mubr.msk.bf16.vlgmr.msra.gmra.mxu1 %vm925_vm2, %v6561_v1  ;;  %5197 = vmatprep.mubr.msk.bf16.mxu0 %vm6204_vm1, %v6202_v55  ;;  %v6693_v1 = vadd.f32 %v4889_v3, %v667_v60  ;;  %v6707_v14 = vadd.f32 %v4889_v3, %v686_v10  ;;  %v6719_v18 = vpack.i.bf16 %v6711_v16, %v6709_v15 }
 0x1f7   : > { %5203 = vmatprep.mubr.msk.bf16.mxu1 %vm6204_vm1, %v6202_v55  ;;  %v6699_v9 = vpack.i.bf16 %v6691_v5, %v6689_v0 }
 0x1f8   : > { %v6703_v11 = vpack.i.bf16 %v6695_v8, %v6693_v1  ;;  %v6715_v17 = vpack.i.bf16 %v6707_v14, %v6705_v13 }
 0x242   : > { %v1366_v20 = vpop.permute.xlu1 %1365  ;;  %v1317_v21 = vpop.permute.xlu0 %1316 }
 0x243   : > { %v1371_v22 = vsel %vm925_vm2, %v1366_v20, 0  ;;  %v1322_v25 = vsel %vm925_vm2, %v1317_v21, 0 }
 0x244   : > { %5196 = vmatpush3.bf16.xpose.msra.mxu0 %v1322_v25  ;;  %5202 = vmatpush3.bf16.xpose.msra.mxu1 %v1371_v22 }
 0x245   : > { %5207 = vmatprep.subr.bf16.mxu0 %v6202_v55  ;;  %5213 = vmatprep.subr.bf16.mxu1 %v6202_v55 }
 0x246   : > { %v1415_v26 = vpop.permute.xlu1 %1414  ;;  %v5685_v27 = vpop.permute.xlu0 %5684 }
 0x247   : > { %v5687_v28 = vunpack.i.h.bf16 %v5685_v27  ;;  %v5686_v29 = vunpack.i.l.bf16 %v5685_v27  ;;  %v1420_v40 = vsel %vm925_vm2, %v1415_v26, 0 }
 0x249   : > { %v6725_v31 = vpack.c.bf16 %v5687_v28, %v5687_v28  ;;  %v6727_v32 = vpack.c.bf16 %v5686_v29, %v5686_v29 }
 0x24a   : > { %v5690_v33 = vpop.permute.xlu1 %5689  ;;  %v1464_v34 = vpop.permute.xlu0 %1463 }
 0x24b   : > { %v5692_v36 = vunpack.i.h.bf16 %v5690_v33  ;;  %v5691_v37 = vunpack.i.l.bf16 %v5690_v33  ;;  %v1469_v38 = vsel %vm925_vm2, %v1464_v34, 0  ;;  %5198 = vmatmul.mubr.msk.bf16.vlgmr.msra.gmra.mxu0 %vm925_vm2, %v6569_v7  ;;  %5204 = vmatmul.mubr.msk.bf16.vlgmr.msra.gmra.mxu1 %vm925_vm2, %v6567_v6 }
 0x24c   : > { %2149 = vrot.lane.b32.xlu1 %v6725_v31, %s6205_s11  ;;  %2100 = vrot.lane.b32.xlu0 %v6727_v32, %s6205_s11 }
 0x24d   : > { %5208 = vmatpush3.bf16.xpose.msra.mxu0 %v1420_v40  ;;  %5214 = vmatpush3.bf16.xpose.msra.mxu1 %v1469_v38  ;;  %v6739_v41 = vpack.c.bf16 %v5692_v36, %v5692_v36  ;;  %v6741_v42 = vpack.c.bf16 %v5691_v37, %v5691_v37 }
 0x24e   : > { %v1562_v44 = vpop.permute.xlu1 %1561  ;;  %v1513_v45 = vpop.permute.xlu0 %1512  ;;  %5209 = vmatprep.mubr.msk.bf16.mxu0 %vm6204_vm1, %v6202_v55  ;;  %5215 = vmatprep.mubr.msk.bf16.mxu1 %vm6204_vm1, %v6202_v55 }
 0x24f   : > { %5219 = vmatprep.subr.bf16.mxu0 %v6202_v55  ;;  %5225 = vmatprep.subr.bf16.mxu1 %v6202_v55  ;;  %v1567_v50 = vsel %vm925_vm2, %v1562_v44, 0  ;;  %v1518_v52 = vsel %vm925_vm2, %v1513_v45, 0 }
 0x250   : > { %2247 = vrot.lane.b32.xlu1 %v6739_v41, %s6205_s11  ;;  %2198 = vrot.lane.b32.xlu0 %v6741_v42, %s6205_s11 }
 0x252   : > { %v1611_v6 = vpop.permute.xlu1 %1610  ;;  %v5695_v7 = vpop.permute.xlu0 %5694 }
 0x253   : > { %v5697_v48 = vunpack.i.h.bf16 %v5695_v7  ;;  %v5696_v49 = vunpack.i.l.bf16 %v5695_v7  ;;  %v1616_v63 = vsel %vm925_vm2, %v1611_v6, 0 }
 0x254   : > { %5210 = vmatmul.mubr.msk.bf16.vlgmr.msra.gmra.mxu0 %vm925_vm2, %v6575_v12  ;;  %5216 = vmatmul.mubr.msk.bf16.vlgmr.msra.gmra.mxu1 %vm925_vm2, %v6582_v19 }
 0x255   : > { %5220 = vmatpush3.bf16.xpose.msra.mxu0 %v1518_v52  ;;  %5226 = vmatpush3.bf16.xpose.msra.mxu1 %v1567_v50  ;;  %v6759_v53 = vpack.c.bf16 %v5697_v48, %v5697_v48  ;;  %v6761_v54 = vpack.c.bf16 %v5696_v49, %v5696_v49 }
 0x256   : > { %v5700_v59 = vpop.permute.xlu1 %5699  ;;  %5221 = vmatprep.mubr.msk.bf16.mxu0 %vm6204_vm1, %v6202_v55  ;;  %5227 = vmatprep.mubr.msk.bf16.mxu1 %vm6204_vm1, %v6202_v55  ;;  %v1660_v12 = vpop.permute.xlu0 %1659 }
 0x257   : > { %v5702_v60 = vunpack.i.h.bf16 %v5700_v59  ;;  %v5701_v61 = vunpack.i.l.bf16 %v5700_v59  ;;  %2345 = vrot.lane.b32.xlu1 %v6759_v53, %s6205_s11  ;;  %2296 = vrot.lane.b32.xlu0 %v6761_v54, %s6205_s11  ;;  %v1665_v2 = vsel %vm925_vm2, %v1660_v12, 0 }
 0x258   : > { %5231 = vmatprep.subr.bf16.mxu0 %v6202_v55  ;;  %5237 = vmatprep.subr.bf16.mxu1 %v6202_v55 }
 0x259   : > { %v6773_v19 = vpack.c.bf16 %v5702_v60, %v5702_v60  ;;  %v6775_v62 = vpack.c.bf16 %v5701_v61, %v5701_v61 }
 0x25b   : > { %2443 = vrot.lane.b32.xlu1 %v6773_v19, %s6205_s11  ;;  %2394 = vrot.lane.b32.xlu0 %v6775_v62, %s6205_s11 }
 0x25c   : > { %5222 = vmatmul.mubr.msk.bf16.vlgmr.msra.gmra.mxu0 %vm925_vm2, %v6592_v24  ;;  %5228 = vmatmul.mubr.msk.bf16.vlgmr.msra.gmra.mxu1 %vm925_vm2, %v6590_v23  ;;  %v1758_v24 = vpop.permute.xlu1 %1757  ;;  %v1709_v23 = vpop.permute.xlu0 %1708 }
 0x25d   : > { %5232 = vmatpush3.bf16.xpose.msra.mxu0 %v1616_v63  ;;  %5238 = vmatpush3.bf16.xpose.msra.mxu1 %v1665_v2  ;;  %v1763_v3 = vsel %vm925_vm2, %v1758_v24, 0  ;;  %v1714_v4 = vsel %vm925_vm2, %v1709_v23, 0 }
 0x25e   : > { %5233 = vmatprep.mubr.msk.bf16.mxu0 %vm6204_vm1, %v6202_v55  ;;  %5239 = vmatprep.mubr.msk.bf16.mxu1 %vm6204_vm1, %v6202_v55 }
 0x25f   : > { %5243 = vmatprep.subr.bf16.mxu0 %v6202_v55  ;;  %5249 = vmatprep.subr.bf16.mxu1 %v6202_v55 }
 0x260   : > { %5704 = vrot.lane.b32.xlu1 %v6703_v11, %s6203_s27  ;;  %5709 = vrot.lane.b32.xlu0 %v6699_v9, %s6203_s27 }
 0x264   : > { %5234 = vmatmul.mubr.msk.bf16.vlgmr.msra.gmra.mxu0 %vm925_vm2, %v6604_v30  ;;  %5240 = vmatmul.mubr.msk.bf16.vlgmr.msra.gmra.mxu1 %vm925_vm2, %v6615_v35  ;;  %v1856_v30 = vpop.permute.xlu1 %1855  ;;  %v1807_v35 = vpop.permute.xlu0 %1806 }
 0x265   : > { %5244 = vmatpush3.bf16.xpose.msra.mxu0 %v1714_v4  ;;  %5250 = vmatpush3.bf16.xpose.msra.mxu1 %v1763_v3  ;;  %v1861_v10 = vsel %vm925_vm2, %v1856_v30, 0  ;;  %v1812_v20 = vsel %vm925_vm2, %v1807_v35, 0 }
 0x266   : > { %5245 = vmatprep.mubr.msk.bf16.mxu0 %vm6204_vm1, %v6202_v55  ;;  %5251 = vmatprep.mubr.msk.bf16.mxu1 %vm6204_vm1, %v6202_v55 }
 0x267   : > { %5255 = vmatprep.subr.bf16.mxu0 %v6202_v55  ;;  %5261 = vmatprep.subr.bf16.mxu1 %v6202_v55 }
 0x268   : > { %5714 = vrot.lane.b32.xlu1 %v6715_v17, %s6203_s27  ;;  %5724 = vrot.lane.b32.xlu0 %v6703_v11, %s6206_s24  ;;  %v1954_v21 = vpop.permute.xlu1 %1953 }
 0x269   : > { %v1959_v22 = vsel %vm925_vm2, %v1954_v21, 0 }
 0x26c   : > { %5246 = vmatmul.mubr.msk.bf16.vlgmr.msra.gmra.mxu0 %vm925_vm2, %v6630_v43  ;;  %5252 = vmatmul.mubr.msk.bf16.vlgmr.msra.gmra.mxu1 %vm925_vm2, %v6625_v39  ;;  %v1905_v43 = vpop.permute.xlu0 %1904  ;;  %v2052_v25 = vpop.permute.xlu1 %2051 }
 0x26d   : > { %5256 = vmatpush3.bf16.xpose.msra.mxu0 %v1812_v20  ;;  %5262 = vmatpush3.bf16.xpose.msra.mxu1 %v1861_v10  ;;  %v1910_v39 = vsel %vm925_vm2, %v1905_v43, 0  ;;  %v2057_v26 = vsel %vm925_vm2, %v2052_v25, 0 }
 0x26e   : > { %5257 = vmatprep.mubr.msk.bf16.mxu0 %vm6204_vm1, %v6202_v55  ;;  %5263 = vmatprep.mubr.msk.bf16.mxu1 %vm6204_vm1, %v6202_v55 }
 0x26f   : > { %5267 = vmatprep.subr.bf16.mxu0 %v6202_v55  ;;  %5273 = vmatprep.subr.bf16.mxu1 %v6202_v55 }
 0x270   : > { %5719 = vrot.lane.b32.xlu1 %v6719_v18, %s6203_s27  ;;  %s4739_s27 = sshll.u32 %s7575_s6, 4  ;;  %s7604_s27 = int_to_ptr.vmem [resolvable:$true] %s4739_s27 }
 0x271   : > { %s6115_s22 = scalar_lea.vmem %s7604_s27, 1024 }
 0x272   : > { %p6116_p0 = scmp.ne.s32.totalorder %s7604_s27, %s6115_s22 }
 0x274   : > { %5258 = vmatmul.mubr.msk.bf16.vlgmr.msra.gmra.mxu0 %vm925_vm2, %v6644_v47  ;;  %5264 = vmatmul.mubr.msk.bf16.vlgmr.msra.gmra.mxu1 %vm925_vm2, %v6642_v46  ;;  %v2003_v47 = vpop.permute.xlu0 %2002  ;;  %p6117_p3 = pnand %p6116_p0, %p7692_p5 }
 0x275   : > { %5268 = vmatpush3.bf16.xpose.msra.mxu0 %v1910_v39  ;;  %5274 = vmatpush3.bf16.xpose.msra.mxu1 %v1959_v22  ;;  %v2008_v46 = vsel %vm925_vm2, %v2003_v47, 0 }
 0x276   : > { %5729 = vrot.lane.b32.xlu1 %v6699_v9, %s6206_s24  ;;  %5269 = vmatprep.mubr.msk.bf16.mxu0 %vm6204_vm1, %v6202_v55  ;;  %p6118_p7 = pneg %p6117_p3 }
 0x277   : > { %5275 = vmatprep.mubr.msk.bf16.mxu1 %vm6204_vm1, %v6202_v55  ;;  %5285 = vmatprep.subr.bf16.mxu1 %v6202_v55 }
 0x278   : > { %5279 = vmatprep.subr.bf16.mxu0 %v6202_v55 }
 0x27c   : > { %5276 = vmatmul.mubr.msk.bf16.vlgmr.msra.gmra.mxu1 %vm925_vm2, %v6653_v51  ;;  %5270 = vmatmul.mubr.msk.bf16.vlgmr.msra.gmra.mxu0 %vm925_vm2, %v6658_v56 }
 0x27d   : > { %5280 = vmatpush3.bf16.xpose.msra.mxu0 %v2008_v46  ;;  %5286 = vmatpush3.bf16.xpose.msra.mxu1 %v2057_v26 }
 0x27e   : > { %5281 = vmatprep.mubr.msk.bf16.mxu0 %vm6204_vm1, %v6202_v55  ;;  %5287 = vmatprep.mubr.msk.bf16.mxu1 %vm6204_vm1, %v6202_v55 }
 0x27f   : > { %5291 = vmatprep.subr.bf16.mxu0 %v6202_v55  ;;  %5297 = vmatprep.subr.bf16.mxu1 %v6202_v55 }
 0x284   : > { %5282 = vmatmul.mubr.msk.bf16.vlgmr.msra.gmra.mxu0 %vm925_vm2, %v6671_v58  ;;  %5288 = vmatmul.mubr.msk.bf16.vlgmr.msra.gmra.mxu1 %vm925_vm2, %v6669_v57 }
 0x285   : > { %5293 = vmatprep.mubr.msk.bf16.mxu0 %vm6204_vm1, %v6202_v55  ;;  %5299 = vmatprep.mubr.msk.bf16.mxu1 %vm6204_vm1, %v6202_v55 }
 0x29d   : > { %v6861_v51 = vpop.f32.mrf.mxu0 }
 0x29e   : > { %v6863_v56 = vpop.f32.mrf.mxu1  ;;  %v2491_v27 = vsel %vm925_vm2, %v6861_v51, -inf }
 0x29f   : > { %v5151_v28 = vpop.f32.mrf.mxu0  ;;  %v2494_v58 = vsel %vm925_vm2, %v6863_v56, -inf  ;;  %2492 = vmax.xlane.f32.xlu0 %v2491_v27 }
 0x2a0   : > { %v5157_v29 = vpop.f32.mrf.mxu1  ;;  %2495 = vmax.xlane.f32.xlu1 %v2494_v58 }
 0x2a1   : > { %v969_v57 = vpop.f32.mrf.mxu0 }
 0x2a2   : > { %v1018_v33 = vpop.f32.mrf.mxu1 }
 0x2a3   : > { %v5152_v34 = vpop.f32.mrf.mxu0 }
 0x2a4   : > { %v5158_v36 = vpop.f32.mrf.mxu1 }
 0x2a5   : > { %v6869_v37 = vpop.f32.mrf.mxu0 }
 0x2a6   : > { %v6871_v38 = vpop.f32.mrf.mxu1  ;;  %v2497_v40 = vsel %vm925_vm2, %v6869_v37, -inf }
 0x2a7   : > { %v5163_v44 = vpop.f32.mrf.mxu0  ;;  %2498 = vmax.xlane.f32.xlu0 %v2497_v40  ;;  %v2500_v48 = vsel %vm925_vm2, %v6871_v38, -inf }
 0x2a8   : > { %v5169_v45 = vpop.f32.mrf.mxu1 }
 0x2a9   : > { %v1067_v6 = vpop.f32.mrf.mxu0 }
 0x2aa   : > { %v1116_v7 = vpop.f32.mrf.mxu1 }
 0x2ab   : > { %v5164_v49 = vpop.f32.mrf.mxu0  ;;  %2501 = vmax.xlane.f32.xlu0 %v2500_v48 }
 0x2ac   : > { %v5170_v50 = vpop.f32.mrf.mxu1 }
 0x2ad   : > { %v6877_v52 = vpop.f32.mrf.mxu0 }
 0x2ae   : > { %v6879_v59 = vpop.f32.mrf.mxu1  ;;  %v2503_v60 = vsel %vm925_vm2, %v6877_v52, -inf }
 0x2af   : > { %v5175_v61 = vpop.f32.mrf.mxu0  ;;  %2504 = vmax.xlane.f32.xlu1 %v2503_v60  ;;  %v2506_v12 = vsel %vm925_vm2, %v6879_v59, -inf }
 0x2b0   : > { %v5181_v63 = vpop.f32.mrf.mxu1  ;;  %2507 = vmax.xlane.f32.xlu0 %v2506_v12 }
 0x2b1   : > { %v1165_v2 = vpop.f32.mrf.mxu0 }
 0x2b2   : > { %v1214_v24 = vpop.f32.mrf.mxu1 }
 0x2b3   : > { %v5176_v23 = vpop.f32.mrf.mxu0 }
 0x2b4   : > { %v5182_v3 = vpop.f32.mrf.mxu1 }
 0x2b5   : > { %v6885_v4 = vpop.f32.mrf.mxu0 }
 0x2b6   : > { %v6887_v30 = vpop.f32.mrf.mxu1  ;;  %v2509_v35 = vsel %vm925_vm2, %v6885_v4, -inf }
 0x2b7   : > { %v5187_v10 = vpop.f32.mrf.mxu0  ;;  %2510 = vmax.xlane.f32.xlu1 %v2509_v35  ;;  %v2512_v20 = vsel %vm925_vm2, %v6887_v30, -inf }
 0x2b8   : > { %v5193_v21 = vpop.f32.mrf.mxu1  ;;  %2513 = vmax.xlane.f32.xlu0 %v2512_v20 }
 0x2b9   : > { %v1263_v43 = vpop.f32.mrf.mxu0 }
 0x2ba   : > { %v1312_v22 = vpop.f32.mrf.mxu1 }
 0x2bb   : > { %v5188_v39 = vpop.f32.mrf.mxu0 }
 0x2bc   : > { %v5194_v25 = vpop.f32.mrf.mxu1 }
 0x2be   : > { %v2150_v47 = vpop.permute.xlu1 %2149  ;;  %v2101_v26 = vpop.permute.xlu0 %2100 }
 0x2bf   : > { %v2155_v46 = vsel %vm925_vm2, %v2150_v47, 0  ;;  %v2106_v27 = vsel %vm925_vm2, %v2101_v26, 0 }
 0x2c0   : > { %5292 = vmatpush3.bf16.xpose.msra.mxu0 %v2106_v27  ;;  %5298 = vmatpush3.bf16.xpose.msra.mxu1 %v2155_v46 }
 0x2c1   : > { %5303 = vmatprep.subr.bf16.mxu0 %v6202_v55  ;;  %5309 = vmatprep.subr.bf16.mxu1 %v6202_v55 }
 0x2c2   : > { %v2248_v28 = vpop.permute.xlu1 %2247  ;;  %v2199_v58 = vpop.permute.xlu0 %2198 }
 0x2c3   : > { %v2253_v29 = vsel %vm925_vm2, %v2248_v28, 0  ;;  %v2204_v57 = vsel %vm925_vm2, %v2199_v58, 0 }
 0x2c7   : > { %5294 = vmatmul.mubr.msk.bf16.vlgmr.msra.gmra.mxu0 %vm925_vm2, %v6727_v32  ;;  %5300 = vmatmul.mubr.msk.bf16.vlgmr.msra.gmra.mxu1 %vm925_vm2, %v6725_v31 }
 0x2c8   : > { %5304 = vmatpush3.bf16.xpose.msra.mxu0 %v2204_v57  ;;  %5310 = vmatpush3.bf16.xpose.msra.mxu1 %v2253_v29 }
 0x2c9   : > { %5311 = vmatprep.mubr.msk.bf16.mxu1 %vm6204_vm1, %v6202_v55  ;;  %5305 = vmatprep.mubr.msk.bf16.mxu0 %vm6204_vm1, %v6202_v55  ;;  %v2346_v33 = vpop.permute.xlu1 %2345  ;;  %v2297_v34 = vpop.permute.xlu0 %2296 }
 0x2ca   : > { %5315 = vmatprep.subr.bf16.mxu0 %v6202_v55  ;;  %5321 = vmatprep.subr.bf16.mxu1 %v6202_v55  ;;  %v2351_v32 = vsel %vm925_vm2, %v2346_v33, 0  ;;  %v2302_v31 = vsel %vm925_vm2, %v2297_v34, 0 }
 0x2cd   : > { %v2444_v36 = vpop.permute.xlu1 %2443  ;;  %v2395_v40 = vpop.permute.xlu0 %2394 }
 0x2ce   : > { %5734 = vrot.lane.b32.xlu0 %v6715_v17, %s6206_s24  ;;  %v2449_v44 = vsel %vm925_vm2, %v2444_v36, 0 }
 0x2cf   : > { %5306 = vmatmul.mubr.msk.bf16.vlgmr.msra.gmra.mxu0 %vm925_vm2, %v6741_v42  ;;  %5312 = vmatmul.mubr.msk.bf16.vlgmr.msra.gmra.mxu1 %vm925_vm2, %v6739_v41  ;;  %v2400_v42 = vsel %vm925_vm2, %v2395_v40, 0  ;;  %v890_v41 = vpack.c.bf16 %v6693_v1, %v6693_v1 }
 0x2d0   : > { %5316 = vmatpush3.bf16.xpose.msra.mxu0 %v2302_v31  ;;  %5322 = vmatpush3.bf16.xpose.msra.mxu1 %v2351_v32 }
 0x2d1   : > { %5317 = vmatprep.mubr.msk.bf16.mxu0 %vm6204_vm1, %v6202_v55  ;;  %5323 = vmatprep.mubr.msk.bf16.mxu1 %vm6204_vm1, %v6202_v55 }
 0x2d2   : > { %5327 = vmatprep.subr.bf16.mxu0 %v6202_v55  ;;  %5333 = vmatprep.subr.bf16.mxu1 %v6202_v55  ;;  %v6959_v61 = vpop.permute.xlu1 %5704  ;;  %v6981_v33 = vpop.permute.xlu0 %5709 }
 0x2d7   : > { %5318 = vmatmul.mubr.msk.bf16.vlgmr.msra.gmra.mxu0 %vm925_vm2, %v6761_v54  ;;  %5324 = vmatmul.mubr.msk.bf16.vlgmr.msra.gmra.mxu1 %vm925_vm2, %v6759_v53  ;;  %v891_v54 = vpack.c.bf16 %v6695_v8, %v6695_v8  ;;  %v2880_v53 = vsel %vm2878_vm3, %v890_v41, 0 }
 0x2d8   : > { %5328 = vmatpush3.bf16.xpose.msra.mxu0 %v2400_v42  ;;  %5334 = vmatpush3.bf16.xpose.msra.mxu1 %v2449_v44 }
 0x2d9   : > { %5329 = vmatprep.mubr.msk.bf16.mxu0 %vm6204_vm1, %v6202_v55  ;;  %5335 = vmatprep.mubr.msk.bf16.mxu1 %vm6204_vm1, %v6202_v55  ;;  %v2926_v45 = vsel %vm2878_vm3, %v891_v54, 0 }
 0x2da   : > { %5339 = vmatprep.subr.bf16.mxu0 %v6202_v55  ;;  %5345 = vmatprep.subr.bf16.mxu1 %v6202_v55  ;;  %v6969_v20 = vpop.permute.xlu1 %5714 }
 0x2df   : > { %5330 = vmatmul.mubr.msk.bf16.vlgmr.msra.gmra.mxu0 %vm925_vm2, %v6775_v62  ;;  %5336 = vmatmul.mubr.msk.bf16.vlgmr.msra.gmra.mxu1 %vm925_vm2, %v6773_v19 }
 0x2e0   : > { %5340 = vmatpush3.bf16.msra.mxu0 %v2880_v53  ;;  %5346 = vmatpush3.bf16.msra.mxu1 %v2926_v45  ;;  %v6993_v53 = vpop.permute.xlu0 %5724 }
 0x2e1   : > { %5347 = vmatprep.mubr.msk.bf16.mxu1 %vm6204_vm1, %v6202_v55  ;;  %5357 = vmatprep.subr.bf16.mxu1 %v6202_v55 }
 0x2e2   : > { %5341 = vmatprep.mubr.msk.bf16.mxu0 %vm6204_vm1, %v6202_v55  ;;  %5351 = vmatprep.subr.bf16.mxu0 %v6202_v55  ;;  %v6979_v27 = vpop.permute.xlu1 %5719 }
 0x2e8   : > { %v6987_v31 = vpop.permute.xlu1 %5729 }
 0x30b   : > { %v6951_v1 = vpop.f32.mrf.mxu0  ;;  %v6953_v8 = vpop.f32.mrf.mxu1 }
 0x30c   : > { %v2515_v19 = vsel %vm925_vm2, %v6951_v1, -inf  ;;  %v2518_v62 = vsel %vm925_vm2, %v6953_v8, -inf }
 0x30d   : > { %v5199_v6 = vpop.f32.mrf.mxu0  ;;  %v5205_v7 = vpop.f32.mrf.mxu1  ;;  %2516 = vmax.xlane.f32.xlu1 %v2515_v19  ;;  %2519 = vmax.xlane.f32.xlu0 %v2518_v62 }
 0x30f   : > { %v1361_v48 = vpop.f32.mrf.mxu0  ;;  %v1410_v49 = vpop.f32.mrf.mxu1 }
 0x311   : > { %v5200_v50 = vpop.f32.mrf.mxu0  ;;  %v5206_v60 = vpop.f32.mrf.mxu1 }
 0x314   : > { %v6961_v12 = vpop.f32.mrf.mxu0  ;;  %v6963_v63 = vpop.f32.mrf.mxu1 }
 0x315   : > { %v2521_v2 = vsel %vm925_vm2, %v6961_v12, -inf  ;;  %v2524_v24 = vsel %vm925_vm2, %v6963_v63, -inf }
 0x316   : > { %v5211_v23 = vpop.f32.mrf.mxu0  ;;  %v5217_v3 = vpop.f32.mrf.mxu1  ;;  %2522 = vmax.xlane.f32.xlu1 %v2521_v2  ;;  %2525 = vmax.xlane.f32.xlu0 %v2524_v24 }
 0x318   : > { %v1459_v35 = vpop.f32.mrf.mxu0  ;;  %v1508_v10 = vpop.f32.mrf.mxu1 }
 0x31a   : > { %v5212_v21 = vpop.f32.mrf.mxu0  ;;  %v5218_v43 = vpop.f32.mrf.mxu1 }
 0x31c   : > { %v6971_v22 = vpop.f32.mrf.mxu0  ;;  %v6973_v39 = vpop.f32.mrf.mxu1 }
 0x31d   : > { %v2527_v25 = vsel %vm925_vm2, %v6971_v22, -inf  ;;  %v2530_v47 = vsel %vm925_vm2, %v6973_v39, -inf }
 0x31e   : > { %v5223_v26 = vpop.f32.mrf.mxu0  ;;  %v5229_v46 = vpop.f32.mrf.mxu1  ;;  %2528 = vmax.xlane.f32.xlu1 %v2527_v25  ;;  %2531 = vmax.xlane.f32.xlu0 %v2530_v47 }
 0x320   : > { %v1557_v28 = vpop.f32.mrf.mxu0  ;;  %v1606_v58 = vpop.f32.mrf.mxu1 }
 0x322   : > { %v5224_v29 = vpop.f32.mrf.mxu0  ;;  %v5230_v57 = vpop.f32.mrf.mxu1 }
 0x324   : > { %v6983_v34 = vpop.f32.mrf.mxu0  ;;  %v6985_v32 = vpop.f32.mrf.mxu1 }
 0x325   : > { %v2533_v36 = vsel %vm925_vm2, %v6983_v34, -inf  ;;  %v2536_v40 = vsel %vm925_vm2, %v6985_v32, -inf }
 0x326   : > { %v5235_v44 = vpop.f32.mrf.mxu0  ;;  %v5241_v42 = vpop.f32.mrf.mxu1  ;;  %2534 = vmax.xlane.f32.xlu1 %v2533_v36  ;;  %2537 = vmax.xlane.f32.xlu0 %v2536_v40 }
 0x328   : > { %v1655_v41 = vpop.f32.mrf.mxu0  ;;  %v1704_v54 = vpop.f32.mrf.mxu1 }
 0x329   : > { %v2496_v45 = vpop.xlane.xlu1 %2495  ;;  %v2493_v50 = vpop.xlane.xlu0 %2492 }
 0x32a   : > { %v2588_v19 = vsub.f32 %v6863_v56, %v2496_v45  ;;  %v5236_v62 = vpop.f32.mrf.mxu0  ;;  %v5242_v6 = vpop.f32.mrf.mxu1 }
 0x32c   : > { %v2621_v7 = vmul.f32 1.442695, %v2588_v19  ;;  %v6996_v48 = vpop.f32.mrf.mxu0  ;;  %v6998_v49 = vpop.f32.mrf.mxu1 }
 0x32d   : > { %v2542_v60 = vsel %vm925_vm2, %v6998_v49, -inf }
 0x32e   : > { %5829 = vpow2.f32 %v2621_v7  ;;  %v5253_v2 = vpop.f32.mrf.mxu1  ;;  %2543 = vmax.xlane.f32.xlu0 %v2542_v60  ;;  %v5247_v24 = vpop.f32.mrf.mxu0 }
 0x330   : > { %v1753_v23 = vpop.f32.mrf.mxu0  ;;  %v1802_v3 = vpop.f32.mrf.mxu1 }
 0x331   : > { %v2499_v35 = vpop.xlane.xlu0 %2498 }
 0x332   : > { %v5248_v10 = vpop.f32.mrf.mxu0  ;;  %v5254_v56 = vpop.f32.mrf.mxu1 }
 0x334   : > { %v7002_v21 = vpop.f32.mrf.mxu0  ;;  %v7004_v43 = vpop.f32.mrf.mxu1 }
 0x335   : > { %v2502_v25 = vpop.xlane.xlu0 %2501  ;;  %v2548_v47 = vsel %vm925_vm2, %v7004_v43, -inf }
 0x336   : > { %v2590_v26 = vsub.f32 %v6871_v38, %v2502_v25  ;;  %v5265_v46 = vpop.f32.mrf.mxu1  ;;  %2549 = vmax.xlane.f32.xlu0 %v2548_v47  ;;  %v5259_v28 = vpop.f32.mrf.mxu0 }
 0x337   : > { %5739 = vrot.lane.b32.xlu1 %v6719_v18, %s6206_s24  ;;  %v2587_v28 = vsub.f32 %v6861_v51, %v2493_v50  ;;  %v2539_v50 = vsel %vm925_vm2, %v6996_v48, -inf }
 0x338   : > { %v2625_v58 = vmul.f32 1.442695, %v2590_v26  ;;  %v1900_v29 = vpop.f32.mrf.mxu1  ;;  %v1851_v57 = vpop.f32.mrf.mxu0 }
 0x339   : > { %v2508_v36 = vpop.xlane.xlu0 %2507 }
 0x33a   : > { %5831 = vpow2.f32 %v2625_v58  ;;  %v2592_v40 = vsub.f32 %v6879_v59, %v2508_v36  ;;  %v5266_v44 = vpop.f32.mrf.mxu1  ;;  %v5260_v41 = vpop.f32.mrf.mxu0 }
 0x33b   : > { %v7012_v42 = vpop.eup %5829  ;;  %v2589_v41 = vsub.f32 %v6869_v37, %v2499_v35 }
 0x33c   : > { %v2629_v54 = vmul.f32 1.442695, %v2592_v40  ;;  %v7014_v45 = vpop.f32.mrf.mxu1  ;;  %v2686_v38 = vsel %vm925_vm2, %v7012_v42, 0.0  ;;  %v7018_v19 = vpop.f32.mrf.mxu0  ;;  %v2619_v40 = vmul.f32 1.442695, %v2587_v28 }
 0x33d   : > { %2687 = vadd.xlane.f32.xlu0 %v2686_v38  ;;  %v2554_v59 = vsel %vm925_vm2, %v7014_v45, -inf  ;;  %v2505_v38 = vpop.xlane.xlu1 %2504  ;;  %v2551_v35 = vsel %vm925_vm2, %v7018_v19, -inf }
 0x33e   : > { %v5277_v62 = vpop.f32.mrf.mxu1  ;;  %v5271_v6 = vpop.f32.mrf.mxu0  ;;  %5833 = vpow2.f32 %v2629_v54  ;;  %v2623_v54 = vmul.f32 1.442695, %v2589_v41  ;;  %v2591_v51 = vsub.f32 %v6877_v52, %v2505_v38 }
 0x33f   : > { %5835 = vpow2.f32 %v2619_v40  ;;  %v2545_v6 = vsel %vm925_vm2, %v7002_v21, -inf }
 0x340   : > { %v1998_v7 = vpop.f32.mrf.mxu1  ;;  %v1949_v60 = vpop.f32.mrf.mxu0  ;;  %5837 = vpow2.f32 %v2623_v54  ;;  %v2627_v62 = vmul.f32 1.442695, %v2591_v51 }
 0x341   : > { %2555 = vmax.xlane.f32.xlu0 %v2554_v59 }
 0x342   : > { %v5278_v2 = vpop.f32.mrf.mxu1  ;;  %v5272_v24 = vpop.f32.mrf.mxu0  ;;  %5839 = vpow2.f32 %v2627_v62 }
 0x343   : > { %v2511_v24 = vpop.xlane.xlu1 %2510 }
 0x344   : > { %v7022_v23 = vpop.f32.mrf.mxu1  ;;  %v7024_v3 = vpop.f32.mrf.mxu0 }
 0x345   : > { %v2560_v57 = vsel %vm925_vm2, %v7022_v23, -inf  ;;  %v2557_v60 = vsel %vm925_vm2, %v7024_v3, -inf }
 0x346   : > { %v5289_v10 = vpop.f32.mrf.mxu1  ;;  %v5283_v25 = vpop.f32.mrf.mxu0 }
 0x347   : > { %v7026_v56 = vpop.eup %5831  ;;  %v2514_v10 = vpop.xlane.xlu0 %2513 }
 0x348   : > { %v2096_v47 = vpop.f32.mrf.mxu1  ;;  %v2692_v26 = vsel %vm925_vm2, %v7026_v56, 0.0  ;;  %v2047_v46 = vpop.f32.mrf.mxu0 }
 0x349   : > { %2693 = vadd.xlane.f32.xlu0 %v2692_v26  ;;  %v2593_v47 = vsub.f32 %v6885_v4, %v2511_v24  ;;  %v2594_v26 = vsub.f32 %v6887_v30, %v2514_v10 }
 0x34a   : > { %v5290_v58 = vpop.f32.mrf.mxu1  ;;  %v5284_v29 = vpop.f32.mrf.mxu0 }
 0x34b   : > { %v7033_v36 = vpop.eup %5833  ;;  %v2631_v46 = vmul.f32 1.442695, %v2593_v47  ;;  %v2633_v28 = vmul.f32 1.442695, %v2594_v26 }
 0x34c   : > { %v2698_v44 = vsel %vm925_vm2, %v7033_v36, 0.0  ;;  %v7043_v7 = vpop.eup %5835 }
 0x34d   : > { %2561 = vmax.xlane.f32.xlu0 %v2560_v57  ;;  %v2683_v37 = vsel %vm925_vm2, %v7043_v7, 0.0  ;;  %v7049_v52 = vpop.eup %5837  ;;  %5841 = vpow2.f32 %v2631_v46 }
 0x34e   : > { %v2689_v59 = vsel %vm925_vm2, %v7049_v52, 0.0  ;;  %5843 = vpow2.f32 %v2633_v28 }
 0x34f   : > { %v7055_v2 = vpop.eup %5839 }
 0x350   : > { %v2695_v25 = vsel %vm925_vm2, %v7055_v2, 0.0 }
 0x351   : > { %2699 = vadd.xlane.f32.xlu0 %v2698_v44 }
 0x35a   : > { %v7065_v57 = vpop.eup %5841 }
 0x35b   : > { %2540 = vmax.xlane.f32.xlu1 %v2539_v50  ;;  %v7071_v4 = vpop.eup %5843  ;;  %v2701_v51 = vsel %vm925_vm2, %v7065_v57, 0.0 }
 0x35c   : > { %v2704_v50 = vsel %vm925_vm2, %v7071_v4, 0.0 }
 0x35f   : > { %2546 = vmax.xlane.f32.xlu1 %v2545_v6 }
 0x363   : > { %2684 = vadd.xlane.f32.xlu1 %v2683_v37 }
 0x367   : > { %2552 = vmax.xlane.f32.xlu1 %v2551_v35 }
 0x36b   : > { %2690 = vadd.xlane.f32.xlu1 %v2689_v59 }
 0x36f   : > { %2558 = vmax.xlane.f32.xlu1 %v2557_v60 }
 0x373   : > { %2696 = vadd.xlane.f32.xlu1 %v2695_v25  ;;  %v7085_v25 = vpop.permute.xlu0 %5734 }
 0x387   : > { %v7061_v58 = vpop.f32.mrf.mxu0  ;;  %v7063_v29 = vpop.f32.mrf.mxu1 }
 0x388   : > { %v2563_v40 = vsel %vm925_vm2, %v7061_v58, -inf  ;;  %v2566_v44 = vsel %vm925_vm2, %v7063_v29, -inf }
 0x389   : > { %v5295_v41 = vpop.f32.mrf.mxu0  ;;  %v5301_v30 = vpop.f32.mrf.mxu1  ;;  %2564 = vmax.xlane.f32.xlu1 %v2563_v40  ;;  %2567 = vmax.xlane.f32.xlu0 %v2566_v44 }
 0x38b   : > { %v2145_v54 = vpop.f32.mrf.mxu0  ;;  %v2194_v38 = vpop.f32.mrf.mxu1 }
 0x38d   : > { %v5296_v62 = vpop.f32.mrf.mxu0  ;;  %v5302_v6 = vpop.f32.mrf.mxu1  ;;  %2702 = vadd.xlane.f32.xlu1 %v2701_v51  ;;  %2705 = vadd.xlane.f32.xlu0 %v2704_v50 }
 0x38f   : > { %v7077_v37 = vpop.f32.mrf.mxu0  ;;  %v7079_v35 = vpop.f32.mrf.mxu1 }
 0x390   : > { %v2569_v59 = vsel %vm925_vm2, %v7077_v37, -inf  ;;  %v2572_v60 = vsel %vm925_vm2, %v7079_v35, -inf }
 0x391   : > { %v5307_v24 = vpop.f32.mrf.mxu0  ;;  %v5313_v10 = vpop.f32.mrf.mxu1  ;;  %2570 = vmax.xlane.f32.xlu1 %v2569_v59  ;;  %2573 = vmax.xlane.f32.xlu0 %v2572_v60 }
 0x393   : > { %v2243_v47 = vpop.f32.mrf.mxu0  ;;  %v2292_v26 = vpop.f32.mrf.mxu1 }
 0x395   : > { %v5308_v46 = vpop.f32.mrf.mxu0  ;;  %v5314_v28 = vpop.f32.mrf.mxu1 }
 0x396   : > { %v2517_v40 = vpop.xlane.xlu1 %2516  ;;  %v2520_v44 = vpop.xlane.xlu0 %2519 }
 0x397   : > { %v7087_v41 = vpop.f32.mrf.mxu1  ;;  %v2595_v30 = vsub.f32 %v6951_v1, %v2517_v40  ;;  %v7090_v54 = vpop.f32.mrf.mxu0  ;;  %v2596_v38 = vsub.f32 %v6953_v8, %v2520_v44 }
 0x398   : > { %v2575_v51 = vsel %vm925_vm2, %v7090_v54, -inf  ;;  %v2578_v50 = vsel %vm925_vm2, %v7087_v41, -inf }
 0x399   : > { %v2635_v62 = vmul.f32 1.442695, %v2595_v30  ;;  %v2637_v6 = vmul.f32 1.442695, %v2596_v38  ;;  %v5319_v59 = vpop.f32.mrf.mxu0  ;;  %v5325_v60 = vpop.f32.mrf.mxu1  ;;  %2576 = vmax.xlane.f32.xlu1 %v2575_v51  ;;  %2579 = vmax.xlane.f32.xlu0 %v2578_v50 }
 0x39b   : > { %5845 = vpow2.f32 %v2635_v62  ;;  %v2341_v24 = vpop.f32.mrf.mxu0  ;;  %v2390_v10 = vpop.f32.mrf.mxu1 }
 0x39c   : > { %5847 = vpow2.f32 %v2637_v6 }
 0x39d   : > { %v5320_v1 = vpop.f32.mrf.mxu0  ;;  %v5326_v47 = vpop.f32.mrf.mxu1 }
 0x39f   : > { %v7097_v26 = vpop.f32.mrf.mxu1  ;;  %v2523_v8 = vpop.xlane.xlu1 %2522 }
 0x3a0   : > { %v2597_v46 = vsub.f32 %v6961_v12, %v2523_v8  ;;  %v7100_v28 = vpop.f32.mrf.mxu0  ;;  %v2526_v40 = vpop.xlane.xlu0 %2525  ;;  %v2584_v44 = vsel %vm925_vm2, %v7097_v26, -inf }
 0x3a1   : > { %v2598_v30 = vsub.f32 %v6963_v63, %v2526_v40  ;;  %v5337_v38 = vpop.f32.mrf.mxu1  ;;  %v2581_v51 = vsel %vm925_vm2, %v7100_v28, -inf  ;;  %2585 = vmax.xlane.f32.xlu0 %v2584_v44 }
 0x3a2   : > { %v2639_v50 = vmul.f32 1.442695, %v2597_v46  ;;  %v5331_v62 = vpop.f32.mrf.mxu0  ;;  %2582 = vmax.xlane.f32.xlu1 %v2581_v51 }
 0x3a3   : > { %v2641_v6 = vmul.f32 1.442695, %v2598_v30  ;;  %v2488_v59 = vpop.f32.mrf.mxu1 }
 0x3a4   : > { %5849 = vpow2.f32 %v2639_v50  ;;  %v2439_v12 = vpop.f32.mrf.mxu0 }
 0x3a5   : > { %5851 = vpow2.f32 %v2641_v6  ;;  %v5338_v60 = vpop.f32.mrf.mxu1 }
 0x3a6   : > { %v5332_v24 = vpop.f32.mrf.mxu0 }
 0x3a7   : > { %v2529_v10 = vpop.xlane.xlu1 %2528  ;;  %v2532_v1 = vpop.xlane.xlu0 %2531 }
 0x3a8   : > { %v7107_v47 = vpop.eup %5845  ;;  %v2599_v63 = vsub.f32 %v6971_v22, %v2529_v10  ;;  %v2600_v8 = vsub.f32 %v6973_v39, %v2532_v1 }
 0x3a9   : > { %v7111_v40 = vpop.eup %5847  ;;  %v2707_v46 = vsel %vm925_vm2, %v7107_v47, 0.0 }
 0x3aa   : > { %v2643_v44 = vmul.f32 1.442695, %v2599_v63  ;;  %v2645_v30 = vmul.f32 1.442695, %v2600_v8  ;;  %2708 = vadd.xlane.f32.xlu1 %v2707_v46  ;;  %v2710_v38 = vsel %vm925_vm2, %v7111_v40, 0.0 }
 0x3ab   : > { %2711 = vadd.xlane.f32.xlu0 %v2710_v38 }
 0x3ac   : > { %5853 = vpow2.f32 %v2643_v44 }
 0x3ad   : > { %5855 = vpow2.f32 %v2645_v30 }
 0x3af   : > { %v2535_v51 = vpop.xlane.xlu1 %2534  ;;  %v2538_v50 = vpop.xlane.xlu0 %2537 }
 0x3b0   : > { %v2601_v22 = vsub.f32 %v6983_v34, %v2535_v51  ;;  %v2602_v39 = vsub.f32 %v6985_v32, %v2538_v50 }
 0x3b1   : > { %v7119_v62 = vpop.eup %5849 }
 0x3b2   : > { %v7121_v6 = vpop.eup %5851  ;;  %v2647_v59 = vmul.f32 1.442695, %v2601_v22  ;;  %v2649_v12 = vmul.f32 1.442695, %v2602_v39  ;;  %v2713_v60 = vsel %vm925_vm2, %v7119_v62, 0.0 }
 0x3b3   : > { %2714 = vadd.xlane.f32.xlu1 %v2713_v60  ;;  %v2716_v24 = vsel %vm925_vm2, %v7121_v6, 0.0 }
 0x3b4   : > { %5857 = vpow2.f32 %v2647_v59  ;;  %2717 = vadd.xlane.f32.xlu0 %v2716_v24 }
 0x3b5   : > { %5859 = vpow2.f32 %v2649_v12 }
 0x3b7   : > { %v2544_v10 = vpop.xlane.xlu0 %2543 }
 0x3b8   : > { %v2604_v34 = vsub.f32 %v6998_v49, %v2544_v10  ;;  %v893_v10 = vpack.c.bf16 %v6691_v5, %v6691_v5  ;;  %v895_v5 = vpack.c.bf16 %v6707_v14, %v6707_v14 }
 0x3b9   : > { %v7128_v32 = vpop.eup %5853 }
 0x3ba   : > { %v7130_v1 = vpop.eup %5855  ;;  %v2653_v63 = vmul.f32 1.442695, %v2604_v34  ;;  %v2719_v8 = vsel %vm925_vm2, %v7128_v32, 0.0 }
 0x3bb   : > { %2720 = vadd.xlane.f32.xlu1 %v2719_v8  ;;  %v2722_v46 = vsel %vm925_vm2, %v7130_v1, 0.0  ;;  %v3018_v8 = vsel %vm2878_vm3, %v893_v10, 0 }
 0x3bc   : > { %5861 = vpow2.f32 %v2653_v63  ;;  %2723 = vadd.xlane.f32.xlu0 %v2722_v46 }
 0x3bf   : > { %v2550_v30 = vpop.xlane.xlu0 %2549 }
 0x3c0   : > { %v2606_v10 = vsub.f32 %v7004_v43, %v2550_v30 }
 0x3c1   : > { %v7136_v44 = vpop.eup %5857 }
 0x3c2   : > { %v2725_v49 = vsel %vm925_vm2, %v7136_v44, 0.0  ;;  %v7140_v38 = vpop.eup %5859 }
 0x3c3   : > { %2726 = vadd.xlane.f32.xlu0 %v2725_v49  ;;  %v2728_v50 = vsel %vm925_vm2, %v7140_v38, 0.0 }
 0x3c6   : > { %v2688_v51 = vpop.xlane.xlu0 %2687 }
 0x3c7   : > { %5863 = vrcp.f32 %v2688_v51  ;;  %2729 = vadd.xlane.f32.xlu0 %v2728_v50  ;;  %v7156_v51 = vpop.permute.xlu1 %5739 }
 0x3c9   : > { %v7144_v22 = vpop.eup %5861 }
 0x3ca   : > { %v2734_v39 = vsel %vm925_vm2, %v7144_v22, 0.0  ;;  %v2556_v59 = vpop.xlane.xlu0 %2555 }
 0x3cb   : > { %2735 = vadd.xlane.f32.xlu0 %v2734_v39  ;;  %v2608_v50 = vsub.f32 %v7014_v45, %v2556_v59 }
 0x3d2   : > { %v2694_v12 = vpop.xlane.xlu0 %2693 }
 0x3d3   : > { %5865 = vrcp.f32 %v2694_v12 }
 0x3d4   : > { %v5864_v60 = vpop.eup %5863 }
 0x3d5   : > { %v2812_v24 = vmul.f32 %v5864_v60, %v7012_v42 }
 0x3d6   : > { %v2562_v34 = vpop.xlane.xlu0 %2561 }
 0x3d7   : > { %v2844_v63 = vpack.c.bf16 %v2812_v24, %v2812_v24  ;;  %v3110_v24 = vsel %vm2878_vm3, %v895_v5, 0  ;;  %v2610_v14 = vsub.f32 %v7022_v23, %v2562_v34 }
 0x3d9   : > { %5348 = vmatmul.mubr.msk.bf16.vlgmr.msra.gmra.mxu1 %vm925_vm2, %v2844_v63  ;;  %v2665_v43 = vmul.f32 1.442695, %v2610_v14 }
 0x3da   : > { %5358 = vmatpush3.bf16.msra.mxu1 %v3018_v8  ;;  %v2700_v46 = vpop.xlane.xlu0 %2699  ;;  %5359 = vmatprep.mubr.msk.bf16.mxu1 %vm6204_vm1, %v6202_v55 }
 0x3db   : > { %5369 = vmatprep.subr.bf16.mxu1 %v6202_v55  ;;  %5867 = vrcp.f32 %v2700_v46  ;;  %v897_v46 = vpack.c.bf16 %v6711_v16, %v6711_v16 }
 0x3dd   : > { %v3202_v23 = vsel %vm2878_vm3, %v897_v46, 0 }
 0x3e0   : > { %v5866_v49 = vpop.eup %5865 }
 0x3e1   : > { %v2814_v42 = vmul.f32 %v5866_v49, %v7026_v56  ;;  %v2661_v56 = vmul.f32 1.442695, %v2608_v50  ;;  %v2657_v49 = vmul.f32 1.442695, %v2606_v10 }
 0x3e3   : > { %v2846_v39 = vpack.c.bf16 %v2814_v42, %v2814_v42 }
 0x3e4   : > { %v2541_v12 = vpop.xlane.xlu1 %2540 }
 0x3e5   : > { %v2603_v60 = vsub.f32 %v6996_v48, %v2541_v12  ;;  %5360 = vmatmul.mubr.msk.bf16.vlgmr.msra.gmra.mxu1 %vm925_vm2, %v2846_v39 }
 0x3e6   : > { %5370 = vmatpush3.bf16.msra.mxu1 %v3110_v24  ;;  %5371 = vmatprep.mubr.msk.bf16.mxu1 %vm6204_vm1, %v6202_v55 }
 0x3e7   : > { %v2651_v63 = vmul.f32 1.442695, %v2603_v60  ;;  %5381 = vmatprep.subr.bf16.mxu1 %v6202_v55 }
 0x3e8   : > { %v2547_v45 = vpop.xlane.xlu1 %2546  ;;  %v5868_v59 = vpop.eup %5867 }
 0x3e9   : > { %5869 = vpow2.f32 %v2651_v63  ;;  %v2605_v48 = vsub.f32 %v7002_v21, %v2547_v45  ;;  %v2816_v8 = vmul.f32 %v5868_v59, %v7033_v36 }
 0x3ea   : > { %5871 = vpow2.f32 %v2661_v56 }
 0x3eb   : > { %v2655_v42 = vmul.f32 1.442695, %v2605_v48  ;;  %v2848_v5 = vpack.c.bf16 %v2816_v8, %v2816_v8 }
 0x3ec   : > { %v2685_v30 = vpop.xlane.xlu1 %2684 }
 0x3ed   : > { %5873 = vpow2.f32 %v2655_v42  ;;  %5372 = vmatmul.mubr.msk.bf16.vlgmr.msra.gmra.mxu1 %vm925_vm2, %v2848_v5 }
 0x3ee   : > { %5875 = vrcp.f32 %v2685_v30  ;;  %5382 = vmatpush3.bf16.msra.mxu1 %v3202_v23  ;;  %5383 = vmatprep.mubr.msk.bf16.mxu1 %vm6204_vm1, %v6202_v55  ;;  %v894_v23 = vpack.c.bf16 %v6705_v13, %v6705_v13 }
 0x3ef   : > { %5877 = vpow2.f32 %v2657_v49  ;;  %5393 = vmatprep.subr.bf16.mxu1 %v6202_v55 }
 0x3f0   : > { %5879 = vpow2.f32 %v2665_v43  ;;  %v2553_v21 = vpop.xlane.xlu1 %2552 }
 0x3f1   : > { %v2607_v16 = vsub.f32 %v7018_v19, %v2553_v21 }
 0x3f3   : > { %v2659_v36 = vmul.f32 1.442695, %v2607_v16  ;;  %v3064_v16 = vsel %vm2878_vm3, %v894_v23, 0 }
 0x3f4   : > { %v2691_v34 = vpop.xlane.xlu1 %2690 }
 0x3f5   : > { %5881 = vpow2.f32 %v2659_v36 }
 0x3f6   : > { %v7180_v50 = vpop.eup %5869  ;;  %5883 = vrcp.f32 %v2691_v34 }
 0x3f7   : > { %v2731_v39 = vsel %vm925_vm2, %v7180_v50, 0.0  ;;  %v7184_v12 = vpop.eup %5871 }
 0x3f8   : > { %2732 = vadd.xlane.f32.xlu1 %v2731_v39  ;;  %v2559_v60 = vpop.xlane.xlu1 %2558  ;;  %v2746_v14 = vsel %vm925_vm2, %v7184_v12, 0.0  ;;  %v896_v39 = vpack.c.bf16 %v6709_v15, %v6709_v15 }
 0x3f9   : > { %v2609_v24 = vsub.f32 %v7024_v3, %v2559_v60  ;;  %v892_v3 = vpack.c.bf16 %v6689_v0, %v6689_v0 }
 0x3fa   : > { %v7187_v10 = vpop.eup %5873 }
 0x3fb   : > { %v5876_v56 = vpop.eup %5875  ;;  %v2663_v63 = vmul.f32 1.442695, %v2609_v24  ;;  %v2737_v19 = vsel %vm925_vm2, %v7187_v10, 0.0  ;;  %v2972_v42 = vsel %vm2878_vm3, %v892_v3, 0  ;;  %v3156_v24 = vsel %vm2878_vm3, %v896_v39, 0 }
 0x3fc   : > { %v7193_v45 = vpop.eup %5877  ;;  %v2697_v59 = vpop.xlane.xlu1 %2696  ;;  %2738 = vadd.xlane.f32.xlu0 %v2737_v19  ;;  %2747 = vadd.xlane.f32.xlu1 %v2746_v14  ;;  %v2811_v48 = vmul.f32 %v5876_v56, %v7043_v7 }
 0x3fd   : > { %v7198_v8 = vpop.eup %5879  ;;  %5885 = vpow2.f32 %v2663_v63  ;;  %v2740_v49 = vsel %vm925_vm2, %v7193_v45, 0.0 }
 0x3fe   : > { %5887 = vrcp.f32 %v2697_v59  ;;  %v2843_v46 = vpack.c.bf16 %v2811_v48, %v2811_v48  ;;  %v2752_v43 = vsel %vm925_vm2, %v7198_v8, 0.0 }
 0x400   : > { %5342 = vmatmul.mubr.msk.bf16.vlgmr.msra.gmra.mxu0 %vm925_vm2, %v2843_v46  ;;  %2741 = vadd.xlane.f32.xlu0 %v2740_v49  ;;  %v5707_v46 = vunpack.i.h.bf16 %v6959_v61 }
 0x401   : > { %5352 = vmatpush3.bf16.msra.mxu0 %v2972_v42  ;;  %2753 = vadd.xlane.f32.xlu1 %v2752_v43 }
 0x402   : > { %v7206_v7 = vpop.eup %5881  ;;  %5353 = vmatprep.mubr.msk.bf16.mxu0 %vm6204_vm1, %v6202_v55  ;;  %5363 = vmatprep.subr.bf16.mxu0 %v6202_v55  ;;  %v899_v23 = vpack.c.bf16 %v5707_v46, %v5707_v46 }
 0x403   : > { %v5884_v0 = vpop.eup %5883  ;;  %v2743_v30 = vsel %vm925_vm2, %v7206_v7, 0.0 }
 0x404   : > { %2744 = vadd.xlane.f32.xlu0 %v2743_v30  ;;  %v2813_v5 = vmul.f32 %v5884_v0, %v7049_v52 }
 0x406   : > { %v2845_v21 = vpack.c.bf16 %v2813_v5, %v2813_v5 }
 0x408   : > { %5354 = vmatmul.mubr.msk.bf16.vlgmr.msra.gmra.mxu0 %vm925_vm2, %v2845_v21 }
 0x409   : > { %5364 = vmatpush3.bf16.msra.mxu0 %v3064_v16  ;;  %5365 = vmatprep.mubr.msk.bf16.mxu0 %vm6204_vm1, %v6202_v55 }
 0x40a   : > { %v7220_v36 = vpop.eup %5885  ;;  %5375 = vmatprep.subr.bf16.mxu0 %v6202_v55 }
 0x40b   : > { %v5888_v34 = vpop.eup %5887  ;;  %v2749_v52 = vsel %vm925_vm2, %v7220_v36, 0.0 }
 0x40c   : > { %2750 = vadd.xlane.f32.xlu0 %v2749_v52  ;;  %v2815_v13 = vmul.f32 %v5888_v34, %v7055_v2 }
 0x40e   : > { %v2847_v60 = vpack.c.bf16 %v2815_v13, %v2815_v13 }
 0x410   : > { %5366 = vmatmul.mubr.msk.bf16.vlgmr.msra.gmra.mxu0 %vm925_vm2, %v2847_v60 }
 0x411   : > { %5376 = vmatpush3.bf16.msra.mxu0 %v3156_v24  ;;  %5377 = vmatprep.mubr.msk.bf16.mxu0 %vm6204_vm1, %v6202_v55 }
 0x412   : > { %5749 = vrot.lane.b32.xlu1 %v6699_v9, %s6207_s23  ;;  %v2565_v56 = vpop.xlane.xlu1 %2564  ;;  %v2568_v63 = vpop.xlane.xlu0 %2567  ;;  %5387 = vmatprep.subr.bf16.mxu0 %v6202_v55  ;;  %v5706_v9 = vunpack.i.l.bf16 %v6959_v61 }
 0x413   : > { %v2612_v15 = vsub.f32 %v7063_v29, %v2568_v63 }
 0x414   : > { %v898_v30 = vpack.c.bf16 %v5706_v9, %v5706_v9 }
 0x415   : > { %v2669_v59 = vmul.f32 1.442695, %v2612_v15 }
 0x416   : > { %v2703_v2 = vpop.xlane.xlu1 %2702  ;;  %v2706_v19 = vpop.xlane.xlu0 %2705 }
 0x417   : > { %5889 = vrcp.f32 %v2703_v2 }
 0x418   : > { %5891 = vrcp.f32 %v2706_v19 }
 0x419   : > { %5893 = vpow2.f32 %v2669_v59 }
 0x41a   : > { %v2574_v14 = vpop.xlane.xlu0 %2573  ;;  %v2571_v29 = vpop.xlane.xlu1 %2570 }
 0x41b   : > { %v2614_v48 = vsub.f32 %v7079_v35, %v2574_v14  ;;  %v2611_v35 = vsub.f32 %v7061_v58, %v2565_v56  ;;  %v2613_v52 = vsub.f32 %v7077_v37, %v2571_v29  ;;  %v3294_v58 = vsel %vm2878_vm3, %v899_v23, 0 }
 0x41d   : > { %v2673_v49 = vmul.f32 1.442695, %v2614_v48  ;;  %v2671_v37 = vmul.f32 1.442695, %v2613_v52 }
 0x41f   : > { %5895 = vpow2.f32 %v2673_v49 }
 0x422   : > { %5744 = vrot.lane.b32.xlu0 %v6703_v11, %s6207_s23  ;;  %v2580_v3 = vpop.xlane.xlu0 %2579  ;;  %v2577_v13 = vpop.xlane.xlu1 %2576 }
 0x423   : > { %v2616_v42 = vsub.f32 %v7087_v41, %v2580_v3  ;;  %v3248_v41 = vsel %vm2878_vm3, %v898_v30, 0 }
 0x424   : > { %v5890_v43 = vpop.eup %5889 }
 0x425   : > { %v5892_v0 = vpop.eup %5891  ;;  %v2817_v5 = vmul.f32 %v5890_v43, %v7065_v57  ;;  %v2677_v21 = vmul.f32 1.442695, %v2616_v42  ;;  %v2667_v57 = vmul.f32 1.442695, %v2611_v35  ;;  %v5711_v42 = vunpack.i.l.bf16 %v6981_v33 }
 0x426   : > { %v2818_v11 = vmul.f32 %v5892_v0, %v7071_v4  ;;  %v7258_v24 = vpop.eup %5893  ;;  %v5712_v43 = vunpack.i.h.bf16 %v6981_v33 }
 0x427   : > { %v2849_v16 = vpack.c.bf16 %v2817_v5, %v2817_v5  ;;  %5897 = vpow2.f32 %v2677_v21  ;;  %v2758_v15 = vsel %vm925_vm2, %v7258_v24, 0.0  ;;  %v900_v35 = vpack.c.bf16 %v5711_v42, %v5711_v42 }
 0x428   : > { %v2850_v34 = vpack.c.bf16 %v2818_v11, %v2818_v11  ;;  %5899 = vpow2.f32 %v2667_v57  ;;  %v901_v21 = vpack.c.bf16 %v5712_v43, %v5712_v43  ;;  %v5717_v57 = vunpack.i.h.bf16 %v6969_v20 }
 0x429   : > { %5378 = vmatmul.mubr.msk.bf16.vlgmr.msra.gmra.mxu0 %vm925_vm2, %v2849_v16 }
 0x42a   : > { %v2586_v61 = vpop.xlane.xlu0 %2585  ;;  %5384 = vmatmul.mubr.msk.bf16.vlgmr.msra.gmra.mxu1 %vm925_vm2, %v2850_v34  ;;  %5388 = vmatpush3.bf16.msra.mxu0 %v3248_v41 }
 0x42b   : > { %v2618_v39 = vsub.f32 %v7097_v26, %v2586_v61  ;;  %5394 = vmatpush3.bf16.msra.mxu1 %v3294_v58  ;;  %5389 = vmatprep.mubr.msk.bf16.mxu0 %vm6204_vm1, %v6202_v55  ;;  %v2583_v60 = vpop.xlane.xlu1 %2582  ;;  %v2615_v26 = vsub.f32 %v7090_v54, %v2577_v13 }
 0x42c   : > { %5395 = vmatprep.mubr.msk.bf16.mxu1 %vm6204_vm1, %v6202_v55  ;;  %5399 = vmatprep.subr.bf16.mxu0 %v6202_v55  ;;  %v2617_v2 = vsub.f32 %v7100_v28, %v2583_v60  ;;  %v7263_v14 = vpop.eup %5895 }
 0x42d   : > { %v2681_v4 = vmul.f32 1.442695, %v2618_v39  ;;  %5405 = vmatprep.subr.bf16.mxu1 %v6202_v55  ;;  %v2675_v63 = vmul.f32 1.442695, %v2615_v26  ;;  %v2764_v54 = vsel %vm925_vm2, %v7263_v14, 0.0  ;;  %v3340_v39 = vsel %vm2878_vm3, %v900_v35, 0 }
 0x42e   : > { %v2679_v59 = vmul.f32 1.442695, %v2617_v2 }
 0x42f   : > { %5901 = vpow2.f32 %v2681_v4 }
 0x430   : > { %5903 = vpow2.f32 %v2671_v37 }
 0x433   : > { %v2709_v56 = vpop.xlane.xlu1 %2708 }
 0x434   : > { %5905 = vrcp.f32 %v2709_v56  ;;  %v2712_v19 = vpop.xlane.xlu0 %2711  ;;  %v7267_v48 = vpop.eup %5897  ;;  %v903_v56 = vpack.c.bf16 %v5717_v57, %v5717_v57 }
 0x435   : > { %5907 = vrcp.f32 %v2712_v19  ;;  %v7269_v28 = vpop.eup %5899  ;;  %v2770_v46 = vsel %vm925_vm2, %v7267_v48, 0.0 }
 0x436   : > { %2759 = vadd.xlane.f32.xlu1 %v2758_v15  ;;  %5909 = vpow2.f32 %v2675_v63  ;;  %v2755_v30 = vsel %vm925_vm2, %v7269_v28, 0.0 }
 0x437   : > { %5911 = vpow2.f32 %v2679_v59 }
 0x43a   : > { %2765 = vadd.xlane.f32.xlu1 %v2764_v54  ;;  %v5721_v54 = vunpack.i.l.bf16 %v6979_v27 }
 0x43c   : > { %v2715_v3 = vpop.xlane.xlu1 %2714  ;;  %v7273_v49 = vpop.eup %5901  ;;  %v904_v43 = vpack.c.bf16 %v5721_v54, %v5721_v54 }
 0x43d   : > { %5913 = vrcp.f32 %v2715_v3  ;;  %v2718_v9 = vpop.xlane.xlu0 %2717  ;;  %v7277_v0 = vpop.eup %5903  ;;  %v2776_v5 = vsel %vm925_vm2, %v7273_v49, 0.0 }
 0x43e   : > { %5915 = vrcp.f32 %v2718_v9  ;;  %2771 = vadd.xlane.f32.xlu1 %v2770_v46  ;;  %v2761_v33 = vsel %vm925_vm2, %v7277_v0, 0.0  ;;  %v5722_v9 = vunpack.i.h.bf16 %v6979_v27 }
 0x441   : > { %v5906_v29 = vpop.eup %5905  ;;  %2756 = vadd.xlane.f32.xlu0 %v2755_v30  ;;  %v905_v30 = vpack.c.bf16 %v5722_v9, %v5722_v9  ;;  %v5736_v9 = vunpack.i.l.bf16 %v7085_v25 }
 0x442   : > { %v5908_v23 = vpop.eup %5907  ;;  %2777 = vadd.xlane.f32.xlu1 %v2776_v5  ;;  %v2819_v11 = vmul.f32 %v5906_v29, %v7107_v47  ;;  %v5716_v47 = vunpack.i.l.bf16 %v6969_v20 }
 0x443   : > { %v2820_v16 = vmul.f32 %v5908_v23, %v7111_v40  ;;  %v7287_v52 = vpop.eup %5909  ;;  %v3386_v40 = vsel %vm2878_vm3, %v901_v21, 0  ;;  %v3524_v21 = vsel %vm2878_vm3, %v904_v43, 0 }
 0x444   : > { %v2721_v34 = vpop.xlane.xlu1 %2720  ;;  %v2851_v61 = vpack.c.bf16 %v2819_v11, %v2819_v11  ;;  %v2767_v58 = vsel %vm925_vm2, %v7287_v52, 0.0  ;;  %v7299_v4 = vpop.eup %5911  ;;  %v902_v20 = vpack.c.bf16 %v5716_v47, %v5716_v47  ;;  %v5726_v11 = vunpack.i.l.bf16 %v6993_v53 }
 0x445   : > { %5917 = vrcp.f32 %v2721_v34  ;;  %v2724_v13 = vpop.xlane.xlu0 %2723  ;;  %2762 = vadd.xlane.f32.xlu0 %v2761_v33  ;;  %v2852_v41 = vpack.c.bf16 %v2820_v16, %v2820_v16  ;;  %v2773_v2 = vsel %vm925_vm2, %v7299_v4, 0.0 }
 0x446   : > { %5919 = vrcp.f32 %v2724_v13  ;;  %5390 = vmatmul.mubr.msk.bf16.vlgmr.msra.gmra.mxu0 %vm925_vm2, %v2851_v61  ;;  %v3432_v3 = vsel %vm2878_vm3, %v902_v20, 0  ;;  %v906_v16 = vpack.c.bf16 %v5726_v11, %v5726_v11  ;;  %v5741_v11 = vunpack.i.l.bf16 %v7156_v51 }
 0x447   : > { %5396 = vmatmul.mubr.msk.bf16.vlgmr.msra.gmra.mxu1 %vm925_vm2, %v2852_v41  ;;  %5400 = vmatpush3.bf16.msra.mxu0 %v3340_v39 }
 0x448   : > { %5406 = vmatpush3.bf16.msra.mxu1 %v3386_v40  ;;  %5401 = vmatprep.mubr.msk.bf16.mxu0 %vm6204_vm1, %v6202_v55  ;;  %v3616_v41 = vsel %vm2878_vm3, %v906_v16, 0  ;;  %v912_v16 = vpack.c.bf16 %v5741_v11, %v5741_v11 }
 0x449   : > { %2768 = vadd.xlane.f32.xlu0 %v2767_v58  ;;  %5407 = vmatprep.mubr.msk.bf16.mxu1 %vm6204_vm1, %v6202_v55 }
 0x44a   : > { %v5914_v37 = vpop.eup %5913  ;;  %5411 = vmatprep.subr.bf16.mxu0 %v6202_v55  ;;  %5417 = vmatprep.subr.bf16.mxu1 %v6202_v55 }
 0x44b   : > { %v5916_v60 = vpop.eup %5915  ;;  %v2821_v26 = vmul.f32 %v5914_v37, %v7119_v62  ;;  %v3478_v62 = vsel %vm2878_vm3, %v903_v56, 0 }
 0x44c   : > { %v2727_v63 = vpop.xlane.xlu0 %2726  ;;  %v2822_v19 = vmul.f32 %v5916_v60, %v7121_v6 }
 0x44d   : > { %5921 = vrcp.f32 %v2727_v63  ;;  %2774 = vadd.xlane.f32.xlu0 %v2773_v2  ;;  %v2853_v15 = vpack.c.bf16 %v2821_v26, %v2821_v26 }
 0x44e   : > { %v2854_v59 = vpack.c.bf16 %v2822_v19, %v2822_v19 }
 0x44f   : > { %5402 = vmatmul.mubr.msk.bf16.vlgmr.msra.gmra.mxu0 %vm925_vm2, %v2853_v15 }
 0x450   : > { %5408 = vmatmul.mubr.msk.bf16.vlgmr.msra.gmra.mxu1 %vm925_vm2, %v2854_v59  ;;  %5412 = vmatpush3.bf16.msra.mxu0 %v3432_v3  ;;  %v2730_v46 = vpop.xlane.xlu0 %2729  ;;  %v5737_v3 = vunpack.i.h.bf16 %v7085_v25 }
 0x451   : > { %5418 = vmatpush3.bf16.msra.mxu1 %v3478_v62  ;;  %5923 = vrcp.f32 %v2730_v46  ;;  %5413 = vmatprep.mubr.msk.bf16.mxu0 %vm6204_vm1, %v6202_v55 }
 0x452   : > { %v5918_v6 = vpop.eup %5917  ;;  %5419 = vmatprep.mubr.msk.bf16.mxu1 %vm6204_vm1, %v6202_v55  ;;  %5423 = vmatprep.subr.bf16.mxu0 %v6202_v55 }
 0x453   : > { %v5920_v42 = vpop.eup %5919  ;;  %5759 = vrot.lane.b32.xlu1 %v6719_v18, %s6207_s23  ;;  %5429 = vmatprep.subr.bf16.mxu1 %v6202_v55  ;;  %v2823_v27 = vmul.f32 %v5918_v6, %v7128_v32  ;;  %v3570_v18 = vsel %vm2878_vm3, %v905_v30, 0  ;;  %v911_v6 = vpack.c.bf16 %v5737_v3, %v5737_v3 }
 0x454   : > { %v2736_v29 = vpop.xlane.xlu0 %2735  ;;  %v2824_v5 = vmul.f32 %v5920_v42, %v7130_v1  ;;  %v5727_v1 = vunpack.i.h.bf16 %v6993_v53  ;;  %v910_v42 = vpack.c.bf16 %v5736_v9, %v5736_v9 }
 0x455   : > { %5925 = vrcp.f32 %v2736_v29  ;;  %v2855_v23 = vpack.c.bf16 %v2823_v27, %v2823_v27 }
 0x456   : > { %v2856_v35 = vpack.c.bf16 %v2824_v5, %v2824_v5  ;;  %v907_v13 = vpack.c.bf16 %v5727_v1, %v5727_v1 }
 0x457   : > { %5414 = vmatmul.mubr.msk.bf16.vlgmr.msra.gmra.mxu0 %vm925_vm2, %v2855_v23 }
 0x458   : > { %5420 = vmatmul.mubr.msk.bf16.vlgmr.msra.gmra.mxu1 %vm925_vm2, %v2856_v35  ;;  %5424 = vmatpush3.bf16.msra.mxu0 %v3524_v21  ;;  %v3662_v40 = vsel %vm2878_vm3, %v907_v13, 0  ;;  %v5742_v35 = vunpack.i.h.bf16 %v7156_v51  ;;  %v3846_v21 = vsel %vm2878_vm3, %v911_v6, 0 }
 0x459   : > { %5430 = vmatpush3.bf16.msra.mxu1 %v3570_v18  ;;  %5425 = vmatprep.mubr.msk.bf16.mxu0 %vm6204_vm1, %v6202_v55 }
 0x45a   : > { %v5922_v32 = vpop.eup %5921  ;;  %5435 = vmatprep.subr.bf16.mxu0 %v6202_v55  ;;  %5431 = vmatprep.mubr.msk.bf16.mxu1 %vm6204_vm1, %v6202_v55  ;;  %v913_v1 = vpack.c.bf16 %v5742_v35, %v5742_v35 }
 0x45b   : > { %v2825_v34 = vmul.f32 %v5922_v32, %v7136_v44  ;;  %5441 = vmatprep.subr.bf16.mxu1 %v6202_v55  ;;  %v5732_v44 = vunpack.i.h.bf16 %v6987_v31 }
 0x45d   : > { %v2857_v33 = vpack.c.bf16 %v2825_v34, %v2825_v34  ;;  %v909_v57 = vpack.c.bf16 %v5732_v44, %v5732_v44 }
 0x45e   : > { %v5924_v61 = vpop.eup %5923 }
 0x45f   : > { %5426 = vmatmul.mubr.msk.bf16.vlgmr.msra.gmra.mxu0 %vm925_vm2, %v2857_v33  ;;  %v2826_v39 = vmul.f32 %v5924_v61, %v7140_v38  ;;  %v3754_v37 = vsel %vm2878_vm3, %v909_v57, 0 }
 0x460   : > { %5436 = vmatpush3.bf16.msra.mxu0 %v3616_v41  ;;  %5437 = vmatprep.mubr.msk.bf16.mxu0 %vm6204_vm1, %v6202_v55 }
 0x461   : > { %v2858_v47 = vpack.c.bf16 %v2826_v39, %v2826_v39  ;;  %5447 = vmatprep.subr.bf16.mxu0 %v6202_v55 }
 0x462   : > { %v5926_v53 = vpop.eup %5925 }
 0x463   : > { %5754 = vrot.lane.b32.xlu0 %v6715_v17, %s6207_s23  ;;  %5432 = vmatmul.mubr.msk.bf16.vlgmr.msra.gmra.mxu1 %vm925_vm2, %v2858_v47  ;;  %v2828_v38 = vmul.f32 %v5926_v53, %v7144_v22  ;;  %v5731_v22 = vunpack.i.l.bf16 %v6987_v31  ;;  %v3938_v47 = vsel %vm2878_vm3, %v913_v1, 0  ;;  %s7602_s23 = scalar_lea.hbm %s7660_s10, %s4976_s2 }
 0x464   : > { %5442 = vmatpush3.bf16.msra.mxu1 %v3662_v40  ;;  %5443 = vmatprep.mubr.msk.bf16.mxu1 %vm6204_vm1, %v6202_v55 }
 0x465   : > { %5453 = vmatprep.subr.bf16.mxu1 %v6202_v55  ;;  %v2860_v58 = vpack.c.bf16 %v2828_v38, %v2828_v38  ;;  %v908_v2 = vpack.c.bf16 %v5731_v22, %v5731_v22 }
 0x467   : > { %v3708_v62 = vsel %vm2878_vm3, %v908_v2, 0 }
 0x46b   : > { %5444 = vmatmul.mubr.msk.bf16.vlgmr.msra.gmra.mxu1 %vm925_vm2, %v2860_v58 }
 0x46c   : > { %5454 = vmatpush3.bf16.msra.mxu1 %v3754_v37  ;;  %5455 = vmatprep.mubr.msk.bf16.mxu1 %vm6204_vm1, %v6202_v55 }
 0x46d   : > { %5465 = vmatprep.subr.bf16.mxu1 %v6202_v55 }
 0x481   : > { %v2733_v17 = vpop.xlane.xlu1 %2732 }
 0x482   : > { %5927 = vrcp.f32 %v2733_v17 }
 0x485   : > { %v2739_v60 = vpop.xlane.xlu0 %2738  ;;  %v2748_v26 = vpop.xlane.xlu1 %2747 }
 0x486   : > { %5929 = vrcp.f32 %v2739_v60 }
 0x489   : > { %v2742_v20 = vpop.xlane.xlu0 %2741 }
 0x48a   : > { %5931 = vrcp.f32 %v2742_v20  ;;  %v2754_v15 = vpop.xlane.xlu1 %2753 }
 0x48b   : > { %5933 = vrcp.f32 %v2748_v26 }
 0x48d   : > { %v2745_v56 = vpop.xlane.xlu0 %2744 }
 0x48e   : > { %5935 = vrcp.f32 %v2745_v56  ;;  %v5750_v2 = vpop.permute.xlu1 %5749 }
 0x48f   : > { %v5928_v63 = vpop.eup %5927  ;;  %5937 = vrcp.f32 %v2754_v15 }
 0x490   : > { %v2827_v19 = vmul.f32 %v5928_v63, %v7180_v50 }
 0x492   : > { %v2859_v59 = vpack.c.bf16 %v2827_v19, %v2827_v19 }
 0x493   : > { %v5930_v54 = vpop.eup %5929 }
 0x494   : > { %5438 = vmatmul.mubr.msk.bf16.vlgmr.msra.gmra.mxu0 %vm925_vm2, %v2859_v59  ;;  %v2829_v50 = vmul.f32 %v5930_v54, %v7187_v10  ;;  %v3800_v10 = vsel %vm2878_vm3, %v910_v42, 0 }
 0x495   : > { %5448 = vmatpush3.bf16.msra.mxu0 %v3708_v62  ;;  %v2751_v31 = vpop.xlane.xlu0 %2750  ;;  %5449 = vmatprep.mubr.msk.bf16.mxu0 %vm6204_vm1, %v6202_v55 }
 0x496   : > { %5939 = vrcp.f32 %v2751_v31  ;;  %5459 = vmatprep.subr.bf16.mxu0 %v6202_v55  ;;  %v2861_v29 = vpack.c.bf16 %v2829_v50, %v2829_v50  ;;  %v5752_v50 = vunpack.i.h.bf16 %v5750_v2 }
 0x497   : > { %v5932_v46 = vpop.eup %5931 }
 0x498   : > { %v2830_v25 = vmul.f32 %v5932_v46, %v7193_v45  ;;  %v5934_v27 = vpop.eup %5933 }
 0x499   : > { %v7369_v43 = vpop.f32.mrf.mxu1  ;;  %v2832_v18 = vmul.f32 %v5934_v27, %v7184_v12  ;;  %v5745_v34 = vpop.permute.xlu0 %5744  ;;  %v917_v27 = vpack.c.bf16 %v5752_v50, %v5752_v50 }
 0x49a   : > { %v2862_v30 = vpack.c.bf16 %v2830_v25, %v2830_v25  ;;  %v5747_v41 = vunpack.i.h.bf16 %v5745_v34  ;;  %v5746_v39 = vunpack.i.l.bf16 %v5745_v34 }
 0x49b   : > { %v5936_v5 = vpop.eup %5935  ;;  %v5349_v23 = vpop.f32.mrf.mxu1  ;;  %v2864_v61 = vpack.c.bf16 %v2832_v18, %v2832_v18 }
 0x49c   : > { %5450 = vmatmul.mubr.msk.bf16.vlgmr.msra.gmra.mxu0 %vm925_vm2, %v2861_v29  ;;  %5456 = vmatmul.mubr.msk.bf16.vlgmr.msra.gmra.mxu1 %vm925_vm2, %v2862_v30  ;;  %v2831_v51 = vmul.f32 %v5936_v5, %v7206_v7  ;;  %v5938_v33 = vpop.eup %5937  ;;  %v3892_v7 = vsel %vm2878_vm3, %v912_v16, 0  ;;  %v915_v57 = vpack.c.bf16 %v5747_v41, %v5747_v41  ;;  %v914_v58 = vpack.c.bf16 %v5746_v39, %v5746_v39 }
 0x49d   : > { %v2965_v45 = vpop.f32.mrf.mxu1  ;;  %5460 = vmatpush3.bf16.msra.mxu0 %v3800_v10  ;;  %5466 = vmatpush3.bf16.msra.mxu1 %v3846_v21  ;;  %v2834_v44 = vmul.f32 %v5938_v33, %v7198_v8 }
 0x49e   : > { %5461 = vmatprep.mubr.msk.bf16.mxu0 %vm6204_vm1, %v6202_v55  ;;  %5467 = vmatprep.mubr.msk.bf16.mxu1 %vm6204_vm1, %v6202_v55  ;;  %v2863_v13 = vpack.c.bf16 %v2831_v51, %v2831_v51  ;;  %v3984_v8 = vsel %vm2878_vm3, %v914_v58, 0  ;;  %v4122_v45 = vsel %vm2878_vm3, %v917_v27, 0 }
 0x49f   : > { %v5350_v32 = vpop.f32.mrf.mxu1  ;;  %5471 = vmatprep.subr.bf16.mxu0 %v6202_v55  ;;  %5477 = vmatprep.subr.bf16.mxu1 %v6202_v55  ;;  %v2866_v17 = vpack.c.bf16 %v2834_v44, %v2834_v44 }
 0x4a0   : > { %v5751_v32 = vunpack.i.l.bf16 %v5750_v2 }
 0x4a3   : > { %v5940_v12 = vpop.eup %5939 }
 0x4a4   : > { %5462 = vmatmul.mubr.msk.bf16.vlgmr.msra.gmra.mxu0 %vm925_vm2, %v2863_v13  ;;  %5468 = vmatmul.mubr.msk.bf16.vlgmr.msra.gmra.mxu1 %vm925_vm2, %v2864_v61  ;;  %v2833_v40 = vmul.f32 %v5940_v12, %v7220_v36  ;;  %v4030_v36 = vsel %vm2878_vm3, %v915_v57, 0  ;;  %v916_v13 = vpack.c.bf16 %v5751_v32, %v5751_v32 }
 0x4a5   : > { %v7389_v53 = vpop.f32.mrf.mxu1  ;;  %5472 = vmatpush3.bf16.msra.mxu0 %v3892_v7  ;;  %5478 = vmatpush3.bf16.msra.mxu1 %v3938_v47 }
 0x4a6   : > { %5473 = vmatprep.mubr.msk.bf16.mxu0 %vm6204_vm1, %v6202_v55  ;;  %5479 = vmatprep.mubr.msk.bf16.mxu1 %vm6204_vm1, %v6202_v55  ;;  %v2865_v60 = vpack.c.bf16 %v2833_v40, %v2833_v40  ;;  %v4076_v58 = vsel %vm2878_vm3, %v916_v13, 0 }
 0x4a7   : > { %v5361_v38 = vpop.f32.mrf.mxu1  ;;  %5483 = vmatprep.subr.bf16.mxu0 %v6202_v55  ;;  %5489 = vmatprep.subr.bf16.mxu1 %v6202_v55 }
 0x4a9   : > { %v3057_v37 = vpop.f32.mrf.mxu1 }
 0x4ab   : > { %v5362_v20 = vpop.f32.mrf.mxu1 }
 0x4ac   : > { %5474 = vmatmul.mubr.msk.bf16.vlgmr.msra.gmra.mxu0 %vm925_vm2, %v2865_v60  ;;  %5480 = vmatmul.mubr.msk.bf16.vlgmr.msra.gmra.mxu1 %vm925_vm2, %v2866_v17 }
 0x4ad   : > { %5484 = vmatpush3.bf16.msra.mxu0 %v3984_v8  ;;  %5490 = vmatpush3.bf16.msra.mxu1 %v4030_v36  ;;  %v7403_v26 = vpop.f32.mrf.mxu1 }
 0x4ae   : > { %5491 = vmatprep.mubr.msk.bf16.mxu1 %vm6204_vm1, %v6202_v55  ;;  %5501 = vmatprep.subr.bf16.mxu1 %v6202_v55 }
 0x4af   : > { %5485 = vmatprep.mubr.msk.bf16.mxu0 %vm6204_vm1, %v6202_v55  ;;  %5495 = vmatprep.subr.bf16.mxu0 %v6202_v55  ;;  %v5373_v22 = vpop.f32.mrf.mxu1 }
 0x4b1   : > { %v3149_v56 = vpop.f32.mrf.mxu1 }
 0x4b3   : > { %v5374_v63 = vpop.f32.mrf.mxu1 }
 0x4bf   : > { %v2760_v19 = vpop.xlane.xlu1 %2759 }
 0x4c0   : > { %5941 = vrcp.f32 %v2760_v19  ;;  %v7411_v15 = vpop.f32.mrf.mxu0 }
 0x4c2   : > { %v5343_v59 = vpop.f32.mrf.mxu0 }
 0x4c3   : > { %v2766_v54 = vpop.xlane.xlu1 %2765 }
 0x4c4   : > { %5943 = vrcp.f32 %v2766_v54  ;;  %v2919_v3 = vpop.f32.mrf.mxu0 }
 0x4c6   : > { %v5344_v9 = vpop.f32.mrf.mxu0 }
 0x4c7   : > { %v2772_v31 = vpop.xlane.xlu1 %2771 }
 0x4c8   : > { %v7413_v62 = vpop.f32.mrf.mxu0 }
 0x4ca   : > { %v5355_v46 = vpop.f32.mrf.mxu0  ;;  %v2757_v6 = vpop.xlane.xlu0 %2756 }
 0x4cb   : > { %5945 = vrcp.f32 %v2757_v6  ;;  %v2778_v10 = vpop.xlane.xlu1 %2777 }
 0x4cc   : > { %v3011_v42 = vpop.f32.mrf.mxu0  ;;  %5947 = vrcp.f32 %v2772_v31 }
 0x4cd   : > { %v5942_v25 = vpop.eup %5941 }
 0x4ce   : > { %v2836_v30 = vmul.f32 %v5942_v25, %v7258_v24  ;;  %v5356_v29 = vpop.f32.mrf.mxu0  ;;  %v2763_v5 = vpop.xlane.xlu0 %2762 }
 0x4cf   : > { %5949 = vrcp.f32 %v2763_v5  ;;  %v5760_v61 = vpop.permute.xlu1 %5759 }
 0x4d0   : > { %v2868_v23 = vpack.c.bf16 %v2836_v30, %v2836_v30  ;;  %v7416_v35 = vpop.f32.mrf.mxu0  ;;  %5951 = vrcp.f32 %v2778_v10  ;;  %v5761_v56 = vunpack.i.l.bf16 %v5760_v61 }
 0x4d1   : > { %v5944_v11 = vpop.eup %5943 }
 0x4d2   : > { %v5367_v21 = vpop.f32.mrf.mxu0  ;;  %5492 = vmatmul.mubr.msk.bf16.vlgmr.msra.gmra.mxu1 %vm925_vm2, %v2868_v23  ;;  %v2769_v18 = vpop.xlane.xlu0 %2768  ;;  %v2838_v24 = vmul.f32 %v5944_v11, %v7263_v14  ;;  %v5762_v14 = vunpack.i.h.bf16 %v5760_v61  ;;  %v920_v59 = vpack.c.bf16 %v5761_v56, %v5761_v56 }
 0x4d3   : > { %5502 = vmatpush3.bf16.msra.mxu1 %v4122_v45  ;;  %5503 = vmatprep.mubr.msk.bf16.mxu1 %vm6204_vm1, %v6202_v55  ;;  %5953 = vrcp.f32 %v2769_v18 }
 0x4d4   : > { %v3103_v51 = vpop.f32.mrf.mxu0  ;;  %5513 = vmatprep.subr.bf16.mxu1 %v6202_v55  ;;  %v2870_v33 = vpack.c.bf16 %v2838_v24, %v2838_v24  ;;  %v4260_v50 = vsel %vm2878_vm3, %v920_v59, 0 }
 0x4d6   : > { %v5368_v1 = vpop.f32.mrf.mxu0  ;;  %v2775_v16 = vpop.xlane.xlu0 %2774 }
 0x4d7   : > { %5955 = vrcp.f32 %v2775_v16 }
 0x4d8   : > { %v5946_v34 = vpop.eup %5945 }
 0x4d9   : > { %v2835_v12 = vmul.f32 %v5946_v34, %v7269_v28  ;;  %v5948_v41 = vpop.eup %5947  ;;  %v921_v28 = vpack.c.bf16 %v5762_v14, %v5762_v14 }
 0x4da   : > { %5504 = vmatmul.mubr.msk.bf16.vlgmr.msra.gmra.mxu1 %vm925_vm2, %v2870_v33  ;;  %v5755_v39 = vpop.permute.xlu0 %5754  ;;  %v2840_v40 = vmul.f32 %v5948_v41, %v7267_v48 }
 0x4db   : > { %v2867_v7 = vpack.c.bf16 %v2835_v12, %v2835_v12  ;;  %v5757_v47 = vunpack.i.h.bf16 %v5755_v39  ;;  %5515 = vmatprep.mubr.msk.bf16.mxu1 %vm6204_vm1, %v6202_v55  ;;  %v5756_v57 = vunpack.i.l.bf16 %v5755_v39  ;;  %v4306_v36 = vsel %vm2878_vm3, %v921_v28, 0 }
 0x4dc   : > { %v5950_v44 = vpop.eup %5949  ;;  %v2872_v48 = vpack.c.bf16 %v2840_v40, %v2840_v40 }
 0x4dd   : > { %v919_v38 = vpack.c.bf16 %v5757_v47, %v5757_v47  ;;  %5486 = vmatmul.mubr.msk.bf16.vlgmr.msra.gmra.mxu0 %vm925_vm2, %v2867_v7  ;;  %v2837_v37 = vmul.f32 %v5950_v44, %v7277_v0  ;;  %v918_v60 = vpack.c.bf16 %v5756_v57, %v5756_v57  ;;  %v5952_v20 = vpop.eup %5951 }
 0x4de   : > { %5496 = vmatpush3.bf16.msra.mxu0 %v4076_v58  ;;  %5497 = vmatprep.mubr.msk.bf16.mxu0 %vm6204_vm1, %v6202_v55  ;;  %v2842_v0 = vmul.f32 %v5952_v20, %v7273_v49 }
 0x4df   : > { %v4214_v17 = vsel %vm2878_vm3, %v919_v38, 0  ;;  %5507 = vmatprep.subr.bf16.mxu0 %v6202_v55  ;;  %v2869_v8 = vpack.c.bf16 %v2837_v37, %v2837_v37  ;;  %v4168_v63 = vsel %vm2878_vm3, %v918_v60, 0 }
 0x4e0   : > { %5514 = vmatpush3.bf16.msra.mxu1 %v4214_v17  ;;  %v5954_v22 = vpop.eup %5953  ;;  %v2874_v19 = vpack.c.bf16 %v2842_v0, %v2842_v0 }
 0x4e1   : > { %5525 = vmatprep.subr.bf16.mxu1 %v6202_v55  ;;  %v2839_v2 = vmul.f32 %v5954_v22, %v7287_v52 }
 0x4e3   : > { %5516 = vmatmul.mubr.msk.bf16.vlgmr.msra.gmra.mxu1 %vm925_vm2, %v2872_v48  ;;  %v2871_v54 = vpack.c.bf16 %v2839_v2, %v2839_v2 }
 0x4e4   : > { %5526 = vmatpush3.bf16.msra.mxu1 %v4306_v36  ;;  %5527 = vmatprep.mubr.msk.bf16.mxu1 %vm6204_vm1, %v6202_v55  ;;  %v5956_v49 = vpop.eup %5955 }
 0x4e5   : > { %5498 = vmatmul.mubr.msk.bf16.vlgmr.msra.gmra.mxu0 %vm925_vm2, %v2869_v8  ;;  %v2841_v52 = vmul.f32 %v5956_v49, %v7299_v4 }
 0x4e6   : > { %5508 = vmatpush3.bf16.msra.mxu0 %v4168_v63  ;;  %5509 = vmatprep.mubr.msk.bf16.mxu0 %vm6204_vm1, %v6202_v55 }
 0x4e7   : > { %5519 = vmatprep.subr.bf16.mxu0 %v6202_v55  ;;  %v2873_v30 = vpack.c.bf16 %v2841_v52, %v2841_v52 }
 0x4e9   : > { %v7448_v3 = vpop.f32.mrf.mxu0 }
 0x4ea   : > { %v7451_v9 = vpop.f32.mrf.mxu1 }
 0x4eb   : > { %5528 = vmatmul.mubr.msk.bf16.vlgmr.msra.gmra.mxu1 %vm925_vm2, %v2874_v19  ;;  %v5379_v31 = vpop.f32.mrf.mxu0 }
 0x4ec   : > { %v5385_v46 = vpop.f32.mrf.mxu1 }
 0x4ed   : > { %5510 = vmatmul.mubr.msk.bf16.vlgmr.msra.gmra.mxu0 %vm925_vm2, %v2871_v54  ;;  %v3195_v6 = vpop.f32.mrf.mxu0 }
 0x4ee   : > { %5520 = vmatpush3.bf16.msra.mxu0 %v4260_v50  ;;  %5521 = vmatprep.mubr.msk.bf16.mxu0 %vm6204_vm1, %v6202_v55  ;;  %v3241_v42 = vpop.f32.mrf.mxu1 }
 0x4ef   : > { %v5380_v25 = vpop.f32.mrf.mxu0 }
 0x4f0   : > { %v5386_v27 = vpop.f32.mrf.mxu1 }
 0x4f5   : > { %5522 = vmatmul.mubr.msk.bf16.vlgmr.msra.gmra.mxu0 %vm925_vm2, %v2873_v30 }
 0x506   : > { %v3284_v29 = vpop.f32.mrf.mxu0 }
 0x507   : > { %v3330_v5 = vpop.f32.mrf.mxu1 }
 0x508   : > { %v5763_v23 = vpack.i.bf16 %v3330_v5, %v3284_v29  ;;  %v5391_v11 = vpop.f32.mrf.mxu0 }
 0x509   : > { %v5397_v10 = vpop.f32.mrf.mxu1 }
 0x50a   : > { %5764 = vrot.lane.b32.xlu1 %v5763_v23, %s6208_s28  ;;  %v3287_v21 = vpop.f32.mrf.mxu0 }
 0x50b   : > { %v3333_v45 = vpop.f32.mrf.mxu1 }
 0x50c   : > { %v5392_v55 = vpop.f32.mrf.mxu0 }
 0x50d   : > { %v5398_v18 = vpop.f32.mrf.mxu1 }
 0x50f   : > { %v3376_v4 = vpop.f32.mrf.mxu0 }
 0x510   : > { %v3422_v24 = vpop.f32.mrf.mxu1 }
 0x511   : > { %v5768_v51 = vpack.i.bf16 %v3422_v24, %v3376_v4  ;;  %v5403_v32 = vpop.f32.mrf.mxu0 }
 0x512   : > { %v5409_v1 = vpop.f32.mrf.mxu1 }
 0x513   : > { %5769 = vrot.lane.b32.xlu1 %v5768_v51, %s6208_s28  ;;  %v3379_v16 = vpop.f32.mrf.mxu0 }
 0x514   : > { %v3425_v34 = vpop.f32.mrf.mxu1 }
 0x515   : > { %v5404_v33 = vpop.f32.mrf.mxu0 }
 0x516   : > { %v5410_v61 = vpop.f32.mrf.mxu1 }
 0x517   : > { %v3468_v13 = vpop.f32.mrf.mxu0 }
 0x518   : > { %v3514_v12 = vpop.f32.mrf.mxu1 }
 0x519   : > { %v5773_v41 = vpack.i.bf16 %v3514_v12, %v3468_v13  ;;  %v5415_v39 = vpop.f32.mrf.mxu0  ;;  %v5827_v13 = vld [vmem:[#allocation10 + $0x8] sm:$0xff]  }
 0x51a   : > { %v5421_v7 = vpop.f32.mrf.mxu1  ;;  %5531 = vmatprep.subr.bf16.mxu0 %v5827_v13 }
 0x51b   : > { %5774 = vrot.lane.b32.xlu0 %v5773_v41, %s6208_s28  ;;  %v3471_v14 = vpop.f32.mrf.mxu0  ;;  %5532 = vmatpush3.bf16.msra.mxu0 %v5827_v13 }
 0x51c   : > { %v3517_v47 = vpop.f32.mrf.mxu1 }
 0x51d   : > { %v5416_v44 = vpop.f32.mrf.mxu0  ;;  %v5828_v47 = vld [vmem:[#allocation10] sm:$0xff]  }
 0x51e   : > { %v5422_v40 = vpop.f32.mrf.mxu1  ;;  %5533 = vmatprep.subr.bf16.mxu0 %v5828_v47 }
 0x51f   : > { %v3560_v38 = vpop.f32.mrf.mxu0  ;;  %5534 = vmatpush3.bf16.msra.mxu0 %v5828_v47 }
 0x521   : > { %v5427_v57 = vpop.f32.mrf.mxu0 }
 0x523   : > { %v3563_v58 = vpop.f32.mrf.mxu0  ;;  %v3606_v28 = vpop.f32.mrf.mxu1 }
 0x524   : > { %v5778_v37 = vpack.i.bf16 %v3606_v28, %v3560_v38 }
 0x525   : > { %v5428_v17 = vpop.f32.mrf.mxu0  ;;  %v5433_v48 = vpop.f32.mrf.mxu1 }
 0x526   : > { %5779 = vrot.lane.b32.xlu1 %v5778_v37, %s6208_s28 }
 0x527   : > { %v3609_v60 = vpop.f32.mrf.mxu1 }
 0x529   : > { %v5434_v20 = vpop.f32.mrf.mxu1 }
 0x52b   : > { %v3698_v8 = vpop.f32.mrf.mxu1 }
 0x52d   : > { %v5445_v36 = vpop.f32.mrf.mxu1 }
 0x52f   : > { %v3701_v22 = vpop.f32.mrf.mxu1 }
 0x531   : > { %v5446_v0 = vpop.f32.mrf.mxu1 }
 0x554   : > { %v3652_v56 = vpop.f32.mrf.mxu0 }
 0x555   : > { %v5783_v63 = vpack.i.bf16 %v3698_v8, %v3652_v56 }
 0x556   : > { %v5439_v2 = vpop.f32.mrf.mxu0 }
 0x557   : > { %5784 = vrot.lane.b32.xlu1 %v5783_v63, %s6209_s12 }
 0x558   : > { %v3655_v19 = vpop.f32.mrf.mxu0 }
 0x55a   : > { %v5440_v59 = vpop.f32.mrf.mxu0 }
 0x55c   : > { %v3744_v54 = vpop.f32.mrf.mxu0  ;;  %v3790_v49 = vpop.f32.mrf.mxu1 }
 0x55d   : > { %v5788_v31 = vpack.i.bf16 %v3790_v49, %v3744_v54 }
 0x55e   : > { %v5451_v50 = vpop.f32.mrf.mxu0  ;;  %v5457_v46 = vpop.f32.mrf.mxu1 }
 0x55f   : > { %5789 = vrot.lane.b32.xlu1 %v5788_v31, %s6209_s12 }
 0x560   : > { %v3747_v52 = vpop.f32.mrf.mxu0  ;;  %v3793_v6 = vpop.f32.mrf.mxu1 }
 0x562   : > { %v5452_v42 = vpop.f32.mrf.mxu0  ;;  %v5458_v25 = vpop.f32.mrf.mxu1 }
 0x564   : > { %v3836_v27 = vpop.f32.mrf.mxu0  ;;  %v3882_v30 = vpop.f32.mrf.mxu1 }
 0x565   : > { %v5798_v57 = vpack.i.bf16 %v3882_v30, %v3836_v27 }
 0x566   : > { %v5463_v29 = vpop.f32.mrf.mxu0  ;;  %v5469_v5 = vpop.f32.mrf.mxu1 }
 0x568   : > { %v3839_v23 = vpop.f32.mrf.mxu0  ;;  %v3885_v11 = vpop.f32.mrf.mxu1 }
 0x56a   : > { %v5464_v10 = vpop.f32.mrf.mxu0  ;;  %v5470_v21 = vpop.f32.mrf.mxu1 }
 0x56c   : > { %v3928_v45 = vpop.f32.mrf.mxu0  ;;  %v3974_v55 = vpop.f32.mrf.mxu1 }
 0x56d   : > { %v5808_v22 = vpack.i.bf16 %v3974_v55, %v3928_v45 }
 0x56e   : > { %v5475_v18 = vpop.f32.mrf.mxu0  ;;  %v5481_v4 = vpop.f32.mrf.mxu1 }
 0x570   : > { %v3931_v24 = vpop.f32.mrf.mxu0  ;;  %v3977_v51 = vpop.f32.mrf.mxu1 }
 0x572   : > { %v5476_v32 = vpop.f32.mrf.mxu0  ;;  %v5482_v1 = vpop.f32.mrf.mxu1 }
 0x57c   : > { %v5765_v27 = vpop.permute.xlu1 %5764 }
 0x57d   : > { %v5767_v11 = vunpack.i.h.bf16 %v5765_v27  ;;  %v5766_v10 = vunpack.i.l.bf16 %v5765_v27 }
 0x57f   : > { %v4445_v18 = vsel %vm925_vm2, %v7369_v43, %v5767_v11  ;;  %v4444_v4 = vsel %vm925_vm2, %v7411_v15, %v5766_v10 }
 0x585   : > { %v5770_v30 = vpop.permute.xlu1 %5769 }
 0x586   : > { %v5772_v13 = vunpack.i.h.bf16 %v5770_v30 }
 0x588   : > { %v4447_v15 = vsel %vm925_vm2, %v7389_v53, %v5772_v13 }
 0x58d   : > { %v5775_v23 = vpop.permute.xlu0 %5774 }
 0x592   : > { %v4066_v16 = vpop.f32.mrf.mxu1 }
 0x594   : > { %v5493_v34 = vpop.f32.mrf.mxu1 }
 0x596   : > { %v4069_v33 = vpop.f32.mrf.mxu1 }
 0x598   : > { %v5494_v61 = vpop.f32.mrf.mxu1  ;;  %v5780_v29 = vpop.permute.xlu1 %5779 }
 0x59a   : > { %v4158_v12 = vpop.f32.mrf.mxu1 }
 0x59c   : > { %v5505_v41 = vpop.f32.mrf.mxu1 }
 0x59d   : > { %v4020_v39 = vpop.f32.mrf.mxu0 }
 0x59e   : > { %v5793_v7 = vpack.i.bf16 %v4066_v16, %v4020_v39  ;;  %v4161_v14 = vpop.f32.mrf.mxu1 }
 0x59f   : > { %v5487_v44 = vpop.f32.mrf.mxu0 }
 0x5a0   : > { %v5506_v40 = vpop.f32.mrf.mxu1  ;;  %5794 = vrot.lane.b32.xlu0 %v5793_v7, %s6210_s30 }
 0x5a1   : > { %v4023_v38 = vpop.f32.mrf.mxu0 }
 0x5a3   : > { %v5488_v58 = vpop.f32.mrf.mxu0  ;;  %v4250_v28 = vpop.f32.mrf.mxu1 }
 0x5a4   : > { %5799 = vrot.lane.b32.xlu0 %v5798_v57, %s6209_s12 }
 0x5a5   : > { %v4112_v37 = vpop.f32.mrf.mxu0  ;;  %v5517_v17 = vpop.f32.mrf.mxu1 }
 0x5a6   : > { %v5803_v48 = vpack.i.bf16 %v4158_v12, %v4112_v37  ;;  %v5771_v12 = vunpack.i.l.bf16 %v5770_v30  ;;  %v5777_v37 = vunpack.i.h.bf16 %v5775_v23  ;;  %v5776_v17 = vunpack.i.l.bf16 %v5775_v23  ;;  %v5973_v23 = vld [vmem:[%s6460_s18 + $0x10] sm:$0xff] }
 0x5a7   : > { %v5499_v60 = vpop.f32.mrf.mxu0  ;;  %v4253_v20 = vpop.f32.mrf.mxu1 }
 0x5a8   : > { %5804 = vrot.lane.b32.xlu1 %v5803_v48, %s6210_s30  ;;  %v4446_v7 = vsel %vm925_vm2, %v7413_v62, %v5771_v12  ;;  %v4449_v62 = vsel %vm925_vm2, %v7403_v26, %v5777_v37  ;;  %v4448_v20 = vsel %vm925_vm2, %v7416_v35, %v5776_v17  ;;  %v5980_v17 = vld [vmem:[%s6460_s18 + $0x38] sm:$0xff] }
 0x5a9   : > { %v4115_v8 = vpop.f32.mrf.mxu0  ;;  %v5518_v36 = vpop.f32.mrf.mxu1 }
 0x5ab   : > { %v5500_v0 = vpop.f32.mrf.mxu0  ;;  %v4342_v56 = vpop.f32.mrf.mxu1 }
 0x5ac   : > { %5809 = vrot.lane.b32.xlu1 %v5808_v22, %s6209_s12  ;;  %s6119_s12 = sshll.u32 %s6211_s0, 4  ;;  %s6120_s12 = int_to_ptr.vmem [resolvable:$false] %s6119_s12 }
 0x5ad   : > { %v4204_v63 = vpop.f32.mrf.mxu0  ;;  %v5529_v2 = vpop.f32.mrf.mxu1  ;;  %p6122_p9 = scmp.lt.s32.totalorder %s7604_s27, %s6120_s12 }
 0x5ae   : > { %v5813_v19 = vpack.i.bf16 %v4250_v28, %v4204_v63 }
 0x5af   : > { %v5511_v59 = vpop.f32.mrf.mxu0  ;;  %v4345_v54 = vpop.f32.mrf.mxu1 }
 0x5b0   : > { %5814 = vrot.lane.b32.xlu0 %v5813_v19, %s6210_s30  ;;  %v5782_v59 = vunpack.i.h.bf16 %v5780_v29  ;;  %v5781_v54 = vunpack.i.l.bf16 %v5780_v29 }
 0x5b1   : > { %v4207_v49 = vpop.f32.mrf.mxu0  ;;  %v5530_v31 = vpop.f32.mrf.mxu1 }
 0x5b2   : > { %v4451_v35 = vsel %vm925_vm2, %v7451_v9, %v5782_v59  ;;  %v4960_v9 = vld [vmem:[%s7657_s7] ss:$0 sm:$0xff] }
 0x5b3   : > { %v5512_v50 = vpop.f32.mrf.mxu0 }
 0x5b4   : > { %v4450_v50 = vsel %vm925_vm2, %v7448_v3, %v5781_v54 }
 0x5b5   : > { %v4296_v46 = vpop.f32.mrf.mxu0 }
 0x5b6   : > { %v5818_v52 = vpack.i.bf16 %v4342_v56, %v4296_v46 }
 0x5b7   : > { %v5523_v6 = vpop.f32.mrf.mxu0 }
 0x5b8   : > { %5819 = vrot.lane.b32.xlu1 %v5818_v52, %s6210_s30  ;;  %s6121_s30 = scalar_lea.vmem %s6120_s12, 2048 }
 0x5b9   : > { %v4299_v42 = vpop.f32.mrf.mxu0  ;;  %p6123_p2 = scmp.lt.s32.totalorder %s6121_s30, %s6115_s22 }
 0x5bb   : > { %v5524_v25 = vpop.f32.mrf.mxu0  ;;  %p6124_p10 = por %p6123_p2, %p6122_p9 }
 0x5bd   : > { %p6125_p13 = pnand %p6124_p10, %p6118_p7 }
 0x5c9   : > { %v5785_v5 = vpop.permute.xlu1 %5784 }
 0x5ca   : > { %v5787_v21 = vunpack.i.h.bf16 %v5785_v5  ;;  %v5786_v45 = vunpack.i.l.bf16 %v5785_v5 }
 0x5cc   : > { %v4454_v32 = vsel %vm4452_vm4, %v4445_v18, %v5787_v21  ;;  %v4453_v1 = vsel %vm4452_vm4, %v4444_v4, %v5786_v45  ;;  %v5974_v45 = vld [vmem:[%s6460_s18] sm:$0xff] }
 0x5d1   : > { %v5790_v16 = vpop.permute.xlu1 %5789 }
 0x5d2   : > { %v5792_v41 = vunpack.i.h.bf16 %v5790_v16  ;;  %v5791_v39 = vunpack.i.l.bf16 %v5790_v16  ;;  %v5976_v16 = vld [vmem:[%s6460_s18 + $0x8] sm:$0xff] }
 0x5d4   : > { %v4456_v44 = vsel %vm4452_vm4, %v4447_v15, %v5792_v41  ;;  %v4455_v40 = vsel %vm4452_vm4, %v4446_v7, %v5791_v39  ;;  %v5977_v7 = vld [vmem:[%s6460_s18 + $0x20] sm:$0xff] }
 0x612   : > { %v5795_v55 = vpop.permute.xlu0 %5794 }
 0x613   : > { %v5797_v24 = vunpack.i.h.bf16 %v5795_v55  ;;  %v5796_v51 = vunpack.i.l.bf16 %v5795_v55 }
 0x615   : > { %v4463_v34 = vsel %vm4461_vm5, %v4454_v32, %v5797_v24  ;;  %v4462_v33 = vsel %vm4461_vm5, %v4453_v1, %v5796_v51  ;;  %v5975_v32 = vld [vmem:[%s6460_s18 + $0x18] sm:$0xff] }
 0x616   : > { %v4470_v61 = vpack.c.bf16 %v4463_v34, %v4462_v33  ;;  %v5800_v38 = vpop.permute.xlu0 %5799 }
 0x617   : > { %v5802_v48 = vunpack.i.h.bf16 %v5800_v38  ;;  %v5801_v60 = vunpack.i.l.bf16 %v5800_v38 }
 0x618   : > { %5535 = vmatprep.mubr.msk.bf16.mxu0 %vm516_vm0, %v4470_v61 }
 0x619   : > { %v4458_v22 = vsel %vm4452_vm4, %v4449_v62, %v5802_v48  ;;  %v4457_v0 = vsel %vm4452_vm4, %v4448_v20, %v5801_v60 }
 0x61a   : > { %v5805_v43 = vpop.permute.xlu1 %5804 }
 0x61b   : > { %v5807_v14 = vunpack.i.h.bf16 %v5805_v43  ;;  %v5806_v47 = vunpack.i.l.bf16 %v5805_v43 }
 0x61d   : > { %v4465_v57 = vsel %vm4461_vm5, %v4456_v44, %v5807_v14  ;;  %v4464_v58 = vsel %vm4461_vm5, %v4455_v40, %v5806_v47  ;;  %v5978_v44 = vld [vmem:[%s6460_s18 + $0x30] sm:$0xff] }
 0x61e   : > { %v4471_v28 = vpack.c.bf16 %v4465_v57, %v4464_v58  ;;  %v5810_v56 = vpop.permute.xlu1 %5809 }
 0x61f   : > { %v5812_v49 = vunpack.i.h.bf16 %v5810_v56  ;;  %v5811_v31 = vunpack.i.l.bf16 %v5810_v56 }
 0x620   : > { %5536 = vmatmul.mubr.msk.bf16.vlgmr.msra.gmra.mxu0 %vm516_vm0, %v4471_v28  ;;  %v5979_v28 = vld [vmem:[%s6460_s18 + $0x28] sm:$0xff] }
 0x621   : > { %v4460_v6 = vsel %vm4452_vm4, %v4451_v35, %v5812_v49  ;;  %v4459_v42 = vsel %vm4452_vm4, %v4450_v50, %v5811_v31 }
 0x622   : > { %v5815_v53 = vpop.permute.xlu0 %5814 }
 0x623   : > { %v5817_v8 = vunpack.i.h.bf16 %v5815_v53  ;;  %v5816_v36 = vunpack.i.l.bf16 %v5815_v53 }
 0x625   : > { %v4467_v63 = vsel %vm4461_vm5, %v4458_v22, %v5817_v8  ;;  %v4466_v2 = vsel %vm4461_vm5, %v4457_v0, %v5816_v36 }
 0x626   : > { %v4472_v19 = vpack.c.bf16 %v4467_v63, %v4466_v2 }
 0x628   : > { %5539 = vmatprep.mubr.msk.bf16.mxu0 %vm516_vm0, %v4472_v19 }
 0x62a   : > { %v5820_v26 = vpop.permute.xlu1 %5819 }
 0x62b   : > { %v5822_v46 = vunpack.i.h.bf16 %v5820_v26  ;;  %v5821_v52 = vunpack.i.l.bf16 %v5820_v26 }
 0x62d   : > { %v4469_v25 = vsel %vm4461_vm5, %v4460_v6, %v5822_v46  ;;  %v4468_v27 = vsel %vm4461_vm5, %v4459_v42, %v5821_v52 }
 0x62e   : > { %v4473_v30 = vpack.c.bf16 %v4469_v25, %v4468_v27 }
 0x630   : > { %5540 = vmatmul.mubr.msk.bf16.gmra.mxu0 %vm516_vm0, %v4473_v30 }
 0x6e0   : > { %v5537_v3 = vpop.f32.mrf.mxu0 }
 0x6e1   : > { %v4552_v29 = vadd.f32 %v5537_v3, %v4960_v9 }
 0x6e2   : > { %v4543_v5 = vpop.f32.mrf.mxu0 }
 0x6e3   : > { %v4576_v11 = vadd.f32 %v5973_v23, %v4552_v29  ;;  %v4544_v10 = vadd.f32 %v4960_v9, %v4543_v5 }
 0x6e4   : > { %v5538_v21 = vpop.f32.mrf.mxu0 }
 0x6e5   : > { %v4574_v55 = vadd.f32 %v5974_v45, %v4544_v10  ;;  %v4555_v18 = vadd.f32 %v5538_v21, %v4960_v9  ;;  %v4588_v4 = vsel %vm516_vm0, %v4576_v11, 0.0 }
 0x6e6   : > { %4589 = vadd.xlane.f32.xlu0 %v4588_v4  ;;  %v4546_v24 = vpop.f32.mrf.mxu0 }
 0x6e7   : > { %v4547_v51 = vadd.f32 %v4960_v9, %v4546_v24  ;;  %v4577_v1 = vadd.f32 %v5975_v32, %v4555_v18  ;;  %v4582_v33 = vsel %vm516_vm0, %v4574_v55, 0.0 }
 0x6e9   : > { %v4575_v34 = vadd.f32 %v5976_v16, %v4547_v51  ;;  %v4591_v13 = vsel %vm516_vm0, %v4577_v1, 0.0 }
 0x6ea   : > { %4583 = vadd.xlane.f32.xlu0 %v4582_v33 }
 0x6eb   : > { %v4585_v61 = vsel %vm516_vm0, %v4575_v34, 0.0 }
 0x6ec   : > { %4586 = vadd.xlane.f32.xlu1 %v4585_v61 }
 0x6ee   : > { %4592 = vadd.xlane.f32.xlu0 %v4591_v13 }
 0x6f0   : > { %v5541_v12 = vpop.f32.mrf.mxu0 }
 0x6f1   : > { %v4568_v39 = vadd.f32 %v5541_v12, %v4960_v9 }
 0x6f2   : > { %v4559_v41 = vpop.f32.mrf.mxu0 }
 0x6f3   : > { %v4560_v43 = vadd.f32 %v4960_v9, %v4559_v41  ;;  %v4580_v40 = vadd.f32 %v5978_v44, %v4568_v39 }
 0x6f4   : > { %v5542_v15 = vpop.f32.mrf.mxu0 }
 0x6f5   : > { %v4578_v14 = vadd.f32 %v5977_v7, %v4560_v43  ;;  %v4571_v38 = vadd.f32 %v5542_v15, %v4960_v9  ;;  %v4600_v60 = vsel %vm516_vm0, %v4580_v40, 0.0 }
 0x6f6   : > { %v4562_v47 = vpop.f32.mrf.mxu0 }
 0x6f7   : > { %v4563_v57 = vadd.f32 %v4960_v9, %v4562_v47  ;;  %v4594_v58 = vsel %vm516_vm0, %v4578_v14, 0.0  ;;  %v4581_v48 = vadd.f32 %v5980_v17, %v4571_v38 }
 0x6f8   : > { %4595 = vadd.xlane.f32.xlu1 %v4594_v58 }
 0x6f9   : > { %v4579_v37 = vadd.f32 %v5979_v28, %v4563_v57  ;;  %v4603_v62 = vsel %vm516_vm0, %v4581_v48, 0.0  ;;  %v4968_v28 = vld [vmem:[%s7659_s9] ss:$0 sm:$0xff] }
 0x6fb   : > { %v4597_v53 = vsel %vm516_vm0, %v4579_v37, 0.0 }
 0x6fc   : > { %4601 = vadd.xlane.f32.xlu1 %v4600_v60  ;;  %4598 = vadd.xlane.f32.xlu0 %v4597_v53 }
 0x700   : > { %4604 = vadd.xlane.f32.xlu0 %v4603_v62 }
 0x76f   : > { %v4590_v20 = vpop.xlane.xlu0 %4589 }
 0x770   : > { %v4609_v8 = vmul.f32 0.03125, %v4590_v20 }
 0x772   : > { %v7526_v36 = vsub.f32 %v4576_v11, %v4609_v8 }
 0x773   : > { %v4584_v22 = vpop.xlane.xlu0 %4583 }
 0x774   : > { %v4607_v0 = vmul.f32 0.03125, %v4584_v22  ;;  %v4625_v56 = vmul.f32 %v7526_v36, %v7526_v36 }
 0x775   : > { %v4587_v63 = vpop.xlane.xlu1 %4586 }
 0x776   : > { %v7530_v2 = vsub.f32 %v4574_v55, %v4607_v0  ;;  %v4608_v19 = vmul.f32 0.03125, %v4587_v63  ;;  %v4637_v59 = vsel %vm516_vm0, %v4625_v56, 0.0 }
 0x777   : > { %4638 = vadd.xlane.f32.xlu1 %v4637_v59  ;;  %v4593_v54 = vpop.xlane.xlu0 %4592 }
 0x778   : > { %v4610_v49 = vmul.f32 0.03125, %v4593_v54  ;;  %v4623_v31 = vmul.f32 %v7530_v2, %v7530_v2  ;;  %v7535_v26 = vsub.f32 %v4575_v34, %v4608_v19 }
 0x77a   : > { %v7537_v35 = vsub.f32 %v4577_v1, %v4610_v49  ;;  %v4631_v50 = vsel %vm516_vm0, %v4623_v31, 0.0  ;;  %v4624_v6 = vmul.f32 %v7535_v26, %v7535_v26 }
 0x77b   : > { %4632 = vadd.xlane.f32.xlu1 %v4631_v50 }
 0x77c   : > { %v4626_v46 = vmul.f32 %v7537_v35, %v7537_v35  ;;  %v4634_v27 = vsel %vm516_vm0, %v4624_v6, 0.0 }
 0x77e   : > { %v4640_v52 = vsel %vm516_vm0, %v4626_v46, 0.0 }
 0x77f   : > { %4641 = vadd.xlane.f32.xlu0 %v4640_v52 }
 0x781   : > { %v4596_v42 = vpop.xlane.xlu1 %4595 }
 0x782   : > { %v4611_v25 = vmul.f32 0.03125, %v4596_v42 }
 0x783   : > { %4635 = vadd.xlane.f32.xlu0 %v4634_v27 }
 0x784   : > { %v7546_v30 = vsub.f32 %v4578_v14, %v4611_v25 }
 0x785   : > { %v4602_v9 = vpop.xlane.xlu1 %4601  ;;  %v4599_v3 = vpop.xlane.xlu0 %4598 }
 0x786   : > { %v4613_v29 = vmul.f32 0.03125, %v4602_v9  ;;  %v4612_v5 = vmul.f32 0.03125, %v4599_v3  ;;  %v4627_v23 = vmul.f32 %v7546_v30, %v7546_v30 }
 0x788   : > { %v7550_v11 = vsub.f32 %v4580_v40, %v4613_v29  ;;  %v7552_v10 = vsub.f32 %v4579_v37, %v4612_v5  ;;  %v4643_v21 = vsel %vm516_vm0, %v4627_v23, 0.0  ;;  %v4967_v40 = vld [vmem:[%s7658_s8] ss:$0 sm:$0xff] }
 0x789   : > { %4644 = vadd.xlane.f32.xlu1 %v4643_v21  ;;  %v4605_v45 = vpop.xlane.xlu0 %4604 }
 0x78a   : > { %v4614_v55 = vmul.f32 0.03125, %v4605_v45  ;;  %v4629_v18 = vmul.f32 %v7550_v11, %v7550_v11  ;;  %v4628_v4 = vmul.f32 %v7552_v10, %v7552_v10 }
 0x78c   : > { %v7559_v24 = vsub.f32 %v4581_v48, %v4614_v55  ;;  %v4649_v51 = vsel %vm516_vm0, %v4629_v18, 0.0  ;;  %v4646_v32 = vsel %vm516_vm0, %v4628_v4, 0.0 }
 0x78d   : > { %4650 = vadd.xlane.f32.xlu1 %v4649_v51  ;;  %4647 = vadd.xlane.f32.xlu0 %v4646_v32 }
 0x78e   : > { %v4630_v1 = vmul.f32 %v7559_v24, %v7559_v24 }
 0x790   : > { %v4652_v16 = vsel %vm516_vm0, %v4630_v1, 0.0 }
 0x791   : > { %4653 = vadd.xlane.f32.xlu0 %v4652_v16 }
 0x800   : > { %v4639_v34 = vpop.xlane.xlu1 %4638 }
 0x801   : > { %v4657_v33 = vmul.f32 0.03125, %v4639_v34 }
 0x803   : > { %v4665_v61 = vadd.f32 1e-05, %v4657_v33 }
 0x804   : > { %v4633_v13 = vpop.xlane.xlu1 %4632 }
 0x805   : > { %5957 = vrsqrt.f32 %v4665_v61  ;;  %v4655_v12 = vmul.f32 0.03125, %v4633_v13 }
 0x807   : > { %v4663_v41 = vadd.f32 1e-05, %v4655_v12 }
 0x808   : > { %v4642_v39 = vpop.xlane.xlu0 %4641 }
 0x809   : > { %5959 = vrsqrt.f32 %v4663_v41  ;;  %v4658_v43 = vmul.f32 0.03125, %v4642_v39 }
 0x80b   : > { %v4666_v15 = vadd.f32 1e-05, %v4658_v43 }
 0x80c   : > { %v4636_v7 = vpop.xlane.xlu0 %4635 }
 0x80d   : > { %5961 = vrsqrt.f32 %v4666_v15  ;;  %v4656_v14 = vmul.f32 0.03125, %v4636_v7 }
 0x80f   : > { %v4664_v47 = vadd.f32 1e-05, %v4656_v14 }
 0x811   : > { %5963 = vrsqrt.f32 %v4664_v47 }
 0x812   : > { %v5958_v44 = vpop.eup %5957  ;;  %v4645_v38 = vpop.xlane.xlu1 %4644 }
 0x813   : > { %v4681_v57 = vmul.f32 %v5958_v44, %v7526_v36  ;;  %v4659_v58 = vmul.f32 0.03125, %v4645_v38 }
 0x815   : > { %v4696_v37 = vmul.f32 %v4967_v40, %v4681_v57  ;;  %v4667_v17 = vadd.f32 1e-05, %v4659_v58 }
 0x816   : > { %v5960_v48 = vpop.eup %5959  ;;  %v4651_v60 = vpop.xlane.xlu1 %4650 }
 0x817   : > { %v4648_v53 = vpop.xlane.xlu0 %4647  ;;  %v4711_v62 = vadd.f32 %v4968_v28, %v4696_v37  ;;  %v4679_v20 = vmul.f32 %v5960_v48, %v7530_v2  ;;  %5965 = vrsqrt.f32 %v4667_v17  ;;  %v4661_v8 = vmul.f32 0.03125, %v4651_v60 }
 0x818   : > { %v4660_v22 = vmul.f32 0.03125, %v4648_v53 }
 0x819   : > { %4719 = vst.msk [vmem:[%s7575_s6 + $0x10] sm:$0xff] %vm516_vm0, %v4711_v62  ;;  %v4694_v36 = vmul.f32 %v4967_v40, %v4679_v20  ;;  %v4669_v0 = vadd.f32 1e-05, %v4661_v8 }
 0x81a   : > { %v5962_v56 = vpop.eup %5961  ;;  %v4668_v63 = vadd.f32 1e-05, %v4660_v22 }
 0x81b   : > { %v4654_v19 = vpop.xlane.xlu0 %4653  ;;  %v4709_v59 = vadd.f32 %v4968_v28, %v4694_v36  ;;  %v4682_v54 = vmul.f32 %v5962_v56, %v7537_v35  ;;  %5967 = vrsqrt.f32 %v4669_v0 }
 0x81c   : > { %v4662_v2 = vmul.f32 0.03125, %v4654_v19  ;;  %5969 = vrsqrt.f32 %v4668_v63 }
 0x81d   : > { %4717 = vst.msk [vmem:[%s7575_s6] sm:$0xff] %vm516_vm0, %v4709_v59  ;;  %v4697_v49 = vmul.f32 %v4967_v40, %v4682_v54 }
 0x81e   : > { %v4670_v31 = vadd.f32 1e-05, %v4662_v2  ;;  %v5964_v50 = vpop.eup %5963 }
 0x81f   : > { %v4712_v46 = vadd.f32 %v4968_v28, %v4697_v49  ;;  %v4680_v52 = vmul.f32 %v5964_v50, %v7535_v26 }
 0x820   : > { %5971 = vrsqrt.f32 %v4670_v31 }
 0x821   : > { %4720 = vst.msk [vmem:[%s7575_s6 + $0x18] sm:$0xff] %vm516_vm0, %v4712_v46  ;;  %v4695_v6 = vmul.f32 %v4967_v40, %v4680_v52 }
 0x823   : > { %v4710_v42 = vadd.f32 %v4968_v28, %v4695_v6 }
 0x824   : > { %v5966_v25 = vpop.eup %5965 }
 0x825   : > { %4718 = vst.msk [vmem:[%s7575_s6 + $0x8] sm:$0xff] %vm516_vm0, %v4710_v42  ;;  %v4683_v35 = vmul.f32 %v5966_v25, %v7546_v30 }
 0x827   : > { %v4698_v27 = vmul.f32 %v4967_v40, %v4683_v35 }
 0x828   : > { %v5968_v9 = vpop.eup %5967 }
 0x829   : > { %v5970_v3 = vpop.eup %5969  ;;  %v4713_v29 = vadd.f32 %v4968_v28, %v4698_v27  ;;  %v4685_v26 = vmul.f32 %v5968_v9, %v7550_v11 }
 0x82a   : > { %v4684_v5 = vmul.f32 %v5970_v3, %v7552_v10 }
 0x82b   : > { %4721 = vst.msk [vmem:[%s7575_s6 + $0x20] sm:$0xff] %vm516_vm0, %v4713_v29  ;;  %v4700_v23 = vmul.f32 %v4967_v40, %v4685_v26 }
 0x82c   : > { %v4699_v45 = vmul.f32 %v4967_v40, %v4684_v5 }
 0x82d   : > { %v5972_v21 = vpop.eup %5971  ;;  %v4715_v55 = vadd.f32 %v4968_v28, %v4700_v23 }
 0x82e   : > { %v4686_v30 = vmul.f32 %v5972_v21, %v7559_v24  ;;  %v4714_v18 = vadd.f32 %v4968_v28, %v4699_v45 }
 0x82f   : > { %4723 = vst.msk [vmem:[%s7575_s6 + $0x30] sm:$0xff] %vm516_vm0, %v4715_v55 }
 0x830   : > { %v4701_v4 = vmul.f32 %v4967_v40, %v4686_v30  ;;  %4722 = vst.msk [vmem:[%s7575_s6 + $0x28] sm:$0xff] %vm516_vm0, %v4714_v18 }
 0x832   : > { %v4716_v11 = vadd.f32 %v4968_v28, %v4701_v4 }
 0x834   : > { %4724 = vst.msk [vmem:[%s7575_s6 + $0x38] sm:$0xff] %vm516_vm0, %v4716_v11 }
 0x835   : > { %6128 = shalt.err (!%p6125_p13)
}
 0x836   : > { %s6129_s29 = scalar_lea.hbm %s7602_s23, 1024  ;;  %s6133_s21 = scalar_lea.hbm %s7660_s10, 2048 }
 0x837   : > { %p6130_p6 = scmp.ne.s32.totalorder %s7602_s23, %s6129_s29  ;;  %p6134_p11 = scmp.lt.s32.totalorder %s7602_s23, %s7660_s10 }
 0x838   : > { %p6135_p4 = scmp.lt.s32.totalorder %s6133_s21, %s6129_s29 }
 0x839   : > { %p6131_p1 = pnand %p6130_p6, %p7692_p5 }
 0x83a   : > { %p6136_p12 = por %p6135_p4, %p6134_p11 }
 0x83b   : > { %p6132_p8 = pneg %p6131_p1 }
 0x83d   : > { %p6137_p0 = pnand %p6136_p12, %p6132_p8 }
 0x83f   : > { %6140 = shalt.err (!%p6137_p0)
}
 0x840   : > { %s6212_s6 = smov 128  }
 0x841   : > { %5563 = dma.vmem_to_hbm [thread:$0]  (%p7692_p5), %s7604_s27, 1024, %s7602_s23, %s4726_s17, %s6212_s6, %s6212_s6, %s6208_s28  }
 0x842 PF: > { %s4754_s2 = sand.u32 1, %s6179_s13   ;;  %p7693_p3 = scmp.ne.s32.totalorder %s7674_s20, 0 }
 0x843   : > { %p7694_p7 = scmp.ge.s32.totalorder %s6191_s16, 2  ;;  %s4755_s11 = scalar_lea.sflag [#allocation4], %s4754_s2 }
 0x845   : > { %p5583_p9 = pnand %p7694_p7, %p7693_p3 }
 0x847   : > { %p5584_p2 = pneg %p5583_p9 }
 0x849   : > { %6174 = dma.done.wait (%p5584_p2), %s4755_s11, 1024  }
 0x84a   : > { %6176 = vsyncadd (%p5584_p2), %s4755_s11, 4294966272  ;;  %s7695_s16 = sld [smem:[#allocation18_spill]]  ;;  %s7698_s13 = smov %s6183_s14 }
 0x84b   : > { %s7696_s25 = sld [smem:[#allocation17_spill]] }
 0x84c   : > { %s7697_s15 = sld [smem:[#allocation19_spill]] }
 0x850   : > { %p27_p10 = scmp.ge.s32.totalorder %s7695_s16, 4  }
 0x851   : > { %s7699_s14 = smov %s7696_s25 }
 0x852   :  { %29 = sbr.rel (!%p27_p10) target bundleno = 13 (0xd), region = 130 }
 0x857   :  { %4760 = vsyncpa [#allocation3], 1 }
 0x858   :  { %4762 = vsyncpa [#allocation3 + $0x1], 1 }
 0x859   :  { %4763 = vsyncpa [#allocation6], 1 }
 0x85a   :  { %4765 = vsyncpa [#allocation6 + $0x1], 1 }
 0x85b   :  { %4766 = vsyncpa [#allocation9], 1 }
 0x85c   :  { %4767 = vsyncpa [#allocation4], 1 }
 0x85d   :  { %4769 = vsyncpa [#allocation4 + $0x1], 1 }

</bundles_post_ra>
